<compile_context>
chip_gen: v6e
topology: v6e:2x2x1
jax: 0.10.0
libtpu: 0.0.40
codegen_flags: <defaults>
</compile_context>

<pallas_src>
import functools

import jax
import jax.numpy as jnp
from jax.experimental import pallas as pl
from jax.experimental.pallas import tpu as pltpu


# --------------------------------------------------------------------------
# Kernel 1: DRW edge gate + GCN1 + ReLU + dropout
#   grid = (row tiles, contraction tiles)
#   outputs: Ar [N, N] (reused by kernel 2) and H1 [N, hidden_pad]
# --------------------------------------------------------------------------
def _drw_gcn1_kernel(we_ref, be_ref,                    # SMEM scalars
                     e_ref, h_ref, w1_ref, b1_ref, mask_ref,   # VMEM blocks
                     ar_ref, h1_ref,                    # outputs
                     acc_ref):                          # scratch (tm, d_pad)
    k = pl.program_id(1)

    @pl.when(k == 0)
    def _():
        acc_ref[...] = jnp.zeros_like(acc_ref)

    # DRW edge gate for this (row, col) tile: Ar = sum_d E[d]*we[d] + be.
    # e_ref block is [d_edge, tm, tk] -> lane-dense VPU multiply-adds.
    ew = jnp.full(ar_ref.shape, be_ref[0], dtype=jnp.float32)
    for d in range(e_ref.shape[0]):          # d_edge is small and static
        ew = ew + we_ref[d] * e_ref[d]
    ar_ref[...] = ew

    # Aggregate: acc += Ar_tile @ H_tile   (MXU, f32 accumulate)
    acc_ref[...] += jnp.dot(ew, h_ref[...], preferred_element_type=jnp.float32)

    @pl.when(k == pl.num_programs(1) - 1)
    def _():
        m1 = jnp.dot(acc_ref[...], w1_ref[...],
                     preferred_element_type=jnp.float32) + b1_ref[...]
        m1 = jnp.maximum(m1, 0.0)                         # ReLU
        h1_ref[...] = m1 * mask_ref[...]                  # dropout (pre-scaled mask)


# --------------------------------------------------------------------------
# Kernel 2: GCN2 + log_softmax
# --------------------------------------------------------------------------
def _gcn2_kernel(ar_ref, h1_ref, w2_ref, b2_ref, out_ref, acc_ref):
    k = pl.program_id(1)

    @pl.when(k == 0)
    def _():
        acc_ref[...] = jnp.zeros_like(acc_ref)

    acc_ref[...] += jnp.dot(ar_ref[...], h1_ref[...],
                            preferred_element_type=jnp.float32)

    @pl.when(k == pl.num_programs(1) - 1)
    def _():
        # Padded class lanes carry a -1e30 bias -> effectively masked out.
        logits = jnp.dot(acc_ref[...], w2_ref[...],
                         preferred_element_type=jnp.float32) + b2_ref[...]
        m = jnp.max(logits, axis=1, keepdims=True)
        lse = jnp.log(jnp.sum(jnp.exp(logits - m), axis=1, keepdims=True)) + m
        out_ref[...] = logits - lse


# --------------------------------------------------------------------------
# Wrapper
# --------------------------------------------------------------------------
_LANE = 128


def _round_up(x, m):
    return ((x + m - 1) // m) * m


def _pad_last(x, target):
    pad = target - x.shape[-1]
    if pad == 0:
        return x
    return jnp.pad(x, [(0, 0)] * (x.ndim - 1) + [(0, pad)])


@functools.partial(jax.jit, static_argnames=("training",))
def drw_net_forward(H, A, E, params, dropout_key, *, training=True):
    # A is accepted for API parity with the PyTorch module, but its forward
    # pass never uses it (Ar from DRW(E) replaces it).
    del A

    N, d_node = H.shape
    d_edge = E.shape[-1]
    hidden = params["W1"].shape[1]
    n_classes = params["W2"].shape[1]

    d_pad = _round_up(d_node, _LANE)
    h_pad = _round_up(hidden, _LANE)
    c_pad = _round_up(n_classes, _LANE)

    # ---- lane-dense layouts (done once, outside the grid loop) -------------
    E_t = jnp.transpose(E.astype(jnp.float32), (2, 0, 1))         # [d_edge, N, N]
    H_p = _pad_last(H.astype(jnp.float32), d_pad)                 # [N, d_pad]
    W1_p = _pad_last(jnp.pad(params["W1"].astype(jnp.float32),
                             ((0, d_pad - d_node), (0, 0))), h_pad)
    b1_p = _pad_last(params["b1"].astype(jnp.float32).reshape(1, -1), h_pad)
    W2_p = _pad_last(jnp.pad(params["W2"].astype(jnp.float32),
                             ((0, h_pad - hidden), (0, 0))), c_pad)
    b2_p = jnp.concatenate(
        [params["b2"].astype(jnp.float32).reshape(1, -1),
         jnp.full((1, c_pad - n_classes), -1e30, jnp.float32)], axis=-1)

    # ---- dropout mask (p=0.5, F.dropout default training=True) -------------
    if training:
        keep = jax.random.bernoulli(dropout_key, 0.5, (N, h_pad))
        mask = keep.astype(jnp.float32) * 2.0                     # 1/(1-p) scaling
    else:
        mask = jnp.ones((N, h_pad), jnp.float32)

    # ---- tiling -------------------------------------------------------------
    # 256-wide tiles for the 2x256 MXU on v6e/v7x; 128 when N is only a
    # multiple of 128 (v5e's 4x128 MXU); whole array for tiny N.
    if N % 256 == 0 and N >= 512:
        bm = 256
    elif N % 128 == 0:
        bm = 128
    else:
        bm = N
    bk = bm
    nr, nk = N // bm, N // bk

    compiler_params = pltpu.CompilerParams(
        dimension_semantics=("parallel", "arbitrary"),
        vmem_limit_bytes=32 * 1024 * 1024,
    )
    smem = pl.BlockSpec(memory_space=pltpu.SMEM)

    # ---------------- layer 1: DRW gate + GCN1 + ReLU + dropout -------------
    Ar, H1 = pl.pallas_call(
        _drw_gcn1_kernel,
        out_shape=(jax.ShapeDtypeStruct((N, N), jnp.float32),
                   jax.ShapeDtypeStruct((N, h_pad), jnp.float32)),
        grid_spec=pltpu.PrefetchScalarGridSpec(
            num_scalar_prefetch=0,
            grid=(nr, nk),
            in_specs=[
                smem,                                                   # we
                smem,                                                   # be
                pl.BlockSpec((d_edge, bm, bk), lambda i, k: (0, i, k)),  # E_t
                pl.BlockSpec((bk, d_pad), lambda i, k: (k, 0)),          # H
                pl.BlockSpec((d_pad, h_pad), lambda i, k: (0, 0)),       # W1
                pl.BlockSpec((1, h_pad), lambda i, k: (0, 0)),           # b1
                pl.BlockSpec((bm, h_pad), lambda i, k: (i, 0)),          # mask
            ],
            out_specs=(
                pl.BlockSpec((bm, bk), lambda i, k: (i, k)),             # Ar
                pl.BlockSpec((bm, h_pad), lambda i, k: (i, 0)),          # H1
            ),
            scratch_shapes=[pltpu.VMEM((bm, d_pad), jnp.float32)],
        ),
        compiler_params=compiler_params,
    )(params["we"].astype(jnp.float32), params["be"].astype(jnp.float32),
      E_t, H_p, W1_p, b1_p, mask)

    # ---------------- layer 2: GCN2 + log_softmax ----------------------------
    out_pad = pl.pallas_call(
        _gcn2_kernel,
        out_shape=jax.ShapeDtypeStruct((N, c_pad), jnp.float32),
        grid_spec=pltpu.PrefetchScalarGridSpec(
            num_scalar_prefetch=0,
            grid=(nr, nk),
            in_specs=[
                pl.BlockSpec((bm, bk), lambda i, k: (i, k)),             # Ar
                pl.BlockSpec((bk, h_pad), lambda i, k: (k, 0)),          # H1
                pl.BlockSpec((h_pad, c_pad), lambda i, k: (0, 0)),       # W2
                pl.BlockSpec((1, c_pad), lambda i, k: (0, 0)),           # b2
            ],
            out_specs=pl.BlockSpec((bm, c_pad), lambda i, k: (i, 0)),
            scratch_shapes=[pltpu.VMEM((bm, h_pad), jnp.float32)],
        ),
        compiler_params=compiler_params,
    )(Ar, H1, W2_p, b2_p)

    # Lane-dense slab is written by the kernel; slice real classes here.
    return out_pad[:, :n_classes]


def init_params(key, d_node, d_edge, n_classes, hidden_units):
    ks = jax.random.split(key, 6)

    def lin(k, fan_in, shape):
        bound = 1.0 / jnp.sqrt(jnp.float32(fan_in))
        return jax.random.uniform(k, shape, jnp.float32, -bound, bound)

    return {
        # GCN1: d_node -> hidden_units
        "W1": lin(ks[0], d_node, (d_node, hidden_units)),
        "b1": lin(ks[1], d_node, (hidden_units,)),
        # GCN2: hidden_units -> n_classes
        "W2": lin(ks[2], hidden_units, (hidden_units, n_classes)),
        "b2": lin(ks[3], hidden_units, (n_classes,)),
        # DRW: d_edge -> per-edge scalar gate
        "we": lin(ks[4], d_edge, (d_edge,)),
        "be": lin(ks[5], d_edge, (1,)),
    }


if __name__ == "__main__":
    # Small graph, but big enough to exercise the (rows, k) grid with 256 tiles.
    N, d_node, d_edge, hidden_units, n_classes = 512, 16, 4, 32, 8

    key = jax.random.PRNGKey(0)
    k_h, k_a, k_e, k_p, k_drop = jax.random.split(key, 5)

    H = jax.random.normal(k_h, (N, d_node), jnp.float32)
    # Symmetric 0/1 adjacency with self loops (unused by the forward, kept for
    # API parity with DRW_Net.forward(H, A, E)).
    A_rand = jax.random.uniform(k_a, (N, N), jnp.float32)
    A = ((A_rand + A_rand.T) > 1.0).astype(jnp.float32) + jnp.eye(N, dtype=jnp.float32)
    A = jnp.clip(A, 0.0, 1.0)
    E = 0.1 * jax.random.normal(k_e, (N, N, d_edge), jnp.float32)

    params = init_params(k_p, d_node, d_edge, n_classes, hidden_units)

    out = drw_net_forward(H, A, E, params, k_drop, training=True)
    out = jax.block_until_ready(out)

    assert out.shape == (N, n_classes)
    assert bool(jnp.all(jnp.isfinite(out)))
    print("KERNEL_OK")
</pallas_src>

<mosaic_0001>
module attributes {stable_mosaic.version = 11 : i64} {
  func.func @_drw_gcn1_kernel(%arg0: i32, %arg1: i32, %arg2: memref<4xf32, #tpu.memory_space<smem>>, %arg3: memref<1xf32, #tpu.memory_space<smem>>, %arg4: memref<4x256x256xf32, #tpu.memory_space<vmem>>, %arg5: memref<256x128xf32, #tpu.memory_space<vmem>>, %arg6: memref<128x128xf32, #tpu.memory_space<vmem>>, %arg7: memref<1x128xf32, #tpu.memory_space<vmem>>, %arg8: memref<256x128xf32, #tpu.memory_space<vmem>>, %arg9: memref<256x256xf32, #tpu.memory_space<vmem>>, %arg10: memref<256x128xf32, #tpu.memory_space<vmem>>, %arg11: memref<256x128xf32, #tpu.memory_space<vmem>>) attributes {dimension_semantics = [#tpu.dimension_semantics<parallel>, #tpu.dimension_semantics<arbitrary>], iteration_bounds = array<i64: 2, 2>, scalar_prefetch = 0 : i64, scratch_operands = 1 : i64, tpu.core_type = #tpu.core_type<tc>, window_params = [{transform_indices = @transform_0, window_bounds = array<i64: 4>}, {transform_indices = @transform_1, window_bounds = array<i64: 1>}, {transform_indices = @transform_2, window_bounds = array<i64: 4, 256, 256>}, {transform_indices = @transform_3, window_bounds = array<i64: 256, 128>}, {pipeline_mode = #tpu.pipeline_mode<synchronous>, transform_indices = @transform_4, window_bounds = array<i64: 128, 128>}, {pipeline_mode = #tpu.pipeline_mode<synchronous>, transform_indices = @transform_5, window_bounds = array<i64: 1, 128>}, {transform_indices = @transform_6, window_bounds = array<i64: 256, 128>}, {transform_indices = @transform_7, window_bounds = array<i64: 256, 256>}, {transform_indices = @transform_8, window_bounds = array<i64: 256, 128>}]} {
    %c0_i32 = arith.constant 0 : i32
    %0 = arith.cmpi eq, %arg1, %c0_i32 : i32
    %1 = arith.extui %0 : i1 to i32
    %c0_i32_0 = arith.constant 0 : i32
    %2 = arith.cmpi ne, %1, %c0_i32_0 : i32
    scf.if %2 {
      %cst_23 = arith.constant 0.000000e+00 : f32
      %38 = vector.broadcast %cst_23 : f32 to vector<256x128xf32>
      %c0_24 = arith.constant 0 : index
      %c0_25 = arith.constant 0 : index
      %39 = vector.load %arg11[%c0_24, %c0_25] : memref<256x128xf32, #tpu.memory_space<vmem>>, vector<256x128xf32>
      tpu.vector_store %arg11[%c0_24, %c0_25], %38 {strides = array<i32>} : memref<256x128xf32, #tpu.memory_space<vmem>>, vector<256x128xf32>,
    } else {
    }
    %c0 = arith.constant 0 : index
    %3 = memref.load %arg3[%c0] : memref<1xf32, #tpu.memory_space<smem>>
    %4 = vector.broadcast %3 : f32 to vector<256x256xf32>
    %c0_1 = arith.constant 0 : index
    %5 = memref.load %arg2[%c0_1] : memref<4xf32, #tpu.memory_space<smem>>
    %c0_2 = arith.constant 0 : index
    %c0_3 = arith.constant 0 : index
    %c0_4 = arith.constant 0 : index
    %6 = vector.load %arg4[%c0_2, %c0_3, %c0_4] : memref<4x256x256xf32, #tpu.memory_space<vmem>>, vector<1x256x256xf32>
    %7 = vector.shape_cast %6 : vector<1x256x256xf32> to vector<256x256xf32>
    %8 = vector.broadcast %5 : f32 to vector<256x256xf32>
    %9 = arith.mulf %8, %7 : vector<256x256xf32>
    %10 = arith.addf %4, %9 : vector<256x256xf32>
    %c1 = arith.constant 1 : index
    %11 = memref.load %arg2[%c1] : memref<4xf32, #tpu.memory_space<smem>>
    %c1_5 = arith.constant 1 : index
    %c0_6 = arith.constant 0 : index
    %c0_7 = arith.constant 0 : index
    %12 = vector.load %arg4[%c1_5, %c0_6, %c0_7] : memref<4x256x256xf32, #tpu.memory_space<vmem>>, vector<1x256x256xf32>
    %13 = vector.shape_cast %12 : vector<1x256x256xf32> to vector<256x256xf32>
    %14 = vector.broadcast %11 : f32 to vector<256x256xf32>
    %15 = arith.mulf %14, %13 : vector<256x256xf32>
    %16 = arith.addf %10, %15 : vector<256x256xf32>
    %c2 = arith.constant 2 : index
    %17 = memref.load %arg2[%c2] : memref<4xf32, #tpu.memory_space<smem>>
    %c2_8 = arith.constant 2 : index
    %c0_9 = arith.constant 0 : index
    %c0_10 = arith.constant 0 : index
    %18 = vector.load %arg4[%c2_8, %c0_9, %c0_10] : memref<4x256x256xf32, #tpu.memory_space<vmem>>, vector<1x256x256xf32>
    %19 = vector.shape_cast %18 : vector<1x256x256xf32> to vector<256x256xf32>
    %20 = vector.broadcast %17 : f32 to vector<256x256xf32>
    %21 = arith.mulf %20, %19 : vector<256x256xf32>
    %22 = arith.addf %16, %21 : vector<256x256xf32>
    %c3 = arith.constant 3 : index
    %23 = memref.load %arg2[%c3] : memref<4xf32, #tpu.memory_space<smem>>
    %c3_11 = arith.constant 3 : index
    %c0_12 = arith.constant 0 : index
    %c0_13 = arith.constant 0 : index
    %24 = vector.load %arg4[%c3_11, %c0_12, %c0_13] : memref<4x256x256xf32, #tpu.memory_space<vmem>>, vector<1x256x256xf32>
    %25 = vector.shape_cast %24 : vector<1x256x256xf32> to vector<256x256xf32>
    %26 = vector.broadcast %23 : f32 to vector<256x256xf32>
    %27 = arith.mulf %26, %25 : vector<256x256xf32>
    %28 = arith.addf %22, %27 : vector<256x256xf32>
    %c0_14 = arith.constant 0 : index
    %c0_15 = arith.constant 0 : index
    %29 = vector.load %arg9[%c0_14, %c0_15] : memref<256x256xf32, #tpu.memory_space<vmem>>, vector<256x256xf32>
    tpu.vector_store %arg9[%c0_14, %c0_15], %28 {strides = array<i32>} : memref<256x256xf32, #tpu.memory_space<vmem>>, vector<256x256xf32>,
    %c0_16 = arith.constant 0 : index
    %c0_17 = arith.constant 0 : index
    %30 = vector.load %arg11[%c0_16, %c0_17] : memref<256x128xf32, #tpu.memory_space<vmem>>, vector<256x128xf32>
    %c0_18 = arith.constant 0 : index
    %c0_19 = arith.constant 0 : index
    %31 = vector.load %arg5[%c0_18, %c0_19] : memref<256x128xf32, #tpu.memory_space<vmem>>, vector<256x128xf32>
    %cst = arith.constant dense<0.000000e+00> : vector<256x128xf32>
    %32 = tpu.matmul %28, %31, %cst {dimension_numbers = #tpu.dot_dimension_numbers<[1], [0], [0], [1], [0, 0, 1, 1], [], []>} : vector<256x256xf32>, vector<256x128xf32>, vector<256x128xf32> -> vector<256x128xf32>
    %33 = arith.addf %30, %32 : vector<256x128xf32>
    %c0_20 = arith.constant 0 : index
    %c0_21 = arith.constant 0 : index
    %34 = vector.load %arg11[%c0_20, %c0_21] : memref<256x128xf32, #tpu.memory_space<vmem>>, vector<256x128xf32>
    tpu.vector_store %arg11[%c0_20, %c0_21], %33 {strides = array<i32>} : memref<256x128xf32, #tpu.memory_space<vmem>>, vector<256x128xf32>,
    %c1_i32 = arith.constant 1 : i32
    %35 = arith.cmpi eq, %arg1, %c1_i32 : i32
    %36 = arith.extui %35 : i1 to i32
    %c0_i32_22 = arith.constant 0 : i32
    %37 = arith.cmpi ne, %36, %c0_i32_22 : i32
    scf.if %37 {
      %c0_23 = arith.constant 0 : index
      %c0_24 = arith.constant 0 : index
      %38 = vector.load %arg11[%c0_23, %c0_24] : memref<256x128xf32, #tpu.memory_space<vmem>>, vector<256x128xf32>
      %c0_25 = arith.constant 0 : index
      %c0_26 = arith.constant 0 : index
      %39 = vector.load %arg6[%c0_25, %c0_26] : memref<128x128xf32, #tpu.memory_space<vmem>>, vector<128x128xf32>
      %cst_27 = arith.constant dense<0.000000e+00> : vector<256x128xf32>
      %40 = tpu.matmul %38, %39, %cst_27 {dimension_numbers = #tpu.dot_dimension_numbers<[1], [0], [0], [1], [0, 0, 1, 1], [], []>} : vector<256x128xf32>, vector<128x128xf32>, vector<256x128xf32> -> vector<256x128xf32>
      %c0_28 = arith.constant 0 : index
      %c0_29 = arith.constant 0 : index
      %41 = vector.load %arg7[%c0_28, %c0_29] : memref<1x128xf32, #tpu.memory_space<vmem>>, vector<1x128xf32>
      %42 = vector.broadcast %41 : vector<1x128xf32> to vector<256x128xf32>
      %43 = arith.addf %40, %42 : vector<256x128xf32>
      %cst_30 = arith.constant 0.000000e+00 : f32
      %44 = vector.broadcast %cst_30 : f32 to vector<256x128xf32>
      %45 = arith.maximumf %43, %44 : vector<256x128xf32>
      %c0_31 = arith.constant 0 : index
      %c0_32 = arith.constant 0 : index
      %46 = vector.load %arg8[%c0_31, %c0_32] : memref<256x128xf32, #tpu.memory_space<vmem>>, vector<256x128xf32>
      %47 = arith.mulf %45, %46 : vector<256x128xf32>
      %c0_33 = arith.constant 0 : index
      %c0_34 = arith.constant 0 : index
      %48 = vector.load %arg10[%c0_33, %c0_34] : memref<256x128xf32, #tpu.memory_space<vmem>>, vector<256x128xf32>
      tpu.vector_store %arg10[%c0_33, %c0_34], %47 {strides = array<i32>} : memref<256x128xf32, #tpu.memory_space<vmem>>, vector<256x128xf32>,
    } else {
    }
    return
  }
  func.func @transform_0(%arg0: i32, %arg1: i32) -> i32 {
    %c0_i32 = arith.constant 0 : i32
    %c0_i32_0 = arith.constant 0 : i32
    return %c0_i32 : i32
  }
  func.func @transform_1(%arg0: i32, %arg1: i32) -> i32 {
    %c0_i32 = arith.constant 0 : i32
    %c0_i32_0 = arith.constant 0 : i32
    return %c0_i32 : i32
  }
  func.func @transform_2(%arg0: i32, %arg1: i32) -> (i32, i32, i32) {
    %c0_i32 = arith.constant 0 : i32
    %c0_i32_0 = arith.constant 0 : i32
    return %c0_i32, %arg0, %arg1 : i32, i32, i32
  }
  func.func @transform_3(%arg0: i32, %arg1: i32) -> (i32, i32) {
    %c0_i32 = arith.constant 0 : i32
    %c0_i32_0 = arith.constant 0 : i32
    return %arg1, %c0_i32 : i32, i32
  }
  func.func @transform_4(%arg0: i32, %arg1: i32) -> (i32, i32) {
    %c0_i32 = arith.constant 0 : i32
    %c0_i32_0 = arith.constant 0 : i32
    %c0_i32_1 = arith.constant 0 : i32
    return %c0_i32, %c0_i32_0 : i32, i32
  }
  func.func @transform_5(%arg0: i32, %arg1: i32) -> (i32, i32) {
    %c0_i32 = arith.constant 0 : i32
    %c0_i32_0 = arith.constant 0 : i32
    %c0_i32_1 = arith.constant 0 : i32
    return %c0_i32, %c0_i32_0 : i32, i32
  }
  func.func @transform_6(%arg0: i32, %arg1: i32) -> (i32, i32) {
    %c0_i32 = arith.constant 0 : i32
    %c0_i32_0 = arith.constant 0 : i32
    return %arg0, %c0_i32 : i32, i32
  }
  func.func @transform_7(%arg0: i32, %arg1: i32) -> (i32, i32) {
    %c0_i32 = arith.constant 0 : i32
    return %arg0, %arg1 : i32, i32
  }
  func.func @transform_8(%arg0: i32, %arg1: i32) -> (i32, i32) {
    %c0_i32 = arith.constant 0 : i32
    %c0_i32_0 = arith.constant 0 : i32
    return %arg0, %c0_i32 : i32, i32
  }
}

module attributes {stable_mosaic.version = 11 : i64} {
  func.func @_gcn2_kernel(%arg0: i32, %arg1: i32, %arg2: memref<256x256xf32, #tpu.memory_space<vmem>>, %arg3: memref<256x128xf32, #tpu.memory_space<vmem>>, %arg4: memref<128x128xf32, #tpu.memory_space<vmem>>, %arg5: memref<1x128xf32, #tpu.memory_space<vmem>>, %arg6: memref<256x128xf32, #tpu.memory_space<vmem>>, %arg7: memref<256x128xf32, #tpu.memory_space<vmem>>) attributes {dimension_semantics = [#tpu.dimension_semantics<parallel>, #tpu.dimension_semantics<arbitrary>], iteration_bounds = array<i64: 2, 2>, scalar_prefetch = 0 : i64, scratch_operands = 1 : i64, tpu.core_type = #tpu.core_type<tc>, window_params = [{transform_indices = @transform_0, window_bounds = array<i64: 256, 256>}, {transform_indices = @transform_1, window_bounds = array<i64: 256, 128>}, {pipeline_mode = #tpu.pipeline_mode<synchronous>, transform_indices = @transform_2, window_bounds = array<i64: 128, 128>}, {pipeline_mode = #tpu.pipeline_mode<synchronous>, transform_indices = @transform_3, window_bounds = array<i64: 1, 128>}, {transform_indices = @transform_4, window_bounds = array<i64: 256, 128>}]} {
    %c0_i32 = arith.constant 0 : i32
    %0 = arith.cmpi eq, %arg1, %c0_i32 : i32
    %1 = arith.extui %0 : i1 to i32
    %c0_i32_0 = arith.constant 0 : i32
    %2 = arith.cmpi ne, %1, %c0_i32_0 : i32
    scf.if %2 {
      %cst_9 = arith.constant 0.000000e+00 : f32
      %12 = vector.broadcast %cst_9 : f32 to vector<256x128xf32>
      %c0_10 = arith.constant 0 : index
      %c0_11 = arith.constant 0 : index
      %13 = vector.load %arg7[%c0_10, %c0_11] : memref<256x128xf32, #tpu.memory_space<vmem>>, vector<256x128xf32>
      tpu.vector_store %arg7[%c0_10, %c0_11], %12 {strides = array<i32>} : memref<256x128xf32, #tpu.memory_space<vmem>>, vector<256x128xf32>,
    } else {
    }
    %c0 = arith.constant 0 : index
    %c0_1 = arith.constant 0 : index
    %3 = vector.load %arg7[%c0, %c0_1] : memref<256x128xf32, #tpu.memory_space<vmem>>, vector<256x128xf32>
    %c0_2 = arith.constant 0 : index
    %c0_3 = arith.constant 0 : index
    %4 = vector.load %arg2[%c0_2, %c0_3] : memref<256x256xf32, #tpu.memory_space<vmem>>, vector<256x256xf32>
    %c0_4 = arith.constant 0 : index
    %c0_5 = arith.constant 0 : index
    %5 = vector.load %arg3[%c0_4, %c0_5] : memref<256x128xf32, #tpu.memory_space<vmem>>, vector<256x128xf32>
    %cst = arith.constant dense<0.000000e+00> : vector<256x128xf32>
    %6 = tpu.matmul %4, %5, %cst {dimension_numbers = #tpu.dot_dimension_numbers<[1], [0], [0], [1], [0, 0, 1, 1], [], []>} : vector<256x256xf32>, vector<256x128xf32>, vector<256x128xf32> -> vector<256x128xf32>
    %7 = arith.addf %3, %6 : vector<256x128xf32>
    %c0_6 = arith.constant 0 : index
    %c0_7 = arith.constant 0 : index
    %8 = vector.load %arg7[%c0_6, %c0_7] : memref<256x128xf32, #tpu.memory_space<vmem>>, vector<256x128xf32>
    tpu.vector_store %arg7[%c0_6, %c0_7], %7 {strides = array<i32>} : memref<256x128xf32, #tpu.memory_space<vmem>>, vector<256x128xf32>,
    %c1_i32 = arith.constant 1 : i32
    %9 = arith.cmpi eq, %arg1, %c1_i32 : i32
    %10 = arith.extui %9 : i1 to i32
    %c0_i32_8 = arith.constant 0 : i32
    %11 = arith.cmpi ne, %10, %c0_i32_8 : i32
    scf.if %11 {
      %c0_9 = arith.constant 0 : index
      %c0_10 = arith.constant 0 : index
      %12 = vector.load %arg7[%c0_9, %c0_10] : memref<256x128xf32, #tpu.memory_space<vmem>>, vector<256x128xf32>
      %c0_11 = arith.constant 0 : index
      %c0_12 = arith.constant 0 : index
      %13 = vector.load %arg4[%c0_11, %c0_12] : memref<128x128xf32, #tpu.memory_space<vmem>>, vector<128x128xf32>
      %cst_13 = arith.constant dense<0.000000e+00> : vector<256x128xf32>
      %14 = tpu.matmul %12, %13, %cst_13 {dimension_numbers = #tpu.dot_dimension_numbers<[1], [0], [0], [1], [0, 0, 1, 1], [], []>} : vector<256x128xf32>, vector<128x128xf32>, vector<256x128xf32> -> vector<256x128xf32>
      %c0_14 = arith.constant 0 : index
      %c0_15 = arith.constant 0 : index
      %15 = vector.load %arg5[%c0_14, %c0_15] : memref<1x128xf32, #tpu.memory_space<vmem>>, vector<1x128xf32>
      %16 = vector.broadcast %15 : vector<1x128xf32> to vector<256x128xf32>
      %17 = arith.addf %14, %16 : vector<256x128xf32>
      %cst_16 = arith.constant dense<0xFF800000> : vector<256xf32>
      %18 = vector.multi_reduction <maximumf>, %17, %cst_16 [1] : vector<256x128xf32> to vector<256xf32>
      %19 = vector.shape_cast %18 : vector<256xf32> to vector<256x1xf32>
      %20 = vector.broadcast %19 : vector<256x1xf32> to vector<256x128xf32>
      %21 = arith.subf %17, %20 : vector<256x128xf32>
      %22 = math.exp %21 : vector<256x128xf32>
      %cst_17 = arith.constant dense<0.000000e+00> : vector<256xf32>
      %23 = vector.multi_reduction <add>, %22, %cst_17 [1] : vector<256x128xf32> to vector<256xf32>
      %24 = vector.shape_cast %23 : vector<256xf32> to vector<256x1xf32>
      %25 = math.log %24 : vector<256x1xf32>
      %26 = arith.addf %25, %19 : vector<256x1xf32>
      %27 = vector.broadcast %26 : vector<256x1xf32> to vector<256x128xf32>
      %28 = arith.subf %17, %27 : vector<256x128xf32>
      %c0_18 = arith.constant 0 : index
      %c0_19 = arith.constant 0 : index
      %29 = vector.load %arg6[%c0_18, %c0_19] : memref<256x128xf32, #tpu.memory_space<vmem>>, vector<256x128xf32>
      tpu.vector_store %arg6[%c0_18, %c0_19], %28 {strides = array<i32>} : memref<256x128xf32, #tpu.memory_space<vmem>>, vector<256x128xf32>,
    } else {
    }
    return
  }
  func.func @transform_0(%arg0: i32, %arg1: i32) -> (i32, i32) {
    %c0_i32 = arith.constant 0 : i32
    return %arg0, %arg1 : i32, i32
  }
  func.func @transform_1(%arg0: i32, %arg1: i32) -> (i32, i32) {
    %c0_i32 = arith.constant 0 : i32
    %c0_i32_0 = arith.constant 0 : i32
    return %arg1, %c0_i32 : i32, i32
  }
  func.func @transform_2(%arg0: i32, %arg1: i32) -> (i32, i32) {
    %c0_i32 = arith.constant 0 : i32
    %c0_i32_0 = arith.constant 0 : i32
    %c0_i32_1 = arith.constant 0 : i32
    return %c0_i32, %c0_i32_0 : i32, i32
  }
  func.func @transform_3(%arg0: i32, %arg1: i32) -> (i32, i32) {
    %c0_i32 = arith.constant 0 : i32
    %c0_i32_0 = arith.constant 0 : i32
    %c0_i32_1 = arith.constant 0 : i32
    return %c0_i32, %c0_i32_0 : i32, i32
  }
  func.func @transform_4(%arg0: i32, %arg1: i32) -> (i32, i32) {
    %c0_i32 = arith.constant 0 : i32
    %c0_i32_0 = arith.constant 0 : i32
    return %arg0, %c0_i32 : i32, i32
  }
}

</mosaic_0001>

<bundles_post_ra>
// kernel: drw_net_forward.3
= control target key start
LH: loop header
LB: loop body
LE: loop exit
PB: predicated region body
PF: predicated region fallthrough
CT: control target
= control target key end

     0   :  { %s2110_s15 = smov 0   ;;  %s2112_s16 = smov 0   ;;  %s2907_s0 = inlined_call_operand.vmem [shape: f32[512,512], index: 0, kind: input, shape index: {}]   ;;  %s2908_s1 = inlined_call_operand.vmem [shape: f32[512,128], index: 1, kind: input, shape index: {}]   ;;  %s2909_s2 = inlined_call_operand.vmem [shape: f32[128,128], index: 2, kind: input, shape index: {}]   ;;  %s2910_s3 = inlined_call_operand.vmem [shape: f32[1,128], index: 3, kind: input, shape index: {}]   ;;  %s2911_s4 = inlined_call_operand.vmem [shape: f32[512,128], index: 4, kind: output, shape index: {}]  }
   0x1   :  { %s2114_s17 = smov 0   ;;  %s2116_s18 = smov 0  }
   0x2   :  { %s2118_s19 = smov 0   ;;  %s2120_s20 = smov 0  }
   0x3   :  { %s2122_s21 = smov 0  }
   0x4 LB: > { %s23_s22 = sadd.s32 1, %s2073_s19  ;;  %s26_s23 = sadd.s32 1, %s2077_s20  ;;  %s2081_s21 = sphi %s2122_s21, %s14_s21   ;;  %s2077_s20 = sphi %s2120_s20, %s2959_s20   ;;  %s2073_s19 = sphi %s2118_s19, %s2958_s19   ;;  %s2069_s18 = sphi %s2116_s18, %s2957_s18   ;;  %s2065_s17 = sphi %s2114_s17, %s2956_s17   ;;  %s2061_s16 = sphi %s2112_s16, %s2955_s16   ;;  %s2057_s15 = sphi %s2110_s15, %s2954_s15  }
   0x5   : > { %p24_p0 = scmp.ge.s32.totalorder %s23_s22, 2  ;;  %p42_p1 = scmp.ne.s32.totalorder %s2061_s16, %s2057_s15 }
   0x6   : > { %p43_p2 = scmp.eq.s32.totalorder %s2081_s21, 0  ;;  %s35_s27 = sadd.s32 1, %s2061_s16 }
   0x7   : > { %s2961_s22 = smov (%p24_p0, %s23_s22), 0  ;;  %s2963_s23 = smov (!%p24_p0, %s26_s23), %s2077_s20 }
   0x8   : > { %p44_p3 = por %p43_p2, %p42_p1  ;;  %p28_p4 = scmp.ge.s32.totalorder %s2963_s23, 2 }
   0x9   : > { %s31_s24 = ssub.s32 %s2073_s19, %s2961_s22  ;;  %p1599_p6 = scmp.ge.s32.totalorder %s2081_s21, 4 }
   0xa   : > { %s2965_s23 = smov (%p28_p4, %s2963_s23), 0 }
   0xb   : > { %s30_s25 = ssub.s32 %s2077_s20, %s2965_s23  ;;  %168 = sbr.rel (%p1599_p6) target bundleno = 55 (0x37), region = 24 }
   0xc   : > { %s32_s26 = sor.u32 %s31_s24, %s30_s25 }
   0xd   : > { %p33_p5 = scmp.eq.s32.totalorder %s32_s26, 0 }
   0xf   : > { %s2161_s28 = scalar_select %p33_p5, %s2061_s16, %s35_s27  }
  0x10   : > { %171 = sbr.rel (!%p44_p3) target bundleno = 55 (0x37), region = 28  ;;  %s173_s29 = sand.u32 (%p44_p3), 1, %s2061_s16  }
  0x11   : > { %s1602_s30 = sshll.u32 (%p44_p3), %s2073_s19, 1  ;;  %s1600_s5 = sshll.u32 (%p44_p3), %s173_s29, 9 }
  0x12   : > { %s1616_s6 = sshll.u32 (%p44_p3), %s2077_s20, 7  ;;  %s2175_s12 = scalar_lea.vmem (%p44_p3), [#allocation3], %s1600_s5 }
  0x13   : > { %s179_s7 = sadd.s32 (%p44_p3), %s1616_s6, %s1602_s30 }
  0x14   : > { %s1604_s8 = sshll.u32 (%p44_p3), %s179_s7, 3 }
  0x15   : > { %s2170_s11 = scalar_lea.vmem %s2907_s0, %s1604_s8 }
  0x16   : > { %v194_v0 = vld [vmem:[%s2170_s11] sm:$0xff]  ;;  %v196_v1 = vld [vmem:[%s2170_s11 + $0x8] sm:$0xff] }
  0x17   : > { %v198_v2 = vld [vmem:[%s2170_s11 + $0x20] sm:$0xff]  ;;  %195 = vst [vmem:[%s2175_s12] sm:$0xff] %v194_v0  ;;  %197 = vst [vmem:[%s2175_s12 + $0x8] sm:$0xff] %v196_v1  ;;  %v200_v3 = vld [vmem:[%s2170_s11 + $0x28] sm:$0xff] }
  0x18   : > { %199 = vst [vmem:[%s2175_s12 + $0x10] sm:$0xff] %v198_v2  ;;  %v202_v4 = vld [vmem:[%s2170_s11 + $0x40] sm:$0xff]  ;;  %v204_v5 = vld [vmem:[%s2170_s11 + $0x48] sm:$0xff]  ;;  %201 = vst [vmem:[%s2175_s12 + $0x18] sm:$0xff] %v200_v3 }
  0x19   : > { %203 = vst [vmem:[%s2175_s12 + $0x20] sm:$0xff] %v202_v4  ;;  %205 = vst [vmem:[%s2175_s12 + $0x28] sm:$0xff] %v204_v5  ;;  %v206_v6 = vld [vmem:[%s2170_s11 + $0x60] sm:$0xff]  ;;  %v208_v7 = vld [vmem:[%s2170_s11 + $0x68] sm:$0xff] }
  0x1a   : > { %v210_v8 = vld [vmem:[%s2170_s11 + $0x80] sm:$0xff]  ;;  %207 = vst [vmem:[%s2175_s12 + $0x30] sm:$0xff] %v206_v6  ;;  %209 = vst [vmem:[%s2175_s12 + $0x38] sm:$0xff] %v208_v7  ;;  %v212_v9 = vld [vmem:[%s2170_s11 + $0x88] sm:$0xff] }
  0x1b   : > { %211 = vst [vmem:[%s2175_s12 + $0x40] sm:$0xff] %v210_v8  ;;  %v214_v10 = vld [vmem:[%s2170_s11 + $0xa0] sm:$0xff]  ;;  %v216_v11 = vld [vmem:[%s2170_s11 + $0xa8] sm:$0xff]  ;;  %213 = vst [vmem:[%s2175_s12 + $0x48] sm:$0xff] %v212_v9 }
  0x1c   : > { %215 = vst [vmem:[%s2175_s12 + $0x50] sm:$0xff] %v214_v10  ;;  %217 = vst [vmem:[%s2175_s12 + $0x58] sm:$0xff] %v216_v11  ;;  %v218_v12 = vld [vmem:[%s2170_s11 + $0xc0] sm:$0xff]  ;;  %v220_v13 = vld [vmem:[%s2170_s11 + $0xc8] sm:$0xff] }
  0x1d   : > { %v222_v14 = vld [vmem:[%s2170_s11 + $0xe0] sm:$0xff]  ;;  %219 = vst [vmem:[%s2175_s12 + $0x60] sm:$0xff] %v218_v12  ;;  %221 = vst [vmem:[%s2175_s12 + $0x68] sm:$0xff] %v220_v13  ;;  %v224_v15 = vld [vmem:[%s2170_s11 + $0xe8] sm:$0xff] }
  0x1e   : > { %223 = vst [vmem:[%s2175_s12 + $0x70] sm:$0xff] %v222_v14  ;;  %v226_v16 = vld [vmem:[%s2170_s11 + $0x100] sm:$0xff]  ;;  %v228_v17 = vld [vmem:[%s2170_s11 + $0x108] sm:$0xff]  ;;  %225 = vst [vmem:[%s2175_s12 + $0x78] sm:$0xff] %v224_v15 }
  0x1f   : > { %227 = vst [vmem:[%s2175_s12 + $0x80] sm:$0xff] %v226_v16  ;;  %229 = vst [vmem:[%s2175_s12 + $0x88] sm:$0xff] %v228_v17  ;;  %v230_v18 = vld [vmem:[%s2170_s11 + $0x120] sm:$0xff]  ;;  %v232_v19 = vld [vmem:[%s2170_s11 + $0x128] sm:$0xff] }
  0x20   : > { %v234_v20 = vld [vmem:[%s2170_s11 + $0x140] sm:$0xff]  ;;  %231 = vst [vmem:[%s2175_s12 + $0x90] sm:$0xff] %v230_v18  ;;  %233 = vst [vmem:[%s2175_s12 + $0x98] sm:$0xff] %v232_v19  ;;  %v236_v21 = vld [vmem:[%s2170_s11 + $0x148] sm:$0xff] }
  0x21   : > { %235 = vst [vmem:[%s2175_s12 + $0xa0] sm:$0xff] %v234_v20  ;;  %v238_v22 = vld [vmem:[%s2170_s11 + $0x160] sm:$0xff]  ;;  %v240_v23 = vld [vmem:[%s2170_s11 + $0x168] sm:$0xff]  ;;  %237 = vst [vmem:[%s2175_s12 + $0xa8] sm:$0xff] %v236_v21 }
  0x22   : > { %239 = vst [vmem:[%s2175_s12 + $0xb0] sm:$0xff] %v238_v22  ;;  %241 = vst [vmem:[%s2175_s12 + $0xb8] sm:$0xff] %v240_v23  ;;  %v242_v24 = vld [vmem:[%s2170_s11 + $0x180] sm:$0xff]  ;;  %v244_v25 = vld [vmem:[%s2170_s11 + $0x188] sm:$0xff] }
  0x23   : > { %v246_v26 = vld [vmem:[%s2170_s11 + $0x1a0] sm:$0xff]  ;;  %243 = vst [vmem:[%s2175_s12 + $0xc0] sm:$0xff] %v242_v24  ;;  %245 = vst [vmem:[%s2175_s12 + $0xc8] sm:$0xff] %v244_v25  ;;  %v248_v27 = vld [vmem:[%s2170_s11 + $0x1a8] sm:$0xff] }
  0x24   : > { %247 = vst [vmem:[%s2175_s12 + $0xd0] sm:$0xff] %v246_v26  ;;  %v250_v28 = vld [vmem:[%s2170_s11 + $0x1c0] sm:$0xff]  ;;  %v252_v29 = vld [vmem:[%s2170_s11 + $0x1c8] sm:$0xff]  ;;  %249 = vst [vmem:[%s2175_s12 + $0xd8] sm:$0xff] %v248_v27 }
  0x25   : > { %251 = vst [vmem:[%s2175_s12 + $0xe0] sm:$0xff] %v250_v28  ;;  %253 = vst [vmem:[%s2175_s12 + $0xe8] sm:$0xff] %v252_v29  ;;  %v254_v30 = vld [vmem:[%s2170_s11 + $0x1e0] sm:$0xff]  ;;  %v256_v31 = vld [vmem:[%s2170_s11 + $0x1e8] sm:$0xff] }
  0x26   : > { %v258_v32 = vld [vmem:[%s2170_s11 + $0x200] sm:$0xff]  ;;  %255 = vst [vmem:[%s2175_s12 + $0xf0] sm:$0xff] %v254_v30  ;;  %257 = vst [vmem:[%s2175_s12 + $0xf8] sm:$0xff] %v256_v31  ;;  %v260_v33 = vld [vmem:[%s2170_s11 + $0x208] sm:$0xff] }
  0x27   : > { %259 = vst [vmem:[%s2175_s12 + $0x100] sm:$0xff] %v258_v32  ;;  %v262_v34 = vld [vmem:[%s2170_s11 + $0x220] sm:$0xff]  ;;  %v264_v35 = vld [vmem:[%s2170_s11 + $0x228] sm:$0xff]  ;;  %261 = vst [vmem:[%s2175_s12 + $0x108] sm:$0xff] %v260_v33 }
  0x28   : > { %263 = vst [vmem:[%s2175_s12 + $0x110] sm:$0xff] %v262_v34  ;;  %265 = vst [vmem:[%s2175_s12 + $0x118] sm:$0xff] %v264_v35  ;;  %v266_v36 = vld [vmem:[%s2170_s11 + $0x240] sm:$0xff]  ;;  %v268_v37 = vld [vmem:[%s2170_s11 + $0x248] sm:$0xff] }
  0x29   : > { %v270_v38 = vld [vmem:[%s2170_s11 + $0x260] sm:$0xff]  ;;  %267 = vst [vmem:[%s2175_s12 + $0x120] sm:$0xff] %v266_v36  ;;  %269 = vst [vmem:[%s2175_s12 + $0x128] sm:$0xff] %v268_v37  ;;  %v272_v39 = vld [vmem:[%s2170_s11 + $0x268] sm:$0xff] }
  0x2a   : > { %271 = vst [vmem:[%s2175_s12 + $0x130] sm:$0xff] %v270_v38  ;;  %v274_v40 = vld [vmem:[%s2170_s11 + $0x280] sm:$0xff]  ;;  %v276_v41 = vld [vmem:[%s2170_s11 + $0x288] sm:$0xff]  ;;  %273 = vst [vmem:[%s2175_s12 + $0x138] sm:$0xff] %v272_v39 }
  0x2b   : > { %275 = vst [vmem:[%s2175_s12 + $0x140] sm:$0xff] %v274_v40  ;;  %277 = vst [vmem:[%s2175_s12 + $0x148] sm:$0xff] %v276_v41  ;;  %v278_v42 = vld [vmem:[%s2170_s11 + $0x2a0] sm:$0xff]  ;;  %v280_v43 = vld [vmem:[%s2170_s11 + $0x2a8] sm:$0xff] }
  0x2c   : > { %v282_v44 = vld [vmem:[%s2170_s11 + $0x2c0] sm:$0xff]  ;;  %279 = vst [vmem:[%s2175_s12 + $0x150] sm:$0xff] %v278_v42  ;;  %281 = vst [vmem:[%s2175_s12 + $0x158] sm:$0xff] %v280_v43  ;;  %v284_v45 = vld [vmem:[%s2170_s11 + $0x2c8] sm:$0xff] }
  0x2d   : > { %283 = vst [vmem:[%s2175_s12 + $0x160] sm:$0xff] %v282_v44  ;;  %v286_v46 = vld [vmem:[%s2170_s11 + $0x2e0] sm:$0xff]  ;;  %v288_v47 = vld [vmem:[%s2170_s11 + $0x2e8] sm:$0xff]  ;;  %285 = vst [vmem:[%s2175_s12 + $0x168] sm:$0xff] %v284_v45 }
  0x2e   : > { %287 = vst [vmem:[%s2175_s12 + $0x170] sm:$0xff] %v286_v46  ;;  %289 = vst [vmem:[%s2175_s12 + $0x178] sm:$0xff] %v288_v47  ;;  %v290_v48 = vld [vmem:[%s2170_s11 + $0x300] sm:$0xff]  ;;  %v292_v49 = vld [vmem:[%s2170_s11 + $0x308] sm:$0xff] }
  0x2f   : > { %v294_v50 = vld [vmem:[%s2170_s11 + $0x320] sm:$0xff]  ;;  %291 = vst [vmem:[%s2175_s12 + $0x180] sm:$0xff] %v290_v48  ;;  %293 = vst [vmem:[%s2175_s12 + $0x188] sm:$0xff] %v292_v49  ;;  %v296_v51 = vld [vmem:[%s2170_s11 + $0x328] sm:$0xff] }
  0x30   : > { %295 = vst [vmem:[%s2175_s12 + $0x190] sm:$0xff] %v294_v50  ;;  %v298_v52 = vld [vmem:[%s2170_s11 + $0x340] sm:$0xff]  ;;  %v300_v53 = vld [vmem:[%s2170_s11 + $0x348] sm:$0xff]  ;;  %297 = vst [vmem:[%s2175_s12 + $0x198] sm:$0xff] %v296_v51 }
  0x31   : > { %299 = vst [vmem:[%s2175_s12 + $0x1a0] sm:$0xff] %v298_v52  ;;  %301 = vst [vmem:[%s2175_s12 + $0x1a8] sm:$0xff] %v300_v53  ;;  %v302_v54 = vld [vmem:[%s2170_s11 + $0x360] sm:$0xff]  ;;  %v304_v55 = vld [vmem:[%s2170_s11 + $0x368] sm:$0xff] }
  0x32   : > { %v306_v56 = vld [vmem:[%s2170_s11 + $0x380] sm:$0xff]  ;;  %303 = vst [vmem:[%s2175_s12 + $0x1b0] sm:$0xff] %v302_v54  ;;  %305 = vst [vmem:[%s2175_s12 + $0x1b8] sm:$0xff] %v304_v55  ;;  %v308_v57 = vld [vmem:[%s2170_s11 + $0x388] sm:$0xff] }
  0x33   : > { %307 = vst [vmem:[%s2175_s12 + $0x1c0] sm:$0xff] %v306_v56  ;;  %v310_v58 = vld [vmem:[%s2170_s11 + $0x3a0] sm:$0xff]  ;;  %v312_v59 = vld [vmem:[%s2170_s11 + $0x3a8] sm:$0xff]  ;;  %309 = vst [vmem:[%s2175_s12 + $0x1c8] sm:$0xff] %v308_v57 }
  0x34   : > { %311 = vst [vmem:[%s2175_s12 + $0x1d0] sm:$0xff] %v310_v58  ;;  %313 = vst [vmem:[%s2175_s12 + $0x1d8] sm:$0xff] %v312_v59  ;;  %v314_v60 = vld [vmem:[%s2170_s11 + $0x3c0] sm:$0xff]  ;;  %v316_v61 = vld [vmem:[%s2170_s11 + $0x3c8] sm:$0xff] }
  0x35   : > { %v318_v62 = vld [vmem:[%s2170_s11 + $0x3e0] sm:$0xff]  ;;  %315 = vst [vmem:[%s2175_s12 + $0x1e0] sm:$0xff] %v314_v60  ;;  %317 = vst [vmem:[%s2175_s12 + $0x1e8] sm:$0xff] %v316_v61  ;;  %v320_v63 = vld [vmem:[%s2170_s11 + $0x3e8] sm:$0xff] }
  0x36   : > { %319 = vst [vmem:[%s2175_s12 + $0x1f0] sm:$0xff] %v318_v62  ;;  %321 = vst [vmem:[%s2175_s12 + $0x1f8] sm:$0xff] %v320_v63 }
  0x37 PF: > { %p1605_p7 = scmp.ge.s32.totalorder %s2081_s21, 1  ;;  %p335_p8 = scmp.lt.s32.totalorder %s2081_s21, 5 }
  0x39   : > { %p336_p9 = pnand %p1605_p7, %p335_p8 }
  0x3a   : > { %s342_s13 = sand.u32 (!%p336_p9), 1, %s2057_s15   ;;  %s1607_s14 = sshll.u32 (!%p336_p9), %s2065_s17, 5 }
  0x3b   : > { %339 = sbr.rel (%p336_p9) target bundleno = 1020 (0x3fc), region = 55  ;;  %s1606_s24 = sshll.u32 (!%p336_p9), %s342_s13, 9 }
  0x3c   : > { %p375_p10 = scmp.lt.s32.totalorder (!%p336_p9), %s1607_s14, 63  ;;  %s1609_s25 = sshll.u32 (!%p336_p9), %s2069_s18, 5 }
  0x3d   : > { %p381_p11 = scmp.lt.s32.totalorder (!%p336_p9), %s1609_s25, 63  ;;  %s2317_s15 = scalar_lea.vmem (!%p336_p9), [#allocation3], %s1606_s24 }
  0x3e   : > { %p1611_p12 = scmp.ne.s32.totalorder (!%p336_p9), %s2065_s17, 0 }
  0x40   : > { %s2967_s14 = smov (!%p375_p10, %s1607_s14), 63  ;;  %s2969_s25 = smov (!%p381_p11, %s1609_s25), 63 }
  0x41   : > { %s1608_s26 = sshll.u32 %s2967_s14, 3  ;;  %s1610_s5 = sshll.u32 %s2969_s25, 3 }
  0x42   : > { %s2310_s30 = scalar_lea.vmem %s2908_s1, %s1608_s26  ;;  %s2315_s8 = scalar_lea.vmem %s2911_s4, %s1610_s5 }
  0x43   : > { %389 = sbr.rel (%p1611_p12) target bundleno = 89 (0x59), region = 63 }
  0x48   : > { %v2083_v0 = vmov 0.0  }
  0x49   : > { %390 = vst [vmem:[#allocation2 + $0xb0] sm:$0xff] %v2083_v0  ;;  %391 = vst [vmem:[#allocation2] sm:$0xff] %v2083_v0 }
  0x4a   : > { %392 = vst [vmem:[#allocation2 + $0xd8] sm:$0xff] %v2083_v0  ;;  %393 = vst [vmem:[#allocation2 + $0x18] sm:$0xff] %v2083_v0 }
  0x4b   : > { %394 = vst [vmem:[#allocation2 + $0x50] sm:$0xff] %v2083_v0  ;;  %395 = vst [vmem:[#allocation2 + $0x68] sm:$0xff] %v2083_v0 }
  0x4c   : > { %396 = vst [vmem:[#allocation2 + $0x30] sm:$0xff] %v2083_v0  ;;  %397 = vst [vmem:[#allocation2 + $0x48] sm:$0xff] %v2083_v0 }
  0x4d   : > { %398 = vst [vmem:[#allocation2 + $0x80] sm:$0xff] %v2083_v0  ;;  %399 = vst [vmem:[#allocation2 + $0x88] sm:$0xff] %v2083_v0 }
  0x4e   : > { %400 = vst [vmem:[#allocation2 + $0xe8] sm:$0xff] %v2083_v0  ;;  %401 = vst [vmem:[#allocation2 + $0xb8] sm:$0xff] %v2083_v0 }
  0x4f   : > { %402 = vst [vmem:[#allocation2 + $0x60] sm:$0xff] %v2083_v0  ;;  %403 = vst [vmem:[#allocation2 + $0xf0] sm:$0xff] %v2083_v0 }
  0x50   : > { %404 = vst [vmem:[#allocation2 + $0x8] sm:$0xff] %v2083_v0  ;;  %405 = vst [vmem:[#allocation2 + $0x78] sm:$0xff] %v2083_v0 }
  0x51   : > { %406 = vst [vmem:[#allocation2 + $0x38] sm:$0xff] %v2083_v0  ;;  %407 = vst [vmem:[#allocation2 + $0x58] sm:$0xff] %v2083_v0 }
  0x52   : > { %408 = vst [vmem:[#allocation2 + $0x40] sm:$0xff] %v2083_v0  ;;  %409 = vst [vmem:[#allocation2 + $0xc8] sm:$0xff] %v2083_v0 }
  0x53   : > { %410 = vst [vmem:[#allocation2 + $0xe0] sm:$0xff] %v2083_v0  ;;  %411 = vst [vmem:[#allocation2 + $0x90] sm:$0xff] %v2083_v0 }
  0x54   : > { %412 = vst [vmem:[#allocation2 + $0x70] sm:$0xff] %v2083_v0  ;;  %413 = vst [vmem:[#allocation2 + $0xc0] sm:$0xff] %v2083_v0 }
  0x55   : > { %414 = vst [vmem:[#allocation2 + $0xa8] sm:$0xff] %v2083_v0  ;;  %415 = vst [vmem:[#allocation2 + $0xd0] sm:$0xff] %v2083_v0 }
  0x56   : > { %416 = vst [vmem:[#allocation2 + $0x10] sm:$0xff] %v2083_v0  ;;  %417 = vst [vmem:[#allocation2 + $0x28] sm:$0xff] %v2083_v0 }
  0x57   : > { %418 = vst [vmem:[#allocation2 + $0xa0] sm:$0xff] %v2083_v0  ;;  %419 = vst [vmem:[#allocation2 + $0xf8] sm:$0xff] %v2083_v0 }
  0x58   : > { %420 = vst [vmem:[#allocation2 + $0x20] sm:$0xff] %v2083_v0  ;;  %421 = vst [vmem:[#allocation2 + $0x98] sm:$0xff] %v2083_v0 }
  0x59 PF: > { %v533_v1 = vld [vmem:[%s2310_s30 + $0x78] sm:$0xff]  ;;  %v2084_v2 = vmov 0.0   ;;  %v532_v3 = vld [vmem:[%s2310_s30 + $0x70] sm:$0xff]  ;;  %v531_v4 = vld [vmem:[%s2310_s30 + $0x68] sm:$0xff]  ;;  %p1612_p13 = scmp.ne.s32.totalorder %s2065_s17, 1 }
  0x5a   : > { %550 = vmatprep.subr.mxu0 %v2084_v2  ;;  %1745 = vmatprep.subr.mxu1 %v2084_v2  ;;  %v530_v5 = vld [vmem:[%s2310_s30 + $0x60] sm:$0xff]  ;;  %v529_v6 = vld [vmem:[%s2310_s30 + $0x58] sm:$0xff]  ;;  %v528_v7 = vld [vmem:[%s2310_s30 + $0x50] sm:$0xff] }
  0x5b   : > { %551 = vmatpush1.msra.mxu0 %v533_v1  ;;  %1777 = vmatpush1.msra.mxu1 %v533_v1  ;;  %v527_v8 = vld [vmem:[%s2310_s30 + $0x48] sm:$0xff]  ;;  %v526_v9 = vld [vmem:[%s2310_s30 + $0x40] sm:$0xff]  ;;  %v525_v10 = vld [vmem:[%s2310_s30 + $0x38] sm:$0xff] }
  0x5c   : > { %552 = vmatprep.subr.mxu0 %v2084_v2  ;;  %1746 = vmatprep.subr.mxu1 %v2084_v2  ;;  %v524_v11 = vld [vmem:[%s2310_s30 + $0x30] sm:$0xff]  ;;  %v523_v12 = vld [vmem:[%s2310_s30 + $0x28] sm:$0xff]  ;;  %v522_v13 = vld [vmem:[%s2310_s30 + $0x20] sm:$0xff] }
  0x5d   : > { %553 = vmatpush1.msra.mxu0 %v532_v3  ;;  %1778 = vmatpush1.msra.mxu1 %v532_v3  ;;  %v521_v14 = vld [vmem:[%s2310_s30 + $0x18] sm:$0xff]  ;;  %v520_v15 = vld [vmem:[%s2310_s30 + $0x10] sm:$0xff]  ;;  %v519_v16 = vld [vmem:[%s2310_s30 + $0x8] sm:$0xff] }
  0x5e   : > { %554 = vmatprep.subr.mxu0 %v2084_v2  ;;  %1747 = vmatprep.subr.mxu1 %v2084_v2  ;;  %v518_v17 = vld [vmem:[%s2310_s30] sm:$0xff]  ;;  %v549_v18 = vld [vmem:[%s2310_s30 + $0xf8] sm:$0xff]  ;;  %v548_v19 = vld [vmem:[%s2310_s30 + $0xf0] sm:$0xff] }
  0x5f   : > { %555 = vmatpush1.msra.mxu0 %v531_v4  ;;  %1779 = vmatpush1.msra.mxu1 %v531_v4  ;;  %v547_v20 = vld [vmem:[%s2310_s30 + $0xe8] sm:$0xff]  ;;  %v546_v21 = vld [vmem:[%s2310_s30 + $0xe0] sm:$0xff]  ;;  %v545_v22 = vld [vmem:[%s2310_s30 + $0xd8] sm:$0xff] }
  0x60   : > { %556 = vmatprep.subr.mxu0 %v2084_v2  ;;  %1748 = vmatprep.subr.mxu1 %v2084_v2  ;;  %v544_v23 = vld [vmem:[%s2310_s30 + $0xd0] sm:$0xff]  ;;  %v543_v24 = vld [vmem:[%s2310_s30 + $0xc8] sm:$0xff]  ;;  %v542_v25 = vld [vmem:[%s2310_s30 + $0xc0] sm:$0xff] }
  0x61   : > { %557 = vmatpush1.msra.mxu0 %v530_v5  ;;  %1780 = vmatpush1.msra.mxu1 %v530_v5  ;;  %v541_v26 = vld [vmem:[%s2310_s30 + $0xb8] sm:$0xff]  ;;  %v540_v27 = vld [vmem:[%s2310_s30 + $0xb0] sm:$0xff]  ;;  %v539_v28 = vld [vmem:[%s2310_s30 + $0xa8] sm:$0xff] }
  0x62   : > { %558 = vmatprep.subr.mxu0 %v2084_v2  ;;  %1749 = vmatprep.subr.mxu1 %v2084_v2  ;;  %v538_v29 = vld [vmem:[%s2310_s30 + $0xa0] sm:$0xff]  ;;  %v537_v30 = vld [vmem:[%s2310_s30 + $0x98] sm:$0xff]  ;;  %v536_v31 = vld [vmem:[%s2310_s30 + $0x90] sm:$0xff] }
  0x63   : > { %559 = vmatpush1.msra.mxu0 %v529_v6  ;;  %1781 = vmatpush1.msra.mxu1 %v529_v6  ;;  %v535_v32 = vld [vmem:[%s2310_s30 + $0x88] sm:$0xff]  ;;  %v534_v33 = vld [vmem:[%s2310_s30 + $0x80] sm:$0xff]  ;;  %v457_v38 = vld [vmem:[%s2317_s15 + $0x18] sm:$0xff] }
  0x64   : > { %560 = vmatprep.subr.mxu0 %v2084_v2  ;;  %1750 = vmatprep.subr.mxu1 %v2084_v2  ;;  %v455_v34 = vld [vmem:[%s2317_s15 + $0x8] sm:$0xff]  ;;  %v454_v36 = vld [vmem:[%s2317_s15] sm:$0xff]  ;;  %v489_v39 = vld [vmem:[%s2317_s15 + $0x118] sm:$0xff] }
  0x65   : > { %561 = vmatpush1.msra.mxu0 %v528_v7  ;;  %1782 = vmatpush1.msra.mxu1 %v528_v7  ;;  %v487_v35 = vld [vmem:[%s2317_s15 + $0x108] sm:$0xff]  ;;  %v486_v37 = vld [vmem:[%s2317_s15 + $0x100] sm:$0xff]  ;;  %v456_v40 = vld [vmem:[%s2317_s15 + $0x10] sm:$0xff] }
  0x66   : > { %562 = vmatprep.subr.mxu0 %v2084_v2  ;;  %1751 = vmatprep.subr.mxu1 %v2084_v2  ;;  %v488_v41 = vld [vmem:[%s2317_s15 + $0x110] sm:$0xff]  ;;  %v459_v42 = vld [vmem:[%s2317_s15 + $0x28] sm:$0xff]  ;;  %v458_v44 = vld [vmem:[%s2317_s15 + $0x20] sm:$0xff] }
  0x67   : > { %563 = vmatpush1.msra.mxu0 %v527_v8  ;;  %1783 = vmatpush1.msra.mxu1 %v527_v8  ;;  %v491_v43 = vld [vmem:[%s2317_s15 + $0x128] sm:$0xff]  ;;  %v490_v45 = vld [vmem:[%s2317_s15 + $0x120] sm:$0xff]  ;;  %v461_v46 = vld [vmem:[%s2317_s15 + $0x38] sm:$0xff] }
  0x68   : > { %564 = vmatprep.subr.mxu0 %v2084_v2  ;;  %1752 = vmatprep.subr.mxu1 %v2084_v2  ;;  %v493_v47 = vld [vmem:[%s2317_s15 + $0x138] sm:$0xff]  ;;  %v460_v48 = vld [vmem:[%s2317_s15 + $0x30] sm:$0xff]  ;;  %v463_v50 = vld [vmem:[%s2317_s15 + $0x48] sm:$0xff] }
  0x69   : > { %565 = vmatpush1.msra.mxu0 %v526_v9  ;;  %1784 = vmatpush1.msra.mxu1 %v526_v9  ;;  %v492_v49 = vld [vmem:[%s2317_s15 + $0x130] sm:$0xff]  ;;  %v495_v51 = vld [vmem:[%s2317_s15 + $0x148] sm:$0xff]  ;;  %v462_v52 = vld [vmem:[%s2317_s15 + $0x40] sm:$0xff] }
  0x6a   : > { %566 = vmatprep.subr.mxu0 %v2084_v2  ;;  %1753 = vmatprep.subr.mxu1 %v2084_v2  ;;  %v494_v53 = vld [vmem:[%s2317_s15 + $0x140] sm:$0xff]  ;;  %v465_v54 = vld [vmem:[%s2317_s15 + $0x58] sm:$0xff]  ;;  %v464_v56 = vld [vmem:[%s2317_s15 + $0x50] sm:$0xff] }
  0x6b   : > { %567 = vmatpush1.msra.mxu0 %v525_v10  ;;  %1785 = vmatpush1.msra.mxu1 %v525_v10  ;;  %v497_v55 = vld [vmem:[%s2317_s15 + $0x158] sm:$0xff]  ;;  %v496_v57 = vld [vmem:[%s2317_s15 + $0x150] sm:$0xff]  ;;  %v467_v58 = vld [vmem:[%s2317_s15 + $0x68] sm:$0xff] }
  0x6c   : > { %568 = vmatprep.subr.mxu0 %v2084_v2  ;;  %1754 = vmatprep.subr.mxu1 %v2084_v2  ;;  %v499_v59 = vld [vmem:[%s2317_s15 + $0x168] sm:$0xff]  ;;  %v466_v60 = vld [vmem:[%s2317_s15 + $0x60] sm:$0xff]  ;;  %v469_v62 = vld [vmem:[%s2317_s15 + $0x78] sm:$0xff] }
  0x6d   : > { %569 = vmatpush1.msra.mxu0 %v524_v11  ;;  %1786 = vmatpush1.msra.mxu1 %v524_v11  ;;  %v498_v61 = vld [vmem:[%s2317_s15 + $0x160] sm:$0xff]  ;;  %v501_v63 = vld [vmem:[%s2317_s15 + $0x178] sm:$0xff]  ;;  %v468_v0 = vld [vmem:[%s2317_s15 + $0x70] sm:$0xff] }
  0x6e   : > { %570 = vmatprep.subr.mxu0 %v2084_v2  ;;  %1755 = vmatprep.subr.mxu1 %v2084_v2  ;;  %v500_v1 = vld [vmem:[%s2317_s15 + $0x170] sm:$0xff]  ;;  %v503_v3 = vld [vmem:[%s2317_s15 + $0x188] sm:$0xff]  ;;  %v470_v4 = vld [vmem:[%s2317_s15 + $0x80] sm:$0xff] }
  0x6f   : > { %571 = vmatpush1.msra.mxu0 %v523_v12  ;;  %1787 = vmatpush1.msra.mxu1 %v523_v12  ;;  %v502_v5 = vld [vmem:[%s2317_s15 + $0x180] sm:$0xff]  ;;  %v473_v6 = vld [vmem:[%s2317_s15 + $0x98] sm:$0xff]  ;;  %v472_v8 = vld [vmem:[%s2317_s15 + $0x90] sm:$0xff] }
  0x70   : > { %572 = vmatprep.subr.mxu0 %v2084_v2  ;;  %1756 = vmatprep.subr.mxu1 %v2084_v2  ;;  %v505_v7 = vld [vmem:[%s2317_s15 + $0x198] sm:$0xff]  ;;  %v504_v9 = vld [vmem:[%s2317_s15 + $0x190] sm:$0xff]  ;;  %v475_v10 = vld [vmem:[%s2317_s15 + $0xa8] sm:$0xff] }
  0x71   : > { %573 = vmatpush1.msra.mxu0 %v522_v13  ;;  %1788 = vmatpush1.msra.mxu1 %v522_v13  ;;  %v507_v11 = vld [vmem:[%s2317_s15 + $0x1a8] sm:$0xff]  ;;  %v474_v12 = vld [vmem:[%s2317_s15 + $0xa0] sm:$0xff] }
  0x72   : > { %574 = vmatprep.subr.mxu0 %v2084_v2  ;;  %1757 = vmatprep.subr.mxu1 %v2084_v2  ;;  %v506_v13 = vld [vmem:[%s2317_s15 + $0x1a0] sm:$0xff] }
  0x73   : > { %575 = vmatpush1.msra.mxu0 %v521_v14  ;;  %1789 = vmatpush1.msra.mxu1 %v521_v14  ;;  %v477_v14 = vld [vmem:[%s2317_s15 + $0xb8] sm:$0xff] }
  0x74   : > { %576 = vmatprep.subr.mxu0 %v2084_v2  ;;  %1758 = vmatprep.subr.mxu1 %v2084_v2 }
  0x75   : > { %577 = vmatpush1.msra.mxu0 %v520_v15  ;;  %1790 = vmatpush1.msra.mxu1 %v520_v15  ;;  %v509_v15 = vld [vmem:[%s2317_s15 + $0x1b8] sm:$0xff] }
  0x76   : > { %578 = vmatprep.subr.mxu0 %v2084_v2  ;;  %1759 = vmatprep.subr.mxu1 %v2084_v2 }
  0x77   : > { %579 = vmatpush1.msra.mxu0 %v519_v16  ;;  %1791 = vmatpush1.msra.mxu1 %v519_v16  ;;  %v476_v16 = vld [vmem:[%s2317_s15 + $0xb0] sm:$0xff] }
  0x78   : > { %580 = vmatprep.subr.mxu0 %v2084_v2  ;;  %1760 = vmatprep.subr.mxu1 %v2084_v2 }
  0x79   : > { %581 = vmatpush1.msra.mxu0 %v518_v17  ;;  %1792 = vmatpush1.msra.mxu1 %v518_v17  ;;  %v508_v17 = vld [vmem:[%s2317_s15 + $0x1b0] sm:$0xff] }
  0x7a   : > { %582 = vmatprep.subr.mxu0 %v2084_v2  ;;  %1761 = vmatprep.subr.mxu1 %v2084_v2 }
  0x7b   : > { %583 = vmatpush2.msra.mxu0 %v549_v18  ;;  %1793 = vmatpush2.msra.mxu1 %v549_v18  ;;  %v479_v18 = vld [vmem:[%s2317_s15 + $0xc8] sm:$0xff] }
  0x7c   : > { %584 = vmatprep.subr.mxu0 %v2084_v2  ;;  %1762 = vmatprep.subr.mxu1 %v2084_v2 }
  0x7d   : > { %585 = vmatpush2.msra.mxu0 %v548_v19  ;;  %1794 = vmatpush2.msra.mxu1 %v548_v19  ;;  %v511_v19 = vld [vmem:[%s2317_s15 + $0x1c8] sm:$0xff] }
  0x7e   : > { %586 = vmatprep.subr.mxu0 %v2084_v2  ;;  %1763 = vmatprep.subr.mxu1 %v2084_v2 }
  0x7f   : > { %587 = vmatpush2.msra.mxu0 %v547_v20  ;;  %1795 = vmatpush2.msra.mxu1 %v547_v20  ;;  %v478_v20 = vld [vmem:[%s2317_s15 + $0xc0] sm:$0xff] }
  0x80   : > { %588 = vmatprep.subr.mxu0 %v2084_v2  ;;  %1764 = vmatprep.subr.mxu1 %v2084_v2 }
  0x81   : > { %589 = vmatpush2.msra.mxu0 %v546_v21  ;;  %1796 = vmatpush2.msra.mxu1 %v546_v21  ;;  %v510_v21 = vld [vmem:[%s2317_s15 + $0x1c0] sm:$0xff] }
  0x82   : > { %590 = vmatprep.subr.mxu0 %v2084_v2  ;;  %1765 = vmatprep.subr.mxu1 %v2084_v2 }
  0x83   : > { %591 = vmatpush2.msra.mxu0 %v545_v22  ;;  %1797 = vmatpush2.msra.mxu1 %v545_v22  ;;  %v481_v22 = vld [vmem:[%s2317_s15 + $0xd8] sm:$0xff] }
  0x84   : > { %592 = vmatprep.subr.mxu0 %v2084_v2  ;;  %1766 = vmatprep.subr.mxu1 %v2084_v2 }
  0x85   : > { %593 = vmatpush2.msra.mxu0 %v544_v23  ;;  %1798 = vmatpush2.msra.mxu1 %v544_v23  ;;  %v513_v23 = vld [vmem:[%s2317_s15 + $0x1d8] sm:$0xff] }
  0x86   : > { %594 = vmatprep.subr.mxu0 %v2084_v2  ;;  %1767 = vmatprep.subr.mxu1 %v2084_v2 }
  0x87   : > { %595 = vmatpush2.msra.mxu0 %v543_v24  ;;  %1799 = vmatpush2.msra.mxu1 %v543_v24  ;;  %v480_v24 = vld [vmem:[%s2317_s15 + $0xd0] sm:$0xff] }
  0x88   : > { %596 = vmatprep.subr.mxu0 %v2084_v2  ;;  %1768 = vmatprep.subr.mxu1 %v2084_v2 }
  0x89   : > { %597 = vmatpush2.msra.mxu0 %v542_v25  ;;  %1800 = vmatpush2.msra.mxu1 %v542_v25  ;;  %v512_v25 = vld [vmem:[%s2317_s15 + $0x1d0] sm:$0xff] }
  0x8a   : > { %598 = vmatprep.subr.mxu0 %v2084_v2  ;;  %1769 = vmatprep.subr.mxu1 %v2084_v2 }
  0x8b   : > { %599 = vmatpush2.msra.mxu0 %v541_v26  ;;  %1801 = vmatpush2.msra.mxu1 %v541_v26  ;;  %v483_v26 = vld [vmem:[%s2317_s15 + $0xe8] sm:$0xff] }
  0x8c   : > { %600 = vmatprep.subr.mxu0 %v2084_v2  ;;  %1770 = vmatprep.subr.mxu1 %v2084_v2 }
  0x8d   : > { %601 = vmatpush2.msra.mxu0 %v540_v27  ;;  %1802 = vmatpush2.msra.mxu1 %v540_v27  ;;  %v515_v27 = vld [vmem:[%s2317_s15 + $0x1e8] sm:$0xff] }
  0x8e   : > { %602 = vmatprep.subr.mxu0 %v2084_v2  ;;  %1771 = vmatprep.subr.mxu1 %v2084_v2 }
  0x8f   : > { %603 = vmatpush2.msra.mxu0 %v539_v28  ;;  %1803 = vmatpush2.msra.mxu1 %v539_v28  ;;  %v482_v28 = vld [vmem:[%s2317_s15 + $0xe0] sm:$0xff] }
  0x90   : > { %604 = vmatprep.subr.mxu0 %v2084_v2  ;;  %1772 = vmatprep.subr.mxu1 %v2084_v2 }
  0x91   : > { %605 = vmatpush2.msra.mxu0 %v538_v29  ;;  %1804 = vmatpush2.msra.mxu1 %v538_v29  ;;  %v514_v29 = vld [vmem:[%s2317_s15 + $0x1e0] sm:$0xff] }
  0x92   : > { %606 = vmatprep.subr.mxu0 %v2084_v2  ;;  %1773 = vmatprep.subr.mxu1 %v2084_v2 }
  0x93   : > { %607 = vmatpush2.msra.mxu0 %v537_v30  ;;  %1805 = vmatpush2.msra.mxu1 %v537_v30  ;;  %v485_v30 = vld [vmem:[%s2317_s15 + $0xf8] sm:$0xff] }
  0x94   : > { %608 = vmatprep.subr.mxu0 %v2084_v2  ;;  %1774 = vmatprep.subr.mxu1 %v2084_v2 }
  0x95   : > { %609 = vmatpush2.msra.mxu0 %v536_v31  ;;  %1806 = vmatpush2.msra.mxu1 %v536_v31  ;;  %v517_v31 = vld [vmem:[%s2317_s15 + $0x1f8] sm:$0xff] }
  0x96   : > { %610 = vmatprep.subr.mxu0 %v2084_v2  ;;  %1775 = vmatprep.subr.mxu1 %v2084_v2 }
  0x97   : > { %611 = vmatpush2.msra.mxu0 %v535_v32  ;;  %1807 = vmatpush2.msra.mxu1 %v535_v32  ;;  %v484_v32 = vld [vmem:[%s2317_s15 + $0xf0] sm:$0xff] }
  0x98   : > { %612 = vmatprep.subr.mxu0 %v2084_v2  ;;  %1776 = vmatprep.subr.mxu1 %v2084_v2  ;;  %v471_v2 = vld [vmem:[%s2317_s15 + $0x88] sm:$0xff] }
  0x99   : > { %613 = vmatpush2.msra.mxu0 %v534_v33  ;;  %1808 = vmatpush2.msra.mxu1 %v534_v33  ;;  %v516_v33 = vld [vmem:[%s2317_s15 + $0x1f0] sm:$0xff] }
  0x9a   : > { %614 = vmatprep.mubr.f32.mxu0 %v455_v34  ;;  %694 = vmatprep.mubr.f32.mxu1 %v487_v35  ;;  %v422_v34 = vld [vmem:[#allocation2 + $0xb0] sm:$0xff]  ;;  %v438_v35 = vld [vmem:[#allocation2 + $0x38] sm:$0xff] }
  0x9b   : > { %615 = vmatmul.mubr.f32.vlgmr.msra.gmra.mxu0 %v454_v36  ;;  %695 = vmatmul.mubr.f32.vlgmr.msra.gmra.mxu1 %v486_v37 }
  0x9c   : > { %619 = vmatprep.mubr.f32.mxu0 %v457_v38  ;;  %699 = vmatprep.mubr.f32.mxu1 %v489_v39 }
  0x9f   : > { %620 = vmatmul.mubr.f32.gmra.mxu0 %v456_v40  ;;  %700 = vmatmul.mubr.f32.gmra.mxu1 %v488_v41 }
  0xa0   : > { %624 = vmatprep.mubr.f32.mxu0 %v459_v42  ;;  %704 = vmatprep.mubr.f32.mxu1 %v491_v43  ;;  %v423_v42 = vld [vmem:[#allocation2] sm:$0xff]  ;;  %v439_v43 = vld [vmem:[#allocation2 + $0x58] sm:$0xff] }
  0xa3   : > { %625 = vmatmul.mubr.f32.gmra.mxu0 %v458_v44  ;;  %705 = vmatmul.mubr.f32.gmra.mxu1 %v490_v45 }
  0xa4   : > { %629 = vmatprep.mubr.f32.mxu0 %v461_v46  ;;  %709 = vmatprep.mubr.f32.mxu1 %v493_v47 }
  0xa7   : > { %630 = vmatmul.mubr.f32.gmra.mxu0 %v460_v48  ;;  %710 = vmatmul.mubr.f32.gmra.mxu1 %v492_v49 }
  0xa8   : > { %634 = vmatprep.mubr.f32.mxu0 %v463_v50  ;;  %714 = vmatprep.mubr.f32.mxu1 %v495_v51  ;;  %v424_v50 = vld [vmem:[#allocation2 + $0xd8] sm:$0xff]  ;;  %v440_v51 = vld [vmem:[#allocation2 + $0x40] sm:$0xff] }
  0xab   : > { %635 = vmatmul.mubr.f32.gmra.mxu0 %v462_v52  ;;  %715 = vmatmul.mubr.f32.gmra.mxu1 %v494_v53 }
  0xac   : > { %639 = vmatprep.mubr.f32.mxu0 %v465_v54  ;;  %719 = vmatprep.mubr.f32.mxu1 %v497_v55 }
  0xaf   : > { %640 = vmatmul.mubr.f32.gmra.mxu0 %v464_v56  ;;  %720 = vmatmul.mubr.f32.gmra.mxu1 %v496_v57 }
  0xb0   : > { %644 = vmatprep.mubr.f32.mxu0 %v467_v58  ;;  %724 = vmatprep.mubr.f32.mxu1 %v499_v59  ;;  %v425_v58 = vld [vmem:[#allocation2 + $0x18] sm:$0xff]  ;;  %v441_v59 = vld [vmem:[#allocation2 + $0xc8] sm:$0xff] }
  0xb3   : > { %645 = vmatmul.mubr.f32.gmra.mxu0 %v466_v60  ;;  %725 = vmatmul.mubr.f32.gmra.mxu1 %v498_v61 }
  0xb4   : > { %649 = vmatprep.mubr.f32.mxu0 %v469_v62  ;;  %729 = vmatprep.mubr.f32.mxu1 %v501_v63 }
  0xb7   : > { %650 = vmatmul.mubr.f32.gmra.mxu0 %v468_v0  ;;  %730 = vmatmul.mubr.f32.gmra.mxu1 %v500_v1 }
  0xb8   : > { %654 = vmatprep.mubr.f32.mxu0 %v471_v2  ;;  %734 = vmatprep.mubr.f32.mxu1 %v503_v3  ;;  %v426_v2 = vld [vmem:[#allocation2 + $0x50] sm:$0xff]  ;;  %v442_v3 = vld [vmem:[#allocation2 + $0xe0] sm:$0xff] }
  0xbb   : > { %655 = vmatmul.mubr.f32.gmra.mxu0 %v470_v4  ;;  %735 = vmatmul.mubr.f32.gmra.mxu1 %v502_v5 }
  0xbc   : > { %659 = vmatprep.mubr.f32.mxu0 %v473_v6  ;;  %739 = vmatprep.mubr.f32.mxu1 %v505_v7 }
  0xbf   : > { %660 = vmatmul.mubr.f32.gmra.mxu0 %v472_v8  ;;  %740 = vmatmul.mubr.f32.gmra.mxu1 %v504_v9 }
  0xc0   : > { %664 = vmatprep.mubr.f32.mxu0 %v475_v10  ;;  %744 = vmatprep.mubr.f32.mxu1 %v507_v11  ;;  %v427_v10 = vld [vmem:[#allocation2 + $0x68] sm:$0xff]  ;;  %v443_v11 = vld [vmem:[#allocation2 + $0x90] sm:$0xff] }
  0xc3   : > { %665 = vmatmul.mubr.f32.gmra.mxu0 %v474_v12  ;;  %745 = vmatmul.mubr.f32.gmra.mxu1 %v506_v13 }
  0xc4   : > { %669 = vmatprep.mubr.f32.mxu0 %v477_v14  ;;  %749 = vmatprep.mubr.f32.mxu1 %v509_v15 }
  0xc7   : > { %670 = vmatmul.mubr.f32.gmra.mxu0 %v476_v16  ;;  %750 = vmatmul.mubr.f32.gmra.mxu1 %v508_v17 }
  0xc8   : > { %674 = vmatprep.mubr.f32.mxu0 %v479_v18  ;;  %754 = vmatprep.mubr.f32.mxu1 %v511_v19  ;;  %v428_v18 = vld [vmem:[#allocation2 + $0x30] sm:$0xff] }
  0xc9   : > { %v444_v19 = vld [vmem:[#allocation2 + $0x70] sm:$0xff] }
  0xcb   : > { %675 = vmatmul.mubr.f32.gmra.mxu0 %v478_v20  ;;  %755 = vmatmul.mubr.f32.gmra.mxu1 %v510_v21 }
  0xcc   : > { %679 = vmatprep.mubr.f32.mxu0 %v481_v22  ;;  %759 = vmatprep.mubr.f32.mxu1 %v513_v23 }
  0xcf   : > { %680 = vmatmul.mubr.f32.gmra.mxu0 %v480_v24  ;;  %760 = vmatmul.mubr.f32.gmra.mxu1 %v512_v25 }
  0xd0   : > { %684 = vmatprep.mubr.f32.mxu0 %v483_v26  ;;  %764 = vmatprep.mubr.f32.mxu1 %v515_v27  ;;  %v429_v26 = vld [vmem:[#allocation2 + $0x48] sm:$0xff]  ;;  %v445_v27 = vld [vmem:[#allocation2 + $0xc0] sm:$0xff] }
  0xd3   : > { %685 = vmatmul.mubr.f32.gmra.mxu0 %v482_v28  ;;  %765 = vmatmul.mubr.f32.gmra.mxu1 %v514_v29 }
  0xd4   : > { %689 = vmatprep.mubr.f32.mxu0 %v485_v30  ;;  %769 = vmatprep.mubr.f32.mxu1 %v517_v31 }
  0xd7   : > { %690 = vmatmul.mubr.f32.gmra.mxu0 %v484_v32  ;;  %770 = vmatmul.mubr.f32.gmra.mxu1 %v516_v33 }
 0x15b   : > { %v616_v36 = vpop.f32.mrf.mxu0  ;;  %v696_v37 = vpop.f32.mrf.mxu1 }
 0x15c   : > { %v775_v38 = vadd.f32 %v616_v36, %v422_v34  ;;  %v791_v39 = vadd.f32 %v696_v37, %v438_v35  ;;  %v430_v34 = vld [vmem:[#allocation2 + $0x80] sm:$0xff]  ;;  %v446_v35 = vld [vmem:[#allocation2 + $0xa8] sm:$0xff] }
 0x15d   : > { %v618_v40 = vpop.f32.mrf.mxu0  ;;  %v698_v41 = vpop.f32.mrf.mxu1 }
 0x15e   : > { %807 = vst [vmem:[#allocation2 + $0xb0] sm:$0xff] %v775_v38  ;;  %823 = vst [vmem:[#allocation2 + $0x38] sm:$0xff] %v791_v39 }
 0x15f   : > { %v621_v44 = vpop.f32.mrf.mxu0  ;;  %v701_v45 = vpop.f32.mrf.mxu1 }
 0x160   : > { %v776_v46 = vadd.f32 %v621_v44, %v423_v42  ;;  %v792_v47 = vadd.f32 %v701_v45, %v439_v43  ;;  %v431_v42 = vld [vmem:[#allocation2 + $0x88] sm:$0xff]  ;;  %v447_v43 = vld [vmem:[#allocation2 + $0xd0] sm:$0xff] }
 0x161   : > { %v623_v48 = vpop.f32.mrf.mxu0  ;;  %v703_v49 = vpop.f32.mrf.mxu1 }
 0x162   : > { %808 = vst [vmem:[#allocation2] sm:$0xff] %v776_v46  ;;  %824 = vst [vmem:[#allocation2 + $0x58] sm:$0xff] %v792_v47 }
 0x163   : > { %v626_v52 = vpop.f32.mrf.mxu0  ;;  %v706_v53 = vpop.f32.mrf.mxu1 }
 0x164   : > { %v777_v54 = vadd.f32 %v626_v52, %v424_v50  ;;  %v793_v55 = vadd.f32 %v706_v53, %v440_v51  ;;  %v432_v50 = vld [vmem:[#allocation2 + $0xe8] sm:$0xff]  ;;  %v448_v51 = vld [vmem:[#allocation2 + $0x10] sm:$0xff] }
 0x165   : > { %v628_v56 = vpop.f32.mrf.mxu0  ;;  %v708_v57 = vpop.f32.mrf.mxu1 }
 0x166   : > { %809 = vst [vmem:[#allocation2 + $0xd8] sm:$0xff] %v777_v54  ;;  %825 = vst [vmem:[#allocation2 + $0x40] sm:$0xff] %v793_v55 }
 0x167   : > { %v631_v60 = vpop.f32.mrf.mxu0  ;;  %v711_v61 = vpop.f32.mrf.mxu1 }
 0x168   : > { %v778_v62 = vadd.f32 %v631_v60, %v425_v58  ;;  %v794_v63 = vadd.f32 %v711_v61, %v441_v59  ;;  %v433_v58 = vld [vmem:[#allocation2 + $0xb8] sm:$0xff]  ;;  %v449_v59 = vld [vmem:[#allocation2 + $0x28] sm:$0xff] }
 0x169   : > { %v633_v0 = vpop.f32.mrf.mxu0  ;;  %v713_v1 = vpop.f32.mrf.mxu1 }
 0x16a   : > { %810 = vst [vmem:[#allocation2 + $0x18] sm:$0xff] %v778_v62  ;;  %826 = vst [vmem:[#allocation2 + $0xc8] sm:$0xff] %v794_v63 }
 0x16b   : > { %v636_v4 = vpop.f32.mrf.mxu0  ;;  %v716_v5 = vpop.f32.mrf.mxu1 }
 0x16c   : > { %v779_v6 = vadd.f32 %v636_v4, %v426_v2  ;;  %v795_v7 = vadd.f32 %v716_v5, %v442_v3  ;;  %v434_v2 = vld [vmem:[#allocation2 + $0x60] sm:$0xff] }
 0x16d   : > { %v638_v8 = vpop.f32.mrf.mxu0  ;;  %v718_v9 = vpop.f32.mrf.mxu1  ;;  %v450_v3 = vld [vmem:[#allocation2 + $0xa0] sm:$0xff] }
 0x16e   : > { %811 = vst [vmem:[#allocation2 + $0x50] sm:$0xff] %v779_v6  ;;  %827 = vst [vmem:[#allocation2 + $0xe0] sm:$0xff] %v795_v7 }
 0x16f   : > { %v641_v12 = vpop.f32.mrf.mxu0  ;;  %v721_v13 = vpop.f32.mrf.mxu1 }
 0x170   : > { %v780_v14 = vadd.f32 %v641_v12, %v427_v10  ;;  %v796_v15 = vadd.f32 %v721_v13, %v443_v11  ;;  %v435_v10 = vld [vmem:[#allocation2 + $0xf0] sm:$0xff]  ;;  %v451_v11 = vld [vmem:[#allocation2 + $0xf8] sm:$0xff] }
 0x171   : > { %v643_v16 = vpop.f32.mrf.mxu0  ;;  %v723_v17 = vpop.f32.mrf.mxu1 }
 0x172   : > { %812 = vst [vmem:[#allocation2 + $0x68] sm:$0xff] %v780_v14  ;;  %828 = vst [vmem:[#allocation2 + $0x90] sm:$0xff] %v796_v15 }
 0x173   : > { %v646_v20 = vpop.f32.mrf.mxu0  ;;  %v726_v21 = vpop.f32.mrf.mxu1 }
 0x174   : > { %v781_v22 = vadd.f32 %v646_v20, %v428_v18  ;;  %v797_v23 = vadd.f32 %v726_v21, %v444_v19  ;;  %v436_v18 = vld [vmem:[#allocation2 + $0x8] sm:$0xff]  ;;  %v452_v19 = vld [vmem:[#allocation2 + $0x20] sm:$0xff] }
 0x175   : > { %v648_v24 = vpop.f32.mrf.mxu0  ;;  %v728_v25 = vpop.f32.mrf.mxu1 }
 0x176   : > { %813 = vst [vmem:[#allocation2 + $0x30] sm:$0xff] %v781_v22  ;;  %829 = vst [vmem:[#allocation2 + $0x70] sm:$0xff] %v797_v23 }
 0x177   : > { %v651_v28 = vpop.f32.mrf.mxu0  ;;  %v731_v29 = vpop.f32.mrf.mxu1 }
 0x178   : > { %v782_v30 = vadd.f32 %v651_v28, %v429_v26  ;;  %v798_v31 = vadd.f32 %v731_v29, %v445_v27  ;;  %v437_v26 = vld [vmem:[#allocation2 + $0x78] sm:$0xff] }
 0x179   : > { %v653_v32 = vpop.f32.mrf.mxu0  ;;  %v733_v33 = vpop.f32.mrf.mxu1  ;;  %v453_v27 = vld [vmem:[#allocation2 + $0x98] sm:$0xff] }
 0x17a   : > { %814 = vst [vmem:[#allocation2 + $0x48] sm:$0xff] %v782_v30  ;;  %830 = vst [vmem:[#allocation2 + $0xc0] sm:$0xff] %v798_v31 }
 0x17b   : > { %v656_v36 = vpop.f32.mrf.mxu0  ;;  %v736_v37 = vpop.f32.mrf.mxu1 }
 0x17c   : > { %v783_v38 = vadd.f32 %v656_v36, %v430_v34  ;;  %v799_v39 = vadd.f32 %v736_v37, %v446_v35 }
 0x17d   : > { %v658_v40 = vpop.f32.mrf.mxu0  ;;  %v738_v41 = vpop.f32.mrf.mxu1 }
 0x17e   : > { %815 = vst [vmem:[#allocation2 + $0x80] sm:$0xff] %v783_v38  ;;  %831 = vst [vmem:[#allocation2 + $0xa8] sm:$0xff] %v799_v39 }
 0x17f   : > { %v661_v44 = vpop.f32.mrf.mxu0  ;;  %v741_v45 = vpop.f32.mrf.mxu1 }
 0x180   : > { %v784_v46 = vadd.f32 %v661_v44, %v431_v42  ;;  %v800_v47 = vadd.f32 %v741_v45, %v447_v43 }
 0x181   : > { %v663_v48 = vpop.f32.mrf.mxu0  ;;  %v743_v49 = vpop.f32.mrf.mxu1 }
 0x182   : > { %816 = vst [vmem:[#allocation2 + $0x88] sm:$0xff] %v784_v46  ;;  %832 = vst [vmem:[#allocation2 + $0xd0] sm:$0xff] %v800_v47 }
 0x183   : > { %v666_v52 = vpop.f32.mrf.mxu0  ;;  %v746_v53 = vpop.f32.mrf.mxu1 }
 0x184   : > { %v785_v54 = vadd.f32 %v666_v52, %v432_v50  ;;  %v801_v55 = vadd.f32 %v746_v53, %v448_v51 }
 0x185   : > { %v668_v56 = vpop.f32.mrf.mxu0  ;;  %v748_v57 = vpop.f32.mrf.mxu1 }
 0x186   : > { %817 = vst [vmem:[#allocation2 + $0xe8] sm:$0xff] %v785_v54  ;;  %833 = vst [vmem:[#allocation2 + $0x10] sm:$0xff] %v801_v55 }
 0x187   : > { %v671_v60 = vpop.f32.mrf.mxu0  ;;  %v751_v61 = vpop.f32.mrf.mxu1 }
 0x188   : > { %v786_v62 = vadd.f32 %v671_v60, %v433_v58  ;;  %v802_v63 = vadd.f32 %v751_v61, %v449_v59 }
 0x189   : > { %v673_v0 = vpop.f32.mrf.mxu0  ;;  %v753_v1 = vpop.f32.mrf.mxu1 }
 0x18a   : > { %818 = vst [vmem:[#allocation2 + $0xb8] sm:$0xff] %v786_v62  ;;  %834 = vst [vmem:[#allocation2 + $0x28] sm:$0xff] %v802_v63 }
 0x18b   : > { %v676_v4 = vpop.f32.mrf.mxu0  ;;  %v756_v5 = vpop.f32.mrf.mxu1 }
 0x18c   : > { %v787_v6 = vadd.f32 %v676_v4, %v434_v2  ;;  %v803_v7 = vadd.f32 %v756_v5, %v450_v3 }
 0x18d   : > { %v678_v8 = vpop.f32.mrf.mxu0  ;;  %v758_v9 = vpop.f32.mrf.mxu1 }
 0x18e   : > { %819 = vst [vmem:[#allocation2 + $0x60] sm:$0xff] %v787_v6  ;;  %835 = vst [vmem:[#allocation2 + $0xa0] sm:$0xff] %v803_v7 }
 0x18f   : > { %v681_v12 = vpop.f32.mrf.mxu0  ;;  %v761_v13 = vpop.f32.mrf.mxu1 }
 0x190   : > { %v788_v14 = vadd.f32 %v681_v12, %v435_v10  ;;  %v804_v15 = vadd.f32 %v761_v13, %v451_v11 }
 0x191   : > { %v683_v16 = vpop.f32.mrf.mxu0  ;;  %v763_v17 = vpop.f32.mrf.mxu1 }
 0x192   : > { %820 = vst [vmem:[#allocation2 + $0xf0] sm:$0xff] %v788_v14  ;;  %836 = vst [vmem:[#allocation2 + $0xf8] sm:$0xff] %v804_v15 }
 0x193   : > { %v686_v20 = vpop.f32.mrf.mxu0  ;;  %v766_v21 = vpop.f32.mrf.mxu1 }
 0x194   : > { %v789_v22 = vadd.f32 %v686_v20, %v436_v18  ;;  %v805_v23 = vadd.f32 %v766_v21, %v452_v19 }
 0x195   : > { %v688_v24 = vpop.f32.mrf.mxu0  ;;  %v768_v25 = vpop.f32.mrf.mxu1 }
 0x196   : > { %821 = vst [vmem:[#allocation2 + $0x8] sm:$0xff] %v789_v22  ;;  %837 = vst [vmem:[#allocation2 + $0x20] sm:$0xff] %v805_v23  ;;  %842 = sbr.rel (%p1612_p13) target bundleno = 1020 (0x3fc), region = 67 }
 0x197   : > { %v691_v28 = vpop.f32.mrf.mxu0  ;;  %v771_v29 = vpop.f32.mrf.mxu1 }
 0x198   : > { %v790_v30 = vadd.f32 %v691_v28, %v437_v26  ;;  %v806_v31 = vadd.f32 %v771_v29, %v453_v27 }
 0x199   : > { %v693_v32 = vpop.f32.mrf.mxu0  ;;  %v773_v33 = vpop.f32.mrf.mxu1 }
 0x19a   : > { %822 = vst [vmem:[#allocation2 + $0x78] sm:$0xff] %v790_v30  ;;  %838 = vst [vmem:[#allocation2 + $0x98] sm:$0xff] %v806_v31 }
 0x19b   : > { %v890_v34 = vld [vmem:[%s2909_s2 + $0x78] sm:$0xff]  ;;  %v889_v35 = vld [vmem:[%s2909_s2 + $0x70] sm:$0xff]  ;;  %v888_v36 = vld [vmem:[%s2909_s2 + $0x68] sm:$0xff] }
 0x19c   : > { %1665 = vmatprep.subr.mxu0 %v890_v34  ;;  %1809 = vmatprep.subr.mxu1 %v890_v34  ;;  %v887_v37 = vld [vmem:[%s2909_s2 + $0x60] sm:$0xff]  ;;  %v886_v38 = vld [vmem:[%s2909_s2 + $0x58] sm:$0xff]  ;;  %v885_v39 = vld [vmem:[%s2909_s2 + $0x50] sm:$0xff] }
 0x19d   : > { %1666 = vmatpush3.msra.mxu0 %v890_v34  ;;  %1825 = vmatpush3.msra.mxu1 %v890_v34  ;;  %v884_v40 = vld [vmem:[%s2909_s2 + $0x48] sm:$0xff]  ;;  %v883_v41 = vld [vmem:[%s2909_s2 + $0x40] sm:$0xff]  ;;  %v882_v42 = vld [vmem:[%s2909_s2 + $0x38] sm:$0xff] }
 0x19e   : > { %1667 = vmatprep.subr.mxu0 %v889_v35  ;;  %1810 = vmatprep.subr.mxu1 %v889_v35  ;;  %v881_v43 = vld [vmem:[%s2909_s2 + $0x30] sm:$0xff]  ;;  %v880_v44 = vld [vmem:[%s2909_s2 + $0x28] sm:$0xff]  ;;  %v879_v45 = vld [vmem:[%s2909_s2 + $0x20] sm:$0xff] }
 0x19f   : > { %1668 = vmatpush3.msra.mxu0 %v889_v35  ;;  %1826 = vmatpush3.msra.mxu1 %v889_v35  ;;  %v878_v46 = vld [vmem:[%s2909_s2 + $0x18] sm:$0xff]  ;;  %v877_v47 = vld [vmem:[%s2909_s2 + $0x10] sm:$0xff]  ;;  %v876_v48 = vld [vmem:[%s2909_s2 + $0x8] sm:$0xff] }
 0x1a0   : > { %1669 = vmatprep.subr.mxu0 %v888_v36  ;;  %1811 = vmatprep.subr.mxu1 %v888_v36  ;;  %v875_v49 = vld [vmem:[%s2909_s2] sm:$0xff]  ;;  %v843_v50 = vld [vmem:[#allocation2 + $0xb0] sm:$0xff]  ;;  %v859_v51 = vld [vmem:[#allocation2 + $0x38] sm:$0xff] }
 0x1a1   : > { %1670 = vmatpush3.msra.mxu0 %v888_v36  ;;  %1827 = vmatpush3.msra.mxu1 %v888_v36  ;;  %v844_v52 = vld [vmem:[#allocation2] sm:$0xff]  ;;  %v860_v53 = vld [vmem:[#allocation2 + $0x58] sm:$0xff]  ;;  %v862_v57 = vld [vmem:[#allocation2 + $0xc8] sm:$0xff] }
 0x1a2   : > { %1671 = vmatprep.subr.mxu0 %v887_v37  ;;  %1812 = vmatprep.subr.mxu1 %v887_v37  ;;  %v845_v54 = vld [vmem:[#allocation2 + $0xd8] sm:$0xff]  ;;  %v861_v55 = vld [vmem:[#allocation2 + $0x40] sm:$0xff]  ;;  %v847_v58 = vld [vmem:[#allocation2 + $0x50] sm:$0xff] }
 0x1a3   : > { %1672 = vmatpush3.msra.mxu0 %v887_v37  ;;  %1828 = vmatpush3.msra.mxu1 %v887_v37  ;;  %v846_v56 = vld [vmem:[#allocation2 + $0x18] sm:$0xff]  ;;  %v863_v59 = vld [vmem:[#allocation2 + $0xe0] sm:$0xff]  ;;  %v848_v60 = vld [vmem:[#allocation2 + $0x68] sm:$0xff] }
 0x1a4   : > { %1673 = vmatprep.subr.mxu0 %v886_v38  ;;  %1813 = vmatprep.subr.mxu1 %v886_v38  ;;  %v864_v61 = vld [vmem:[#allocation2 + $0x90] sm:$0xff]  ;;  %v850_v0 = vld [vmem:[#allocation2 + $0x48] sm:$0xff]  ;;  %v866_v1 = vld [vmem:[#allocation2 + $0xc0] sm:$0xff] }
 0x1a5   : > { %1674 = vmatpush3.msra.mxu0 %v886_v38  ;;  %1829 = vmatpush3.msra.mxu1 %v886_v38  ;;  %v849_v62 = vld [vmem:[#allocation2 + $0x30] sm:$0xff]  ;;  %v851_v2 = vld [vmem:[#allocation2 + $0x80] sm:$0xff]  ;;  %v867_v3 = vld [vmem:[#allocation2 + $0xa8] sm:$0xff] }
 0x1a6   : > { %1675 = vmatprep.subr.mxu0 %v885_v39  ;;  %1814 = vmatprep.subr.mxu1 %v885_v39  ;;  %v865_v63 = vld [vmem:[#allocation2 + $0x70] sm:$0xff]  ;;  %v852_v4 = vld [vmem:[#allocation2 + $0x88] sm:$0xff]  ;;  %v854_v8 = vld [vmem:[#allocation2 + $0xb8] sm:$0xff] }
 0x1a7   : > { %1676 = vmatpush3.msra.mxu0 %v885_v39  ;;  %1830 = vmatpush3.msra.mxu1 %v885_v39  ;;  %v868_v5 = vld [vmem:[#allocation2 + $0xd0] sm:$0xff]  ;;  %v853_v6 = vld [vmem:[#allocation2 + $0xe8] sm:$0xff]  ;;  %v855_v10 = vld [vmem:[#allocation2 + $0x60] sm:$0xff] }
 0x1a8   : > { %1677 = vmatprep.subr.mxu0 %v884_v40  ;;  %1815 = vmatprep.subr.mxu1 %v884_v40  ;;  %v869_v7 = vld [vmem:[#allocation2 + $0x10] sm:$0xff]  ;;  %v870_v9 = vld [vmem:[#allocation2 + $0x28] sm:$0xff]  ;;  %v871_v11 = vld [vmem:[#allocation2 + $0xa0] sm:$0xff] }
 0x1a9   : > { %1678 = vmatpush3.msra.mxu0 %v884_v40  ;;  %1831 = vmatpush3.msra.mxu1 %v884_v40  ;;  %v856_v12 = vld [vmem:[#allocation2 + $0xf0] sm:$0xff]  ;;  %v872_v13 = vld [vmem:[#allocation2 + $0xf8] sm:$0xff]  ;;  %v857_v14 = vld [vmem:[#allocation2 + $0x8] sm:$0xff] }
 0x1aa   : > { %1679 = vmatprep.subr.mxu0 %v883_v41  ;;  %1816 = vmatprep.subr.mxu1 %v883_v41  ;;  %v873_v15 = vld [vmem:[#allocation2 + $0x20] sm:$0xff]  ;;  %v858_v16 = vld [vmem:[#allocation2 + $0x78] sm:$0xff] }
 0x1ab   : > { %1680 = vmatpush3.msra.mxu0 %v883_v41  ;;  %1832 = vmatpush3.msra.mxu1 %v883_v41  ;;  %v874_v17 = vld [vmem:[#allocation2 + $0x98] sm:$0xff]  ;;  %v2532_v18 = vld [vmem:[%s2910_s3] ss:$0 sm:$0xff] }
 0x1ac   : > { %1681 = vmatprep.subr.mxu0 %v882_v42  ;;  %1817 = vmatprep.subr.mxu1 %v882_v42 }
 0x1ad   : > { %1682 = vmatpush3.msra.mxu0 %v882_v42  ;;  %1833 = vmatpush3.msra.mxu1 %v882_v42 }
 0x1ae   : > { %1683 = vmatprep.subr.mxu0 %v881_v43  ;;  %1818 = vmatprep.subr.mxu1 %v881_v43 }
 0x1af   : > { %1684 = vmatpush3.msra.mxu0 %v881_v43  ;;  %1834 = vmatpush3.msra.mxu1 %v881_v43 }
 0x1b0   : > { %1685 = vmatprep.subr.mxu0 %v880_v44  ;;  %1819 = vmatprep.subr.mxu1 %v880_v44 }
 0x1b1   : > { %1686 = vmatpush3.msra.mxu0 %v880_v44  ;;  %1835 = vmatpush3.msra.mxu1 %v880_v44 }
 0x1b2   : > { %1687 = vmatprep.subr.mxu0 %v879_v45  ;;  %1820 = vmatprep.subr.mxu1 %v879_v45 }
 0x1b3   : > { %1688 = vmatpush3.msra.mxu0 %v879_v45  ;;  %1836 = vmatpush3.msra.mxu1 %v879_v45 }
 0x1b4   : > { %1689 = vmatprep.subr.mxu0 %v878_v46  ;;  %1821 = vmatprep.subr.mxu1 %v878_v46 }
 0x1b5   : > { %1690 = vmatpush3.msra.mxu0 %v878_v46  ;;  %1837 = vmatpush3.msra.mxu1 %v878_v46 }
 0x1b6   : > { %1691 = vmatprep.subr.mxu0 %v877_v47  ;;  %1822 = vmatprep.subr.mxu1 %v877_v47 }
 0x1b7   : > { %1692 = vmatpush3.msra.mxu0 %v877_v47  ;;  %1838 = vmatpush3.msra.mxu1 %v877_v47 }
 0x1b8   : > { %1693 = vmatprep.subr.mxu0 %v876_v48  ;;  %1823 = vmatprep.subr.mxu1 %v876_v48 }
 0x1b9   : > { %1694 = vmatpush3.msra.mxu0 %v876_v48  ;;  %1839 = vmatpush3.msra.mxu1 %v876_v48 }
 0x1ba   : > { %1695 = vmatprep.subr.mxu0 %v875_v49  ;;  %1824 = vmatprep.subr.mxu1 %v875_v49 }
 0x1bb   : > { %1696 = vmatpush3.msra.mxu0 %v875_v49  ;;  %1840 = vmatpush3.msra.mxu1 %v875_v49 }
 0x1bc   : > { %1697 = vmatprep.mubr.f32.mxu0 %v843_v50  ;;  %1721 = vmatprep.mubr.f32.mxu1 %v859_v51 }
 0x1bd   : > { %1698 = vmatmul.mubr.f32.vlgmr.msra.gmra.mxu0 %v844_v52  ;;  %1722 = vmatmul.mubr.f32.vlgmr.msra.gmra.mxu1 %v860_v53 }
 0x1be   : > { %1700 = vmatprep.mubr.f32.mxu0 %v845_v54  ;;  %1724 = vmatprep.mubr.f32.mxu1 %v861_v55 }
 0x1c1   : > { %1701 = vmatmul.mubr.f32.gmra.mxu0 %v846_v56  ;;  %1725 = vmatmul.mubr.f32.gmra.mxu1 %v862_v57 }
 0x1c2   : > { %1703 = vmatprep.mubr.f32.mxu0 %v847_v58  ;;  %1727 = vmatprep.mubr.f32.mxu1 %v863_v59 }
 0x1c5   : > { %1704 = vmatmul.mubr.f32.gmra.mxu0 %v848_v60  ;;  %1728 = vmatmul.mubr.f32.gmra.mxu1 %v864_v61 }
 0x1c6   : > { %1706 = vmatprep.mubr.f32.mxu0 %v849_v62  ;;  %1730 = vmatprep.mubr.f32.mxu1 %v865_v63 }
 0x1c9   : > { %1707 = vmatmul.mubr.f32.gmra.mxu0 %v850_v0  ;;  %1731 = vmatmul.mubr.f32.gmra.mxu1 %v866_v1 }
 0x1ca   : > { %1709 = vmatprep.mubr.f32.mxu0 %v851_v2  ;;  %1733 = vmatprep.mubr.f32.mxu1 %v867_v3 }
 0x1cd   : > { %1710 = vmatmul.mubr.f32.gmra.mxu0 %v852_v4  ;;  %1734 = vmatmul.mubr.f32.gmra.mxu1 %v868_v5 }
 0x1ce   : > { %1712 = vmatprep.mubr.f32.mxu0 %v853_v6  ;;  %1736 = vmatprep.mubr.f32.mxu1 %v869_v7 }
 0x1d1   : > { %1713 = vmatmul.mubr.f32.gmra.mxu0 %v854_v8  ;;  %1737 = vmatmul.mubr.f32.gmra.mxu1 %v870_v9 }
 0x1d2   : > { %1715 = vmatprep.mubr.f32.mxu0 %v855_v10  ;;  %1739 = vmatprep.mubr.f32.mxu1 %v871_v11 }
 0x1d5   : > { %1716 = vmatmul.mubr.f32.gmra.mxu0 %v856_v12  ;;  %1740 = vmatmul.mubr.f32.gmra.mxu1 %v872_v13 }
 0x1d6   : > { %1718 = vmatprep.mubr.f32.mxu0 %v857_v14  ;;  %1742 = vmatprep.mubr.f32.mxu1 %v873_v15 }
 0x1d9   : > { %1719 = vmatmul.mubr.f32.gmra.mxu0 %v858_v16  ;;  %1743 = vmatmul.mubr.f32.gmra.mxu1 %v874_v17 }
 0x27d   : > { %v1699_v19 = vpop.f32.mrf.mxu0  ;;  %v1723_v20 = vpop.f32.mrf.mxu1 }
 0x27e   : > { %v2535_v21 = vadd.f32 %v1699_v19, %v2532_v18  ;;  %v2538_v22 = vadd.f32 %v1723_v20, %v2532_v18 }
 0x27f   : > { %v964_v23 = vpop.f32.mrf.mxu0  ;;  %v1044_v24 = vpop.f32.mrf.mxu1 }
 0x280   : > { %1157 = vmax.xlane.f32.xlu1 %v2538_v22  ;;  %1125 = vmax.xlane.f32.xlu0 %v2535_v21  ;;  %v2543_v26 = vadd.f32 %v2532_v18, %v964_v23  ;;  %v2554_v32 = vadd.f32 %v2532_v18, %v1044_v24 }
 0x281   : > { %v1702_v25 = vpop.f32.mrf.mxu0  ;;  %v1726_v29 = vpop.f32.mrf.mxu1 }
 0x282   : > { %v2546_v27 = vadd.f32 %v1702_v25, %v2532_v18  ;;  %v2549_v30 = vadd.f32 %v1726_v29, %v2532_v18 }
 0x283   : > { %v974_v28 = vpop.f32.mrf.mxu0  ;;  %v1054_v33 = vpop.f32.mrf.mxu1 }
 0x284   : > { %1129 = vmax.xlane.f32.xlu1 %v2546_v27  ;;  %1123 = vmax.xlane.f32.xlu0 %v2543_v26  ;;  %v2559_v36 = vadd.f32 %v2532_v18, %v974_v28  ;;  %v2562_v37 = vadd.f32 %v2532_v18, %v1054_v33 }
 0x285   : > { %v1705_v31 = vpop.f32.mrf.mxu0  ;;  %v1729_v35 = vpop.f32.mrf.mxu1 }
 0x286   : > { %v2565_v38 = vadd.f32 %v1705_v31, %v2532_v18  ;;  %v2573_v42 = vadd.f32 %v1729_v35, %v2532_v18 }
 0x287   : > { %v984_v34 = vpop.f32.mrf.mxu0  ;;  %v1064_v40 = vpop.f32.mrf.mxu1 }
 0x288   : > { %1161 = vmax.xlane.f32.xlu1 %v2549_v30  ;;  %1155 = vmax.xlane.f32.xlu0 %v2554_v32  ;;  %v2570_v39 = vadd.f32 %v2532_v18, %v984_v34  ;;  %v2578_v43 = vadd.f32 %v2532_v18, %v1064_v40 }
 0x289   : > { %v1708_v41 = vpop.f32.mrf.mxu0  ;;  %v1732_v45 = vpop.f32.mrf.mxu1 }
 0x28a   : > { %v2581_v46 = vadd.f32 %v1708_v41, %v2532_v18  ;;  %v2589_v50 = vadd.f32 %v1732_v45, %v2532_v18 }
 0x28b   : > { %v994_v44 = vpop.f32.mrf.mxu0  ;;  %v1074_v48 = vpop.f32.mrf.mxu1 }
 0x28c   : > { %1127 = vmax.xlane.f32.xlu1 %v2559_v36  ;;  %1159 = vmax.xlane.f32.xlu0 %v2562_v37  ;;  %v2586_v47 = vadd.f32 %v2532_v18, %v994_v44  ;;  %v2594_v51 = vadd.f32 %v2532_v18, %v1074_v48 }
 0x28d   : > { %v1711_v49 = vpop.f32.mrf.mxu0  ;;  %v1735_v53 = vpop.f32.mrf.mxu1 }
 0x28e   : > { %v2597_v54 = vadd.f32 %v1711_v49, %v2532_v18  ;;  %v2605_v58 = vadd.f32 %v1735_v53, %v2532_v18 }
 0x28f   : > { %v1004_v52 = vpop.f32.mrf.mxu0  ;;  %v1084_v56 = vpop.f32.mrf.mxu1 }
 0x290   : > { %1133 = vmax.xlane.f32.xlu1 %v2565_v38  ;;  %1131 = vmax.xlane.f32.xlu0 %v2570_v39  ;;  %v2602_v55 = vadd.f32 %v2532_v18, %v1004_v52  ;;  %v2610_v59 = vadd.f32 %v2532_v18, %v1084_v56 }
 0x291   : > { %v1714_v57 = vpop.f32.mrf.mxu0  ;;  %v1738_v61 = vpop.f32.mrf.mxu1 }
 0x292   : > { %2926 = vst [vmem:[#allocation4_spill] sm:$0xff] %v2602_v55  ;;  %2927 = vst [vmem:[#allocation5_spill] sm:$0xff] %v2610_v59  ;;  %v2613_v62 = vadd.f32 %v1714_v57, %v2532_v18  ;;  %v2621_v2 = vadd.f32 %v1738_v61, %v2532_v18 }
 0x293   : > { %v1014_v60 = vpop.f32.mrf.mxu0  ;;  %v1094_v0 = vpop.f32.mrf.mxu1 }
 0x294   : > { %1165 = vmax.xlane.f32.xlu1 %v2573_v42  ;;  %1163 = vmax.xlane.f32.xlu0 %v2578_v43  ;;  %2928 = vst [vmem:[#allocation6_spill] sm:$0xff] %v2613_v62  ;;  %v2618_v63 = vadd.f32 %v2532_v18, %v1014_v60  ;;  %2930 = vst [vmem:[#allocation8_spill] sm:$0xff] %v2621_v2  ;;  %v2626_v3 = vadd.f32 %v2532_v18, %v1094_v0 }
 0x295   : > { %v1717_v1 = vpop.f32.mrf.mxu0  ;;  %v1741_v5 = vpop.f32.mrf.mxu1 }
 0x296   : > { %2929 = vst [vmem:[#allocation7_spill] sm:$0xff] %v2618_v63  ;;  %2931 = vst [vmem:[#allocation9_spill] sm:$0xff] %v2626_v3  ;;  %v2629_v6 = vadd.f32 %v1717_v1, %v2532_v18  ;;  %v2637_v10 = vadd.f32 %v1741_v5, %v2532_v18 }
 0x297   : > { %v1024_v4 = vpop.f32.mrf.mxu0  ;;  %v1104_v8 = vpop.f32.mrf.mxu1 }
 0x298   : > { %1137 = vmax.xlane.f32.xlu1 %v2581_v46  ;;  %1135 = vmax.xlane.f32.xlu0 %v2586_v47  ;;  %2932 = vst [vmem:[#allocation10_spill] sm:$0xff] %v2629_v6  ;;  %v2634_v7 = vadd.f32 %v2532_v18, %v1024_v4  ;;  %2934 = vst [vmem:[#allocation12_spill] sm:$0xff] %v2637_v10  ;;  %v2642_v11 = vadd.f32 %v2532_v18, %v1104_v8 }
 0x299   : > { %v1720_v9 = vpop.f32.mrf.mxu0  ;;  %v1744_v13 = vpop.f32.mrf.mxu1 }
 0x29a   : > { %2933 = vst [vmem:[#allocation11_spill] sm:$0xff] %v2634_v7  ;;  %2935 = vst [vmem:[#allocation13_spill] sm:$0xff] %v2642_v11  ;;  %v2645_v14 = vadd.f32 %v1720_v9, %v2532_v18  ;;  %v2653_v17 = vadd.f32 %v1744_v13, %v2532_v18 }
 0x29b   : > { %v1034_v12 = vpop.f32.mrf.mxu0  ;;  %v1114_v16 = vpop.f32.mrf.mxu1 }
 0x29c   : > { %1169 = vmax.xlane.f32.xlu1 %v2589_v50  ;;  %1167 = vmax.xlane.f32.xlu0 %v2594_v51  ;;  %2936 = vst [vmem:[#allocation14_spill] sm:$0xff] %v2645_v14  ;;  %v2650_v15 = vadd.f32 %v2532_v18, %v1034_v12  ;;  %2938 = vst [vmem:[#allocation16_spill] sm:$0xff] %v2653_v17  ;;  %v2658_v19 = vadd.f32 %v2532_v18, %v1114_v16 }
 0x29e   : > { %2937 = vst [vmem:[#allocation15_spill] sm:$0xff] %v2650_v15  ;;  %2939 = vst [vmem:[#allocation17_spill] sm:$0xff] %v2658_v19 }
 0x2a0   : > { %1141 = vmax.xlane.f32.xlu1 %v2597_v54  ;;  %1139 = vmax.xlane.f32.xlu0 %v2602_v55 }
 0x2a4   : > { %1173 = vmax.xlane.f32.xlu1 %v2605_v58  ;;  %1171 = vmax.xlane.f32.xlu0 %v2610_v59 }
 0x2a8   : > { %1145 = vmax.xlane.f32.xlu1 %v2613_v62  ;;  %1143 = vmax.xlane.f32.xlu0 %v2618_v63 }
 0x2ac   : > { %1177 = vmax.xlane.f32.xlu1 %v2621_v2  ;;  %1175 = vmax.xlane.f32.xlu0 %v2626_v3 }
 0x2b0   : > { %1149 = vmax.xlane.f32.xlu1 %v2629_v6  ;;  %1147 = vmax.xlane.f32.xlu0 %v2634_v7 }
 0x2b4   : > { %1181 = vmax.xlane.f32.xlu1 %v2637_v10  ;;  %1179 = vmax.xlane.f32.xlu0 %v2642_v11 }
 0x2b8   : > { %1153 = vmax.xlane.f32.xlu1 %v2645_v14  ;;  %1151 = vmax.xlane.f32.xlu0 %v2650_v15 }
 0x2bc   : > { %1185 = vmax.xlane.f32.xlu1 %v2653_v17  ;;  %1183 = vmax.xlane.f32.xlu0 %v2658_v19 }
 0x309   : > { %v2662_v20 = vpop.xlane.xlu1 %1157  ;;  %v2664_v23 = vpop.xlane.xlu0 %1125 }
 0x30a   : > { %v1204_v24 = vsub.f32 %v2538_v22, %v2662_v20  ;;  %v1188_v25 = vsub.f32 %v2535_v21, %v2664_v23 }
 0x30c   : > { %v1221_v28 = vmul.f32 1.442695, %v1188_v25  ;;  %v1253_v18 = vmul.f32 1.442695, %v1204_v24 }
 0x30d   : > { %v2670_v29 = vpop.xlane.xlu1 %1129  ;;  %v2672_v31 = vpop.xlane.xlu0 %1123 }
 0x30e   : > { %v1190_v33 = vsub.f32 %v2546_v27, %v2670_v29  ;;  %v1187_v34 = vsub.f32 %v2543_v26, %v2672_v31  ;;  %1899 = vpow2.f32 %v1221_v28 }
 0x30f   : > { %1901 = vpow2.f32 %v1253_v18 }
 0x310   : > { %v1219_v35 = vmul.f32 1.442695, %v1187_v34  ;;  %v1225_v44 = vmul.f32 1.442695, %v1190_v33 }
 0x311   : > { %v2678_v40 = vpop.xlane.xlu1 %1161  ;;  %v2680_v41 = vpop.xlane.xlu0 %1155 }
 0x312   : > { %v1203_v45 = vsub.f32 %v2554_v32, %v2680_v41  ;;  %1903 = vpow2.f32 %v1219_v35  ;;  %v1206_v48 = vsub.f32 %v2549_v30, %v2678_v40 }
 0x313   : > { %1905 = vpow2.f32 %v1225_v44 }
 0x314   : > { %v1251_v49 = vmul.f32 1.442695, %v1203_v45  ;;  %v1257_v57 = vmul.f32 1.442695, %v1206_v48 }
 0x315   : > { %v2686_v52 = vpop.xlane.xlu1 %1127  ;;  %v2688_v53 = vpop.xlane.xlu0 %1159 }
 0x316   : > { %v1189_v56 = vsub.f32 %v2559_v36, %v2686_v52  ;;  %1907 = vpow2.f32 %v1251_v49  ;;  %v1205_v60 = vsub.f32 %v2562_v37, %v2688_v53 }
 0x318   : > { %v1223_v61 = vmul.f32 1.442695, %v1189_v56  ;;  %v1255_v5 = vmul.f32 1.442695, %v1205_v60 }
 0x319   : > { %v2694_v0 = vpop.xlane.xlu1 %1133  ;;  %v2696_v1 = vpop.xlane.xlu0 %1131 }
 0x31a   : > { %1909 = vpow2.f32 %v1223_v61  ;;  %v1192_v4 = vsub.f32 %v2565_v38, %v2694_v0  ;;  %v1191_v8 = vsub.f32 %v2570_v39, %v2696_v1 }
 0x31b   : > { %1911 = vpow2.f32 %v1257_v57  ;;  %v1900_v9 = vpop.eup %1899 }
 0x31c   : > { %v1229_v12 = vmul.f32 1.442695, %v1192_v4  ;;  %1285 = vadd.xlane.f32.xlu1 %v1900_v9  ;;  %v1902_v25 = vpop.eup %1901  ;;  %v1227_v28 = vmul.f32 1.442695, %v1191_v8 }
 0x31d   : > { %v2702_v13 = vpop.xlane.xlu1 %1165  ;;  %v2704_v16 = vpop.xlane.xlu0 %1163 }
 0x31e   : > { %1913 = vpow2.f32 %v1229_v12  ;;  %v1208_v24 = vsub.f32 %v2573_v42, %v2702_v13  ;;  %v1207_v18 = vsub.f32 %v2578_v43, %v2704_v16 }
 0x31f   : > { %1915 = vpow2.f32 %v1255_v5  ;;  %v1904_v33 = vpop.eup %1903 }
 0x320   : > { %v1261_v34 = vmul.f32 1.442695, %v1208_v24  ;;  %1317 = vadd.xlane.f32.xlu1 %v1902_v25  ;;  %1283 = vadd.xlane.f32.xlu0 %v1904_v33  ;;  %v1906_v48 = vpop.eup %1905  ;;  %v1259_v49 = vmul.f32 1.442695, %v1207_v18 }
 0x321   : > { %v2710_v35 = vpop.xlane.xlu1 %1137  ;;  %v2712_v44 = vpop.xlane.xlu0 %1135 }
 0x322   : > { %1917 = vpow2.f32 %v1261_v34  ;;  %v1194_v45 = vsub.f32 %v2581_v46, %v2710_v35  ;;  %v1193_v56 = vsub.f32 %v2586_v47, %v2712_v44 }
 0x323   : > { %1919 = vpow2.f32 %v1227_v28  ;;  %v1908_v57 = vpop.eup %1907 }
 0x324   : > { %v1233_v60 = vmul.f32 1.442695, %v1194_v45  ;;  %1289 = vadd.xlane.f32.xlu1 %v1906_v48  ;;  %1315 = vadd.xlane.f32.xlu0 %v1908_v57  ;;  %v1231_v9 = vmul.f32 1.442695, %v1193_v56 }
 0x325   : > { %v2718_v61 = vpop.xlane.xlu1 %1169  ;;  %v2720_v4 = vpop.xlane.xlu0 %1167 }
 0x326   : > { %1921 = vpow2.f32 %v1233_v60  ;;  %v1210_v5 = vsub.f32 %v2589_v50, %v2718_v61  ;;  %v1209_v12 = vsub.f32 %v2594_v51, %v2720_v4 }
 0x327   : > { %v1910_v8 = vpop.eup %1909  ;;  %1923 = vpow2.f32 %v1259_v49 }
 0x328   : > { %v1912_v24 = vpop.eup %1911  ;;  %v1265_v25 = vmul.f32 1.442695, %v1210_v5  ;;  %1287 = vadd.xlane.f32.xlu0 %v1910_v8  ;;  %v1263_v45 = vmul.f32 1.442695, %v1209_v12 }
 0x329   : > { %1321 = vadd.xlane.f32.xlu1 %v1912_v24  ;;  %v2726_v28 = vpop.xlane.xlu1 %1141  ;;  %v2728_v18 = vpop.xlane.xlu0 %1139 }
 0x32a   : > { %1925 = vpow2.f32 %v1265_v25  ;;  %v1196_v33 = vsub.f32 %v2597_v54, %v2726_v28  ;;  %v1195_v48 = vsub.f32 %v2602_v55, %v2728_v18 }
 0x32b   : > { %v1914_v34 = vpop.eup %1913  ;;  %1927 = vpow2.f32 %v1231_v9 }
 0x32c   : > { %v1916_v49 = vpop.eup %1915  ;;  %v1237_v56 = vmul.f32 1.442695, %v1196_v33  ;;  %v1235_v24 = vmul.f32 1.442695, %v1195_v48 }
 0x32d   : > { %1293 = vadd.xlane.f32.xlu1 %v1914_v34  ;;  %1319 = vadd.xlane.f32.xlu0 %v1916_v49  ;;  %v2734_v57 = vpop.xlane.xlu1 %1173  ;;  %v2736_v60 = vpop.xlane.xlu0 %1171 }
 0x32e   : > { %1929 = vpow2.f32 %v1237_v56  ;;  %v1212_v5 = vsub.f32 %v2605_v58, %v2734_v57  ;;  %v1211_v9 = vsub.f32 %v2610_v59, %v2736_v60 }
 0x32f   : > { %v1918_v8 = vpop.eup %1917  ;;  %1931 = vpow2.f32 %v1263_v45 }
 0x330   : > { %v1920_v12 = vpop.eup %1919  ;;  %v1269_v25 = vmul.f32 1.442695, %v1212_v5  ;;  %v1267_v55 = vmul.f32 1.442695, %v1211_v9 }
 0x331   : > { %1325 = vadd.xlane.f32.xlu1 %v1918_v8  ;;  %1291 = vadd.xlane.f32.xlu0 %v1920_v12  ;;  %v2742_v33 = vpop.xlane.xlu1 %1145  ;;  %v2744_v34 = vpop.xlane.xlu0 %1143 }
 0x332   : > { %1933 = vpow2.f32 %v1269_v25  ;;  %v1198_v49 = vsub.f32 %v2613_v62, %v2742_v33  ;;  %v1197_v45 = vsub.f32 %v2618_v63, %v2744_v34 }
 0x333   : > { %v1922_v56 = vpop.eup %1921  ;;  %1935 = vpow2.f32 %v1235_v24 }
 0x334   : > { %v1924_v48 = vpop.eup %1923  ;;  %v1241_v59 = vmul.f32 1.442695, %v1198_v49  ;;  %v1239_v62 = vmul.f32 1.442695, %v1197_v45 }
 0x335   : > { %1297 = vadd.xlane.f32.xlu1 %v1922_v56  ;;  %1323 = vadd.xlane.f32.xlu0 %v1924_v48  ;;  %v2750_v5 = vpop.xlane.xlu1 %1177  ;;  %v2752_v8 = vpop.xlane.xlu0 %1175 }
 0x336   : > { %1937 = vpow2.f32 %v1241_v59  ;;  %v1214_v12 = vsub.f32 %v2621_v2, %v2750_v5  ;;  %v1213_v24 = vsub.f32 %v2626_v3, %v2752_v8 }
 0x337   : > { %v1926_v25 = vpop.eup %1925  ;;  %1939 = vpow2.f32 %v1267_v55 }
 0x338   : > { %v1928_v9 = vpop.eup %1927  ;;  %v1273_v63 = vmul.f32 1.442695, %v1214_v12  ;;  %v1271_v2 = vmul.f32 1.442695, %v1213_v24 }
 0x339   : > { %1329 = vadd.xlane.f32.xlu1 %v1926_v25  ;;  %1295 = vadd.xlane.f32.xlu0 %v1928_v9  ;;  %v2758_v49 = vpop.xlane.xlu1 %1149  ;;  %v2760_v56 = vpop.xlane.xlu0 %1147 }
 0x33a   : > { %1941 = vpow2.f32 %v1273_v63  ;;  %v1200_v59 = vsub.f32 %v2629_v6, %v2758_v49  ;;  %v1199_v55 = vsub.f32 %v2634_v7, %v2760_v56 }
 0x33b   : > { %v1930_v48 = vpop.eup %1929  ;;  %1943 = vpow2.f32 %v1239_v62 }
 0x33c   : > { %v1932_v45 = vpop.eup %1931  ;;  %v1245_v3 = vmul.f32 1.442695, %v1200_v59  ;;  %v1243_v6 = vmul.f32 1.442695, %v1199_v55 }
 0x33d   : > { %1301 = vadd.xlane.f32.xlu1 %v1930_v48  ;;  %1327 = vadd.xlane.f32.xlu0 %v1932_v45  ;;  %v2766_v12 = vpop.xlane.xlu1 %1181  ;;  %v2768_v25 = vpop.xlane.xlu0 %1179 }
 0x33e   : > { %1945 = vpow2.f32 %v1245_v3  ;;  %v1216_v63 = vsub.f32 %v2637_v10, %v2766_v12  ;;  %v1215_v62 = vsub.f32 %v2642_v11, %v2768_v25 }
 0x33f   : > { %v1934_v9 = vpop.eup %1933  ;;  %1947 = vpow2.f32 %v1271_v2 }
 0x340   : > { %v1936_v24 = vpop.eup %1935  ;;  %v1277_v7 = vmul.f32 1.442695, %v1216_v63  ;;  %v1275_v10 = vmul.f32 1.442695, %v1215_v62 }
 0x341   : > { %1333 = vadd.xlane.f32.xlu1 %v1934_v9  ;;  %1299 = vadd.xlane.f32.xlu0 %v1936_v24  ;;  %v2774_v59 = vpop.xlane.xlu1 %1153  ;;  %v2776_v48 = vpop.xlane.xlu0 %1151 }
 0x342   : > { %1949 = vpow2.f32 %v1277_v7  ;;  %v1202_v3 = vsub.f32 %v2645_v14, %v2774_v59  ;;  %v1201_v2 = vsub.f32 %v2650_v15, %v2776_v48 }
 0x343   : > { %v1938_v45 = vpop.eup %1937  ;;  %1951 = vpow2.f32 %v1243_v6 }
 0x344   : > { %v1940_v55 = vpop.eup %1939  ;;  %v1249_v11 = vmul.f32 1.442695, %v1202_v3  ;;  %v1247_v14 = vmul.f32 1.442695, %v1201_v2 }
 0x345   : > { %1305 = vadd.xlane.f32.xlu1 %v1938_v45  ;;  %1331 = vadd.xlane.f32.xlu0 %v1940_v55  ;;  %v2782_v63 = vpop.xlane.xlu1 %1185  ;;  %v2784_v9 = vpop.xlane.xlu0 %1183 }
 0x346   : > { %1953 = vpow2.f32 %v1249_v11  ;;  %v1218_v7 = vsub.f32 %v2653_v17, %v2782_v63  ;;  %v1217_v6 = vsub.f32 %v2658_v19, %v2784_v9 }
 0x347   : > { %v1942_v24 = vpop.eup %1941  ;;  %1955 = vpow2.f32 %v1275_v10 }
 0x348   : > { %v1944_v62 = vpop.eup %1943  ;;  %v1281_v15 = vmul.f32 1.442695, %v1218_v7  ;;  %v1279_v45 = vmul.f32 1.442695, %v1217_v6 }
 0x349   : > { %1337 = vadd.xlane.f32.xlu1 %v1942_v24  ;;  %1303 = vadd.xlane.f32.xlu0 %v1944_v62 }
 0x34a   : > { %1957 = vpow2.f32 %v1281_v15 }
 0x34b   : > { %v1946_v3 = vpop.eup %1945  ;;  %1959 = vpow2.f32 %v1247_v14 }
 0x34c   : > { %v1948_v55 = vpop.eup %1947  ;;  %1961 = vpow2.f32 %v1279_v45 }
 0x34d   : > { %1309 = vadd.xlane.f32.xlu1 %v1946_v3  ;;  %1335 = vadd.xlane.f32.xlu0 %v1948_v55 }
 0x34f   : > { %v1950_v11 = vpop.eup %1949 }
 0x350   : > { %v1952_v17 = vpop.eup %1951 }
 0x351   : > { %1341 = vadd.xlane.f32.xlu1 %v1950_v11  ;;  %1307 = vadd.xlane.f32.xlu0 %v1952_v17 }
 0x353   : > { %v1954_v10 = vpop.eup %1953 }
 0x354   : > { %v1956_v2 = vpop.eup %1955 }
 0x355   : > { %1313 = vadd.xlane.f32.xlu1 %v1954_v10  ;;  %1339 = vadd.xlane.f32.xlu0 %v1956_v2 }
 0x357   : > { %v1958_v19 = vpop.eup %1957 }
 0x358   : > { %v1960_v7 = vpop.eup %1959 }
 0x359   : > { %1345 = vadd.xlane.f32.xlu1 %v1958_v19  ;;  %1311 = vadd.xlane.f32.xlu0 %v1960_v7  ;;  %v1962_v15 = vpop.eup %1961 }
 0x35d   : > { %1343 = vadd.xlane.f32.xlu0 %v1962_v15 }
 0x3a5   : > { %v1286_v14 = vpop.xlane.xlu1 %1285 }
 0x3a6   : > { %1963 = vlog2.f32 %v1286_v14 }
 0x3a9   : > { %v1318_v24 = vpop.xlane.xlu1 %1317  ;;  %v1284_v6 = vpop.xlane.xlu0 %1283 }
 0x3aa   : > { %1965 = vlog2.f32 %v1318_v24 }
 0x3ab   : > { %1967 = vlog2.f32 %v1284_v6 }
 0x3ad   : > { %v1290_v62 = vpop.xlane.xlu1 %1289  ;;  %v1316_v3 = vpop.xlane.xlu0 %1315 }
 0x3ae   : > { %1969 = vlog2.f32 %v1290_v62 }
 0x3af   : > { %1971 = vlog2.f32 %v1316_v3 }
 0x3b1   : > { %v1288_v45 = vpop.xlane.xlu0 %1287 }
 0x3b2   : > { %v1322_v17 = vpop.xlane.xlu1 %1321 }
 0x3b3   : > { %1973 = vlog2.f32 %v1322_v17  ;;  %v1964_v55 = vpop.eup %1963 }
 0x3b4   : > { %1975 = vlog2.f32 %v1288_v45  ;;  %v1350_v19 = vmul.f32 0.6931472, %v1964_v55 }
 0x3b6   : > { %v1294_v11 = vpop.xlane.xlu1 %1293  ;;  %v1320_v10 = vpop.xlane.xlu0 %1319  ;;  %v1412_v2 = vadd.f32 %v1350_v19, %v2664_v23 }
 0x3b7   : > { %1977 = vlog2.f32 %v1294_v11  ;;  %v1966_v7 = vpop.eup %1965 }
 0x3b8   : > { %1979 = vlog2.f32 %v1320_v10  ;;  %v1968_v15 = vpop.eup %1967  ;;  %v1444_v14 = vsub.f32 %v2535_v21, %v1412_v2  ;;  %v1382_v24 = vmul.f32 0.6931472, %v1966_v7 }
 0x3b9   : > { %v1348_v6 = vmul.f32 0.6931472, %v1968_v15 }
 0x3ba   : > { %v1326_v62 = vpop.xlane.xlu1 %1325  ;;  %v1292_v3 = vpop.xlane.xlu0 %1291  ;;  %1476 = vst [vmem:[%s2315_s8 + $0x8] sm:$0xff] %v1444_v14  ;;  %v1428_v17 = vadd.f32 %v1382_v24, %v2662_v20 }
 0x3bb   : > { %1981 = vlog2.f32 %v1326_v62  ;;  %v1970_v45 = vpop.eup %1969  ;;  %v1411_v55 = vadd.f32 %v1348_v6, %v2672_v31 }
 0x3bc   : > { %1983 = vlog2.f32 %v1292_v3  ;;  %v1972_v23 = vpop.eup %1971  ;;  %v1460_v19 = vsub.f32 %v2538_v22, %v1428_v17  ;;  %v1354_v11 = vmul.f32 0.6931472, %v1970_v45 }
 0x3bd   : > { %v1443_v21 = vsub.f32 %v2543_v26, %v1411_v55  ;;  %v1380_v10 = vmul.f32 0.6931472, %v1972_v23 }
 0x3be   : > { %v1298_v2 = vpop.xlane.xlu1 %1297  ;;  %v1324_v7 = vpop.xlane.xlu0 %1323  ;;  %1492 = vst [vmem:[%s2315_s8 + $0x88] sm:$0xff] %v1460_v19  ;;  %v1414_v15 = vadd.f32 %v1354_v11, %v2670_v29 }
 0x3bf   : > { %1985 = vlog2.f32 %v1298_v2  ;;  %1475 = vst [vmem:[%s2315_s8] sm:$0xff] %v1443_v21  ;;  %v1427_v31 = vadd.f32 %v1380_v10, %v2680_v41 }
 0x3c0   : > { %v1974_v20 = vpop.eup %1973  ;;  %1987 = vlog2.f32 %v1324_v7  ;;  %v1446_v22 = vsub.f32 %v2546_v27, %v1414_v15 }
 0x3c1   : > { %v1976_v14 = vpop.eup %1975  ;;  %v1386_v24 = vmul.f32 0.6931472, %v1974_v20  ;;  %v1459_v26 = vsub.f32 %v2554_v32, %v1427_v31 }
 0x3c2   : > { %v1352_v6 = vmul.f32 0.6931472, %v1976_v14  ;;  %v1330_v62 = vpop.xlane.xlu1 %1329  ;;  %v1296_v3 = vpop.xlane.xlu0 %1295  ;;  %1478 = vst [vmem:[%s2315_s8 + $0x18] sm:$0xff] %v1446_v22 }
 0x3c3   : > { %v1430_v29 = vadd.f32 %v1386_v24, %v2678_v40  ;;  %1989 = vlog2.f32 %v1330_v62  ;;  %1491 = vst [vmem:[%s2315_s8 + $0x80] sm:$0xff] %v1459_v26 }
 0x3c4   : > { %v1978_v17 = vpop.eup %1977  ;;  %v1413_v41 = vadd.f32 %v1352_v6, %v2686_v52  ;;  %1991 = vlog2.f32 %v1296_v3 }
 0x3c5   : > { %v1980_v45 = vpop.eup %1979  ;;  %v1462_v27 = vsub.f32 %v2549_v30, %v1430_v29  ;;  %v1358_v55 = vmul.f32 0.6931472, %v1978_v17 }
 0x3c6   : > { %v1445_v32 = vsub.f32 %v2559_v36, %v1413_v41  ;;  %v1384_v23 = vmul.f32 0.6931472, %v1980_v45  ;;  %v1302_v19 = vpop.xlane.xlu1 %1301  ;;  %v1328_v11 = vpop.xlane.xlu0 %1327 }
 0x3c7   : > { %1494 = vst [vmem:[%s2315_s8 + $0x98] sm:$0xff] %v1462_v27  ;;  %v1416_v40 = vadd.f32 %v1358_v55, %v2694_v0  ;;  %1993 = vlog2.f32 %v1302_v19 }
 0x3c8   : > { %v1982_v21 = vpop.eup %1981  ;;  %1477 = vst [vmem:[%s2315_s8 + $0x10] sm:$0xff] %v1445_v32  ;;  %v1429_v52 = vadd.f32 %v1384_v23, %v2688_v53  ;;  %1995 = vlog2.f32 %v1328_v11 }
 0x3c9   : > { %v1984_v10 = vpop.eup %1983  ;;  %v1448_v30 = vsub.f32 %v2565_v38, %v1416_v40  ;;  %v1390_v2 = vmul.f32 0.6931472, %v1982_v21 }
 0x3ca   : > { %v1461_v36 = vsub.f32 %v2562_v37, %v1429_v52  ;;  %v1356_v7 = vmul.f32 0.6931472, %v1984_v10  ;;  %v1334_v15 = vpop.xlane.xlu1 %1333  ;;  %v1300_v20 = vpop.xlane.xlu0 %1299 }
 0x3cb   : > { %1480 = vst [vmem:[%s2315_s8 + $0x28] sm:$0xff] %v1448_v30  ;;  %v1432_v0 = vadd.f32 %v1390_v2, %v2702_v13  ;;  %1997 = vlog2.f32 %v1334_v15 }
 0x3cc   : > { %v1986_v31 = vpop.eup %1985  ;;  %1493 = vst [vmem:[%s2315_s8 + $0x90] sm:$0xff] %v1461_v36  ;;  %v1415_v53 = vadd.f32 %v1356_v7, %v2696_v1  ;;  %1999 = vlog2.f32 %v1300_v20  ;;  %v2940_v20 = vld [vmem:[#allocation4_spill] sm:$0xff] }
 0x3cd   : > { %v1988_v14 = vpop.eup %1987  ;;  %v1464_v38 = vsub.f32 %v2573_v42, %v1432_v0  ;;  %v1362_v22 = vmul.f32 0.6931472, %v1986_v31 }
 0x3ce   : > { %v1447_v37 = vsub.f32 %v2570_v39, %v1415_v53  ;;  %v1388_v24 = vmul.f32 0.6931472, %v1988_v14  ;;  %v1306_v26 = vpop.xlane.xlu1 %1305  ;;  %v1332_v6 = vpop.xlane.xlu0 %1331 }
 0x3cf   : > { %1496 = vst [vmem:[%s2315_s8 + $0xa8] sm:$0xff] %v1464_v38  ;;  %v1418_v13 = vadd.f32 %v1362_v22, %v2710_v35  ;;  %2001 = vlog2.f32 %v1306_v26  ;;  %v2941_v22 = vld [vmem:[#allocation6_spill] sm:$0xff] }
 0x3d0   : > { %v1990_v62 = vpop.eup %1989  ;;  %1479 = vst [vmem:[%s2315_s8 + $0x20] sm:$0xff] %v1447_v37  ;;  %v1431_v1 = vadd.f32 %v1388_v24, %v2704_v16  ;;  %2003 = vlog2.f32 %v1332_v6  ;;  %v2942_v24 = vld [vmem:[#allocation5_spill] sm:$0xff] }
 0x3d1   : > { %v1992_v3 = vpop.eup %1991  ;;  %v1450_v42 = vsub.f32 %v2581_v46, %v1418_v13  ;;  %v1394_v29 = vmul.f32 0.6931472, %v1990_v62 }
 0x3d2   : > { %v1463_v39 = vsub.f32 %v2578_v43, %v1431_v1  ;;  %v1360_v17 = vmul.f32 0.6931472, %v1992_v3  ;;  %v1338_v41 = vpop.xlane.xlu1 %1337  ;;  %v1304_v45 = vpop.xlane.xlu0 %1303 }
 0x3d3   : > { %1482 = vst [vmem:[%s2315_s8 + $0x38] sm:$0xff] %v1450_v42  ;;  %v1434_v35 = vadd.f32 %v1394_v29, %v2718_v61  ;;  %2005 = vlog2.f32 %v1338_v41  ;;  %v2943_v42 = vld [vmem:[#allocation8_spill] sm:$0xff] }
 0x3d4   : > { %v1994_v27 = vpop.eup %1993  ;;  %1495 = vst [vmem:[%s2315_s8 + $0xa0] sm:$0xff] %v1463_v39  ;;  %v1417_v16 = vadd.f32 %v1360_v17, %v2712_v44  ;;  %2007 = vlog2.f32 %v1304_v45  ;;  %v2944_v17 = vld [vmem:[#allocation7_spill] sm:$0xff] }
 0x3d5   : > { %v1996_v55 = vpop.eup %1995  ;;  %v1466_v46 = vsub.f32 %v2589_v50, %v1434_v35  ;;  %v1366_v32 = vmul.f32 0.6931472, %v1994_v27 }
 0x3d6   : > { %v1449_v43 = vsub.f32 %v2586_v47, %v1417_v16  ;;  %v1392_v23 = vmul.f32 0.6931472, %v1996_v55  ;;  %v1310_v19 = vpop.xlane.xlu1 %1309  ;;  %v1336_v11 = vpop.xlane.xlu0 %1335  ;;  %v2945_v55 = vld [vmem:[#allocation10_spill] sm:$0xff] }
 0x3d7   : > { %1498 = vst [vmem:[%s2315_s8 + $0xb8] sm:$0xff] %v1466_v46  ;;  %v1420_v61 = vadd.f32 %v1366_v32, %v2726_v28  ;;  %2009 = vlog2.f32 %v1310_v19 }
 0x3d8   : > { %v1998_v40 = vpop.eup %1997  ;;  %1481 = vst [vmem:[%s2315_s8 + $0x30] sm:$0xff] %v1449_v43  ;;  %v1433_v44 = vadd.f32 %v1392_v23, %v2720_v4  ;;  %2011 = vlog2.f32 %v1336_v11  ;;  %v2946_v43 = vld [vmem:[#allocation9_spill] sm:$0xff] }
 0x3d9   : > { %v2000_v21 = vpop.eup %1999  ;;  %v1452_v50 = vsub.f32 %v2597_v54, %v1420_v61  ;;  %v1398_v52 = vmul.f32 0.6931472, %v1998_v40 }
 0x3da   : > { %v1465_v47 = vsub.f32 %v2594_v51, %v1433_v44  ;;  %v1364_v10 = vmul.f32 0.6931472, %v2000_v21  ;;  %v1342_v30 = vpop.xlane.xlu1 %1341  ;;  %v1308_v2 = vpop.xlane.xlu0 %1307  ;;  %v2947_v44 = vld [vmem:[#allocation12_spill] sm:$0xff] }
 0x3db   : > { %1484 = vst [vmem:[%s2315_s8 + $0x48] sm:$0xff] %v1452_v50  ;;  %v1436_v28 = vadd.f32 %v1398_v52, %v2734_v57  ;;  %2013 = vlog2.f32 %v1342_v30  ;;  %v2948_v50 = vld [vmem:[#allocation11_spill] sm:$0xff] }
 0x3dc   : > { %v2002_v36 = vpop.eup %2001  ;;  %1497 = vst [vmem:[%s2315_s8 + $0xb0] sm:$0xff] %v1465_v47  ;;  %v1419_v4 = vadd.f32 %v1364_v10, %v2728_v18  ;;  %2015 = vlog2.f32 %v1308_v2 }
 0x3dd   : > { %v2004_v7 = vpop.eup %2003  ;;  %v1468_v54 = vsub.f32 %v2605_v58, %v1436_v28  ;;  %v1370_v15 = vmul.f32 0.6931472, %v2002_v36 }
 0x3de   : > { %v1451_v51 = vsub.f32 %v2940_v20, %v1419_v4  ;;  %v1396_v0 = vmul.f32 0.6931472, %v2004_v7  ;;  %v1314_v31 = vpop.xlane.xlu1 %1313  ;;  %v1340_v53 = vpop.xlane.xlu0 %1339  ;;  %v2950_v4 = vld [vmem:[#allocation13_spill] sm:$0xff] }
 0x3df   : > { %1500 = vst [vmem:[%s2315_s8 + $0xc8] sm:$0xff] %v1468_v54  ;;  %v1422_v57 = vadd.f32 %v1370_v15, %v2742_v33  ;;  %2017 = vlog2.f32 %v1314_v31 }
 0x3e0   : > { %v2006_v14 = vpop.eup %2005  ;;  %1483 = vst [vmem:[%s2315_s8 + $0x40] sm:$0xff] %v1451_v51  ;;  %v1435_v18 = vadd.f32 %v1396_v0, %v2736_v60  ;;  %2019 = vlog2.f32 %v1340_v53  ;;  %v2951_v51 = vld [vmem:[#allocation16_spill] sm:$0xff] }
 0x3e1   : > { %v2008_v38 = vpop.eup %2007  ;;  %v1454_v58 = vsub.f32 %v2941_v22, %v1422_v57  ;;  %v1402_v37 = vmul.f32 0.6931472, %v2006_v14  ;;  %v2953_v14 = vld [vmem:[#allocation17_spill] sm:$0xff] }
 0x3e2   : > { %v1467_v26 = vsub.f32 %v2942_v24, %v1435_v18  ;;  %v1368_v6 = vmul.f32 0.6931472, %v2008_v38  ;;  %v1346_v13 = vpop.xlane.xlu1 %1345  ;;  %v1312_v62 = vpop.xlane.xlu0 %1311 }
 0x3e3   : > { %1486 = vst [vmem:[%s2315_s8 + $0x58] sm:$0xff] %v1454_v58  ;;  %v1438_v33 = vadd.f32 %v1402_v37, %v2750_v5  ;;  %2021 = vlog2.f32 %v1346_v13 }
 0x3e4   : > { %v2010_v1 = vpop.eup %2009  ;;  %1499 = vst [vmem:[%s2315_s8 + $0xc0] sm:$0xff] %v1467_v26  ;;  %v1421_v60 = vadd.f32 %v1368_v6, %v2744_v34  ;;  %2023 = vlog2.f32 %v1312_v62 }
 0x3e5   : > { %v2012_v3 = vpop.eup %2011  ;;  %v1470_v29 = vsub.f32 %v2943_v42, %v1438_v33  ;;  %v1374_v39 = vmul.f32 0.6931472, %v2010_v1 }
 0x3e6   : > { %v1453_v41 = vsub.f32 %v2944_v17, %v1421_v60  ;;  %v1400_v45 = vmul.f32 0.6931472, %v2012_v3  ;;  %v1344_v35 = vpop.xlane.xlu0 %1343 }
 0x3e7   : > { %1502 = vst [vmem:[%s2315_s8 + $0xd8] sm:$0xff] %v1470_v29  ;;  %v1424_v5 = vadd.f32 %v1374_v39, %v2758_v49  ;;  %2025 = vlog2.f32 %v1344_v35 }
 0x3e8   : > { %v2014_v27 = vpop.eup %2013  ;;  %1485 = vst [vmem:[%s2315_s8 + $0x50] sm:$0xff] %v1453_v41  ;;  %v1437_v16 = vadd.f32 %v1400_v45, %v2752_v8 }
 0x3e9   : > { %v2016_v34 = vpop.eup %2015  ;;  %v1456_v46 = vsub.f32 %v2945_v55, %v1424_v5  ;;  %v1406_v32 = vmul.f32 0.6931472, %v2014_v27 }
 0x3ea   : > { %v1469_v23 = vsub.f32 %v2946_v43, %v1437_v16  ;;  %v1372_v19 = vmul.f32 0.6931472, %v2016_v34 }
 0x3eb   : > { %1488 = vst [vmem:[%s2315_s8 + $0x68] sm:$0xff] %v1456_v46  ;;  %v1440_v11 = vadd.f32 %v1406_v32, %v2766_v12 }
 0x3ec   : > { %v2018_v61 = vpop.eup %2017  ;;  %1501 = vst [vmem:[%s2315_s8 + $0xd0] sm:$0xff] %v1469_v23  ;;  %v1423_v49 = vadd.f32 %v1372_v19, %v2760_v56  ;;  %v2949_v56 = vld [vmem:[#allocation14_spill] sm:$0xff] }
 0x3ed   : > { %v2020_v40 = vpop.eup %2019  ;;  %v1472_v8 = vsub.f32 %v2947_v44, %v1440_v11  ;;  %v1378_v21 = vmul.f32 0.6931472, %v2018_v61 }
 0x3ee   : > { %v1455_v52 = vsub.f32 %v2948_v50, %v1423_v49  ;;  %v1404_v47 = vmul.f32 0.6931472, %v2020_v40 }
 0x3ef   : > { %1504 = vst [vmem:[%s2315_s8 + $0xe8] sm:$0xff] %v1472_v8  ;;  %v1426_v10 = vadd.f32 %v1378_v21, %v2774_v59 }
 0x3f0   : > { %v2022_v30 = vpop.eup %2021  ;;  %1487 = vst [vmem:[%s2315_s8 + $0x60] sm:$0xff] %v1455_v52  ;;  %v1439_v12 = vadd.f32 %v1404_v47, %v2768_v25  ;;  %v2952_v25 = vld [vmem:[#allocation15_spill] sm:$0xff] }
 0x3f1   : > { %v2024_v2 = vpop.eup %2023  ;;  %v1458_v28 = vsub.f32 %v2949_v56, %v1426_v10  ;;  %v1410_v36 = vmul.f32 0.6931472, %v2022_v30 }
 0x3f2   : > { %v1471_v7 = vsub.f32 %v2950_v4, %v1439_v12  ;;  %v1376_v54 = vmul.f32 0.6931472, %v2024_v2 }
 0x3f3   : > { %1490 = vst [vmem:[%s2315_s8 + $0x78] sm:$0xff] %v1458_v28  ;;  %v1442_v15 = vadd.f32 %v1410_v36, %v2782_v63 }
 0x3f4   : > { %v2026_v20 = vpop.eup %2025  ;;  %1503 = vst [vmem:[%s2315_s8 + $0xe0] sm:$0xff] %v1471_v7  ;;  %v1425_v59 = vadd.f32 %v1376_v54, %v2776_v48 }
 0x3f5   : > { %v1474_v0 = vsub.f32 %v2951_v51, %v1442_v15  ;;  %v1408_v31 = vmul.f32 0.6931472, %v2026_v20 }
 0x3f6   : > { %v1457_v53 = vsub.f32 %v2952_v25, %v1425_v59 }
 0x3f7   : > { %1506 = vst [vmem:[%s2315_s8 + $0xf8] sm:$0xff] %v1474_v0  ;;  %v1441_v57 = vadd.f32 %v1408_v31, %v2784_v9 }
 0x3f8   : > { %1489 = vst [vmem:[%s2315_s8 + $0x70] sm:$0xff] %v1457_v53 }
 0x3f9   : > { %v1473_v18 = vsub.f32 %v2953_v14, %v1441_v57 }
 0x3fb   : > { %1505 = vst [vmem:[%s2315_s8 + $0xf0] sm:$0xff] %v1473_v18 }
 0x3fc PF: > { %s14_s21 = sadd.s32 1, %s2081_s21   ;;  %s2954_s15 = smov %s2061_s16 }
 0x3fd   : > { %p11_p0 = scmp.ge.s32.totalorder %s14_s21, 6   ;;  %s2955_s16 = smov %s2161_s28 }
 0x3fe   : > { %s2956_s17 = smov %s2073_s19  ;;  %s2957_s18 = smov %s2077_s20 }
 0x3ff   : > { %s2958_s19 = smov %s2961_s22  ;;  %s2959_s20 = smov %s2965_s23 }
 0x400   :  { %13 = sbr.rel (!%p11_p0) target bundleno = 4 (0x4), region = 105 }

// kernel: drw_net_forward.2
= control target key start
LH: loop header
LB: loop body
LE: loop exit
PB: predicated region body
PF: predicated region fallthrough
CT: control target
= control target key end

     0   :  { %s5300_s0 = inlined_call_operand.vmem [shape: f32[4], index: 0, kind: input, shape index: {}]   ;;  %s5301_s1 = inlined_call_operand.<no memory space> [shape: f32[1], index: 1, kind: input, shape index: {}]   ;;  %s5302_s2 = inlined_call_operand.vmem [shape: f32[4,512,512], index: 2, kind: input, shape index: {}]   ;;  %s5303_s3 = inlined_call_operand.vmem [shape: f32[512,128], index: 3, kind: input, shape index: {}]   ;;  %s5304_s4 = inlined_call_operand.vmem [shape: f32[128,128], index: 4, kind: input, shape index: {}]   ;;  %s5305_s5 = inlined_call_operand.vmem [shape: f32[1,128], index: 5, kind: input, shape index: {}]   ;;  %s5306_s6 = inlined_call_operand.vmem [shape: f32[512,128], index: 6, kind: input, shape index: {}]   ;;  %s5307_s7 = inlined_call_operand.vmem [shape: f32[512,512], index: 7, kind: output, shape index: {0}]   ;;  %s5308_s8 = inlined_call_operand.vmem [shape: f32[512,128], index: 8, kind: output, shape index: {1}]  }
   0x1   :  { %5311 = sst [smem:[#allocation10_spill]] %s5300_s0 }
   0x2   :  { %5312 = sst [smem:[#allocation11_spill]] %s5302_s2 }
   0x3   :  { %14 = sst [smem:[#allocation3]] %s5301_s1 }
   0x4   :  { %15 = vsyncpa [#allocation5], 0  ;;  %s3518_s29 = smov 0   ;;  %s3520_s30 = smov 0  }
   0x5   :  { %s3522_s9 = smov 0   ;;  %s3524_s10 = smov 0  }
   0x6   :  { %s3526_s11 = smov 0   ;;  %s3528_s12 = smov 0  }
   0x7   :  { %s3530_s13 = smov 0  }
   0x8 LB: > { %s2872_s1 = sadd.s32 4294967295, %s3465_s13   ;;  %s30_s14 = sadd.s32 1, %s3457_s11  ;;  %s3465_s13 = sphi %s3530_s13, %s21_s13   ;;  %s3461_s12 = sphi %s3528_s12, %s5328_s12   ;;  %s3457_s11 = sphi %s3526_s11, %s5327_s11   ;;  %s3453_s10 = sphi %s3524_s10, %s5326_s10   ;;  %s3449_s9 = sphi %s3522_s9, %s5325_s9   ;;  %s3445_s30 = sphi %s3520_s30, %s5324_s30   ;;  %s3441_s29 = sphi %s3518_s29, %s5323_s29  }
   0x9   : > { %p31_p0 = scmp.ge.s32.totalorder %s30_s14, 2  ;;  %s33_s15 = sadd.s32 1, %s3461_s12 }
   0xa   : > { %s84_s16 = sadd.s32 1, %s3445_s30  ;;  %p91_p1 = scmp.ne.s32.totalorder %s3445_s30, %s3441_s29 }
   0xb   : > { %s5330_s14 = smov (%p31_p0, %s30_s14), 0  ;;  %s5332_s15 = smov (!%p31_p0, %s33_s15), %s3461_s12 }
   0xc   : > { %s80_s17 = ssub.s32 %s3457_s11, %s5330_s14  ;;  %p92_p2 = scmp.eq.s32.totalorder %s3465_s13, 0 }
   0xd   : > { %p35_p3 = scmp.ge.s32.totalorder %s5332_s15, 2  ;;  %p217_p4 = scmp.eq.s32.totalorder %s2872_s1, 3 }
   0xe   : > { %p3565_p5 = por %p92_p2, %p91_p1  ;;  %p2874_p6 = scmp.ge.s32.totalorder %s3465_s13, 1 }
   0xf   : > { %s5334_s15 = smov (%p35_p3, %s5332_s15), 0  ;;  %p3572_p7 = por %p217_p4, %p91_p1 }
  0x10   : > { %5314 = sst [smem:[#allocation9_spill]] %s5334_s15  ;;  %p256_p8 = scmp.lt.s32.totalorder %s3465_s13, 5 }
  0x11   : > { %s5315_s19 = scalar_select %p3572_p7, 1, 0 }
  0x12   : > { %s79_s20 = ssub.s32 %s3461_s12, %s5334_s15  ;;  %p3579_p9 = pnand %p2874_p6, %p256_p8 }
  0x13   : > { %s81_s21 = sor.u32 %s80_s17, %s79_s20  ;;  %p3583_p11 = scmp.eq.s32.totalorder %s2872_s1, 0 }
  0x14   : > { %s5316_s22 = scalar_select %p3579_p9, 1, 0 }
  0x15   : > { %p82_p10 = scmp.eq.s32.totalorder %s81_s21, 0  ;;  %p3327_p12 = pneg %p3579_p9 }
  0x16   : > { %s5318_s0 = sld [smem:[#allocation10_spill]] }
  0x17   : > { %s3593_s27 = scalar_select %p82_p10, %s3445_s30, %s84_s16  }
  0x18   : > { %p3328_p13 = pnand %p3583_p11, %p3327_p12 }
  0x1a   : > { %p3394_p1 = pneg %p3328_p13 }
  0x1c   : > { %s269_s26 = sshll.u32 %s5318_s0, 4  ;;  %s270_s26 = int_to_ptr.vmem [resolvable:$true] %s269_s26 }
  0x1d   : > { %s3392_s28 = scalar_lea.vmem %s270_s26, 16  ;;  %p3400_p4 = scmp.lt.s32.totalorder %s270_s26, %s270_s26 }
  0x1e   : > { %p3393_p0 = scmp.ne.s32.totalorder %s270_s26, %s3392_s28  ;;  %p3401_p6 = scmp.lt.s32.totalorder %s3392_s28, %s3392_s28 }
  0x20   : > { %p3395_p2 = pnand %p3394_p1, %p3393_p0  ;;  %p3402_p8 = por %p3401_p6, %p3400_p4 }
  0x22   : > { %p3396_p3 = pneg %p3395_p2 }
  0x24   : > { %p3403_p7 = pnand %p3402_p8, %p3396_p3 }
  0x26   : > { %3406 = shalt.err (!%p3403_p7)
}
  0x27   : > { %s3467_s1 = smov [#allocation4]   ;;  %p2876_p9 = scmp.ge.s32.totalorder %s3465_s13, 4 }
  0x28   : > { %3330 = dma.vmem_to_smem (!%p3328_p13), %s270_s26, 16, %s3467_s1, [#allocation5]  }
  0x29   : > { %285 = sbr.rel (%p2876_p9) target bundleno = 184 (0xb8), region = 32 }
  0x2e   : > { %288 = sbr.rel (!%p3565_p5) target bundleno = 184 (0xb8), region = 36  ;;  %s290_s16 = sand.u32 (%p3565_p5), 1, %s3445_s30  }
  0x2f   : > { %s2879_s17 = sshll.u32 (%p3565_p5), %s3457_s11, 1  ;;  %s2877_s20 = sshll.u32 (%p3565_p5), %s290_s16, 11 }
  0x30   : > { %s3097_s21 = sshll.u32 (%p3565_p5), %s3461_s12, 7  ;;  %s5319_s2 = sld [smem:[#allocation11_spill]] (%p3565_p5) }
  0x31   : > { %s296_s24 = sadd.s32 (%p3565_p5), %s3097_s21, %s2879_s17  ;;  %s3611_s18 = scalar_lea.vmem (%p3565_p5), [#allocation6], %s2877_s20 }
  0x32   : > { %s2881_s25 = sshll.u32 (%p3565_p5), %s296_s24, 3 }
  0x36   : > { %s3606_s15 = scalar_lea.vmem %s5319_s2, %s2881_s25 }
  0x37   : > { %v311_v0 = vld [vmem:[%s3606_s15] sm:$0xff]  ;;  %v313_v1 = vld [vmem:[%s3606_s15 + $0x8] sm:$0xff] }
  0x38   : > { %v315_v2 = vld [vmem:[%s3606_s15 + $0x20] sm:$0xff]  ;;  %312 = vst [vmem:[%s3611_s18] sm:$0xff] %v311_v0  ;;  %314 = vst [vmem:[%s3611_s18 + $0x8] sm:$0xff] %v313_v1  ;;  %v317_v3 = vld [vmem:[%s3606_s15 + $0x28] sm:$0xff] }
  0x39   : > { %316 = vst [vmem:[%s3611_s18 + $0x10] sm:$0xff] %v315_v2  ;;  %v319_v4 = vld [vmem:[%s3606_s15 + $0x40] sm:$0xff]  ;;  %v321_v5 = vld [vmem:[%s3606_s15 + $0x48] sm:$0xff]  ;;  %318 = vst [vmem:[%s3611_s18 + $0x18] sm:$0xff] %v317_v3 }
  0x3a   : > { %320 = vst [vmem:[%s3611_s18 + $0x20] sm:$0xff] %v319_v4  ;;  %322 = vst [vmem:[%s3611_s18 + $0x28] sm:$0xff] %v321_v5  ;;  %v323_v6 = vld [vmem:[%s3606_s15 + $0x60] sm:$0xff]  ;;  %v325_v7 = vld [vmem:[%s3606_s15 + $0x68] sm:$0xff] }
  0x3b   : > { %v327_v8 = vld [vmem:[%s3606_s15 + $0x80] sm:$0xff]  ;;  %324 = vst [vmem:[%s3611_s18 + $0x30] sm:$0xff] %v323_v6  ;;  %326 = vst [vmem:[%s3611_s18 + $0x38] sm:$0xff] %v325_v7  ;;  %v329_v9 = vld [vmem:[%s3606_s15 + $0x88] sm:$0xff] }
  0x3c   : > { %328 = vst [vmem:[%s3611_s18 + $0x40] sm:$0xff] %v327_v8  ;;  %v331_v10 = vld [vmem:[%s3606_s15 + $0xa0] sm:$0xff]  ;;  %v333_v11 = vld [vmem:[%s3606_s15 + $0xa8] sm:$0xff]  ;;  %330 = vst [vmem:[%s3611_s18 + $0x48] sm:$0xff] %v329_v9 }
  0x3d   : > { %332 = vst [vmem:[%s3611_s18 + $0x50] sm:$0xff] %v331_v10  ;;  %334 = vst [vmem:[%s3611_s18 + $0x58] sm:$0xff] %v333_v11  ;;  %v335_v12 = vld [vmem:[%s3606_s15 + $0xc0] sm:$0xff]  ;;  %v337_v13 = vld [vmem:[%s3606_s15 + $0xc8] sm:$0xff] }
  0x3e   : > { %v339_v14 = vld [vmem:[%s3606_s15 + $0xe0] sm:$0xff]  ;;  %336 = vst [vmem:[%s3611_s18 + $0x60] sm:$0xff] %v335_v12  ;;  %338 = vst [vmem:[%s3611_s18 + $0x68] sm:$0xff] %v337_v13  ;;  %v341_v15 = vld [vmem:[%s3606_s15 + $0xe8] sm:$0xff] }
  0x3f   : > { %340 = vst [vmem:[%s3611_s18 + $0x70] sm:$0xff] %v339_v14  ;;  %v343_v16 = vld [vmem:[%s3606_s15 + $0x100] sm:$0xff]  ;;  %v345_v17 = vld [vmem:[%s3606_s15 + $0x108] sm:$0xff]  ;;  %342 = vst [vmem:[%s3611_s18 + $0x78] sm:$0xff] %v341_v15 }
  0x40   : > { %344 = vst [vmem:[%s3611_s18 + $0x80] sm:$0xff] %v343_v16  ;;  %346 = vst [vmem:[%s3611_s18 + $0x88] sm:$0xff] %v345_v17  ;;  %v347_v18 = vld [vmem:[%s3606_s15 + $0x120] sm:$0xff]  ;;  %v349_v19 = vld [vmem:[%s3606_s15 + $0x128] sm:$0xff] }
  0x41   : > { %v351_v20 = vld [vmem:[%s3606_s15 + $0x140] sm:$0xff]  ;;  %348 = vst [vmem:[%s3611_s18 + $0x90] sm:$0xff] %v347_v18  ;;  %350 = vst [vmem:[%s3611_s18 + $0x98] sm:$0xff] %v349_v19  ;;  %v353_v21 = vld [vmem:[%s3606_s15 + $0x148] sm:$0xff] }
  0x42   : > { %352 = vst [vmem:[%s3611_s18 + $0xa0] sm:$0xff] %v351_v20  ;;  %v355_v22 = vld [vmem:[%s3606_s15 + $0x160] sm:$0xff]  ;;  %v357_v23 = vld [vmem:[%s3606_s15 + $0x168] sm:$0xff]  ;;  %354 = vst [vmem:[%s3611_s18 + $0xa8] sm:$0xff] %v353_v21 }
  0x43   : > { %356 = vst [vmem:[%s3611_s18 + $0xb0] sm:$0xff] %v355_v22  ;;  %358 = vst [vmem:[%s3611_s18 + $0xb8] sm:$0xff] %v357_v23  ;;  %v359_v24 = vld [vmem:[%s3606_s15 + $0x180] sm:$0xff]  ;;  %v361_v25 = vld [vmem:[%s3606_s15 + $0x188] sm:$0xff] }
  0x44   : > { %v363_v26 = vld [vmem:[%s3606_s15 + $0x1a0] sm:$0xff]  ;;  %360 = vst [vmem:[%s3611_s18 + $0xc0] sm:$0xff] %v359_v24  ;;  %362 = vst [vmem:[%s3611_s18 + $0xc8] sm:$0xff] %v361_v25  ;;  %v365_v27 = vld [vmem:[%s3606_s15 + $0x1a8] sm:$0xff] }
  0x45   : > { %364 = vst [vmem:[%s3611_s18 + $0xd0] sm:$0xff] %v363_v26  ;;  %v367_v28 = vld [vmem:[%s3606_s15 + $0x1c0] sm:$0xff]  ;;  %v369_v29 = vld [vmem:[%s3606_s15 + $0x1c8] sm:$0xff]  ;;  %366 = vst [vmem:[%s3611_s18 + $0xd8] sm:$0xff] %v365_v27 }
  0x46   : > { %368 = vst [vmem:[%s3611_s18 + $0xe0] sm:$0xff] %v367_v28  ;;  %370 = vst [vmem:[%s3611_s18 + $0xe8] sm:$0xff] %v369_v29  ;;  %v371_v30 = vld [vmem:[%s3606_s15 + $0x1e0] sm:$0xff]  ;;  %v373_v31 = vld [vmem:[%s3606_s15 + $0x1e8] sm:$0xff] }
  0x47   : > { %v375_v32 = vld [vmem:[%s3606_s15 + $0x200] sm:$0xff]  ;;  %372 = vst [vmem:[%s3611_s18 + $0xf0] sm:$0xff] %v371_v30  ;;  %374 = vst [vmem:[%s3611_s18 + $0xf8] sm:$0xff] %v373_v31  ;;  %v377_v33 = vld [vmem:[%s3606_s15 + $0x208] sm:$0xff] }
  0x48   : > { %376 = vst [vmem:[%s3611_s18 + $0x100] sm:$0xff] %v375_v32  ;;  %v379_v34 = vld [vmem:[%s3606_s15 + $0x220] sm:$0xff]  ;;  %v381_v35 = vld [vmem:[%s3606_s15 + $0x228] sm:$0xff]  ;;  %378 = vst [vmem:[%s3611_s18 + $0x108] sm:$0xff] %v377_v33 }
  0x49   : > { %380 = vst [vmem:[%s3611_s18 + $0x110] sm:$0xff] %v379_v34  ;;  %382 = vst [vmem:[%s3611_s18 + $0x118] sm:$0xff] %v381_v35  ;;  %v383_v36 = vld [vmem:[%s3606_s15 + $0x240] sm:$0xff]  ;;  %v385_v37 = vld [vmem:[%s3606_s15 + $0x248] sm:$0xff] }
  0x4a   : > { %v387_v38 = vld [vmem:[%s3606_s15 + $0x260] sm:$0xff]  ;;  %384 = vst [vmem:[%s3611_s18 + $0x120] sm:$0xff] %v383_v36  ;;  %386 = vst [vmem:[%s3611_s18 + $0x128] sm:$0xff] %v385_v37  ;;  %v389_v39 = vld [vmem:[%s3606_s15 + $0x268] sm:$0xff] }
  0x4b   : > { %388 = vst [vmem:[%s3611_s18 + $0x130] sm:$0xff] %v387_v38  ;;  %v391_v40 = vld [vmem:[%s3606_s15 + $0x280] sm:$0xff]  ;;  %v393_v41 = vld [vmem:[%s3606_s15 + $0x288] sm:$0xff]  ;;  %390 = vst [vmem:[%s3611_s18 + $0x138] sm:$0xff] %v389_v39 }
  0x4c   : > { %392 = vst [vmem:[%s3611_s18 + $0x140] sm:$0xff] %v391_v40  ;;  %394 = vst [vmem:[%s3611_s18 + $0x148] sm:$0xff] %v393_v41  ;;  %v395_v42 = vld [vmem:[%s3606_s15 + $0x2a0] sm:$0xff]  ;;  %v397_v43 = vld [vmem:[%s3606_s15 + $0x2a8] sm:$0xff] }
  0x4d   : > { %v399_v44 = vld [vmem:[%s3606_s15 + $0x2c0] sm:$0xff]  ;;  %396 = vst [vmem:[%s3611_s18 + $0x150] sm:$0xff] %v395_v42  ;;  %398 = vst [vmem:[%s3611_s18 + $0x158] sm:$0xff] %v397_v43  ;;  %v401_v45 = vld [vmem:[%s3606_s15 + $0x2c8] sm:$0xff] }
  0x4e   : > { %400 = vst [vmem:[%s3611_s18 + $0x160] sm:$0xff] %v399_v44  ;;  %v403_v46 = vld [vmem:[%s3606_s15 + $0x2e0] sm:$0xff]  ;;  %v405_v47 = vld [vmem:[%s3606_s15 + $0x2e8] sm:$0xff]  ;;  %402 = vst [vmem:[%s3611_s18 + $0x168] sm:$0xff] %v401_v45 }
  0x4f   : > { %404 = vst [vmem:[%s3611_s18 + $0x170] sm:$0xff] %v403_v46  ;;  %406 = vst [vmem:[%s3611_s18 + $0x178] sm:$0xff] %v405_v47  ;;  %v407_v48 = vld [vmem:[%s3606_s15 + $0x300] sm:$0xff]  ;;  %v409_v49 = vld [vmem:[%s3606_s15 + $0x308] sm:$0xff] }
  0x50   : > { %v411_v50 = vld [vmem:[%s3606_s15 + $0x320] sm:$0xff]  ;;  %408 = vst [vmem:[%s3611_s18 + $0x180] sm:$0xff] %v407_v48  ;;  %410 = vst [vmem:[%s3611_s18 + $0x188] sm:$0xff] %v409_v49  ;;  %v413_v51 = vld [vmem:[%s3606_s15 + $0x328] sm:$0xff] }
  0x51   : > { %412 = vst [vmem:[%s3611_s18 + $0x190] sm:$0xff] %v411_v50  ;;  %v415_v52 = vld [vmem:[%s3606_s15 + $0x340] sm:$0xff]  ;;  %v417_v53 = vld [vmem:[%s3606_s15 + $0x348] sm:$0xff]  ;;  %414 = vst [vmem:[%s3611_s18 + $0x198] sm:$0xff] %v413_v51 }
  0x52   : > { %416 = vst [vmem:[%s3611_s18 + $0x1a0] sm:$0xff] %v415_v52  ;;  %418 = vst [vmem:[%s3611_s18 + $0x1a8] sm:$0xff] %v417_v53  ;;  %v419_v54 = vld [vmem:[%s3606_s15 + $0x360] sm:$0xff]  ;;  %v421_v55 = vld [vmem:[%s3606_s15 + $0x368] sm:$0xff] }
  0x53   : > { %v423_v56 = vld [vmem:[%s3606_s15 + $0x380] sm:$0xff]  ;;  %420 = vst [vmem:[%s3611_s18 + $0x1b0] sm:$0xff] %v419_v54  ;;  %422 = vst [vmem:[%s3611_s18 + $0x1b8] sm:$0xff] %v421_v55  ;;  %v425_v57 = vld [vmem:[%s3606_s15 + $0x388] sm:$0xff] }
  0x54   : > { %424 = vst [vmem:[%s3611_s18 + $0x1c0] sm:$0xff] %v423_v56  ;;  %v427_v58 = vld [vmem:[%s3606_s15 + $0x3a0] sm:$0xff]  ;;  %v429_v59 = vld [vmem:[%s3606_s15 + $0x3a8] sm:$0xff]  ;;  %426 = vst [vmem:[%s3611_s18 + $0x1c8] sm:$0xff] %v425_v57 }
  0x55   : > { %428 = vst [vmem:[%s3611_s18 + $0x1d0] sm:$0xff] %v427_v58  ;;  %430 = vst [vmem:[%s3611_s18 + $0x1d8] sm:$0xff] %v429_v59  ;;  %v431_v60 = vld [vmem:[%s3606_s15 + $0x3c0] sm:$0xff]  ;;  %v433_v61 = vld [vmem:[%s3606_s15 + $0x3c8] sm:$0xff] }
  0x56   : > { %v435_v62 = vld [vmem:[%s3606_s15 + $0x3e0] sm:$0xff]  ;;  %432 = vst [vmem:[%s3611_s18 + $0x1e0] sm:$0xff] %v431_v60  ;;  %434 = vst [vmem:[%s3611_s18 + $0x1e8] sm:$0xff] %v433_v61  ;;  %v437_v63 = vld [vmem:[%s3606_s15 + $0x3e8] sm:$0xff] }
  0x57   : > { %436 = vst [vmem:[%s3611_s18 + $0x1f0] sm:$0xff] %v435_v62  ;;  %v439_v0 = vld [vmem:[%s3606_s15 + $0x800] sm:$0xff]  ;;  %v441_v1 = vld [vmem:[%s3606_s15 + $0x808] sm:$0xff]  ;;  %438 = vst [vmem:[%s3611_s18 + $0x1f8] sm:$0xff] %v437_v63 }
  0x58   : > { %440 = vst [vmem:[%s3611_s18 + $0x200] sm:$0xff] %v439_v0  ;;  %442 = vst [vmem:[%s3611_s18 + $0x208] sm:$0xff] %v441_v1  ;;  %v443_v2 = vld [vmem:[%s3606_s15 + $0x820] sm:$0xff]  ;;  %v445_v3 = vld [vmem:[%s3606_s15 + $0x828] sm:$0xff] }
  0x59   : > { %v447_v4 = vld [vmem:[%s3606_s15 + $0x840] sm:$0xff]  ;;  %444 = vst [vmem:[%s3611_s18 + $0x210] sm:$0xff] %v443_v2  ;;  %446 = vst [vmem:[%s3611_s18 + $0x218] sm:$0xff] %v445_v3  ;;  %v449_v5 = vld [vmem:[%s3606_s15 + $0x848] sm:$0xff] }
  0x5a   : > { %448 = vst [vmem:[%s3611_s18 + $0x220] sm:$0xff] %v447_v4  ;;  %v451_v6 = vld [vmem:[%s3606_s15 + $0x860] sm:$0xff]  ;;  %v453_v7 = vld [vmem:[%s3606_s15 + $0x868] sm:$0xff]  ;;  %450 = vst [vmem:[%s3611_s18 + $0x228] sm:$0xff] %v449_v5 }
  0x5b   : > { %452 = vst [vmem:[%s3611_s18 + $0x230] sm:$0xff] %v451_v6  ;;  %454 = vst [vmem:[%s3611_s18 + $0x238] sm:$0xff] %v453_v7  ;;  %v455_v8 = vld [vmem:[%s3606_s15 + $0x880] sm:$0xff]  ;;  %v457_v9 = vld [vmem:[%s3606_s15 + $0x888] sm:$0xff] }
  0x5c   : > { %v459_v10 = vld [vmem:[%s3606_s15 + $0x8a0] sm:$0xff]  ;;  %456 = vst [vmem:[%s3611_s18 + $0x240] sm:$0xff] %v455_v8  ;;  %458 = vst [vmem:[%s3611_s18 + $0x248] sm:$0xff] %v457_v9  ;;  %v461_v11 = vld [vmem:[%s3606_s15 + $0x8a8] sm:$0xff] }
  0x5d   : > { %460 = vst [vmem:[%s3611_s18 + $0x250] sm:$0xff] %v459_v10  ;;  %v463_v12 = vld [vmem:[%s3606_s15 + $0x8c0] sm:$0xff]  ;;  %v465_v13 = vld [vmem:[%s3606_s15 + $0x8c8] sm:$0xff]  ;;  %462 = vst [vmem:[%s3611_s18 + $0x258] sm:$0xff] %v461_v11 }
  0x5e   : > { %464 = vst [vmem:[%s3611_s18 + $0x260] sm:$0xff] %v463_v12  ;;  %466 = vst [vmem:[%s3611_s18 + $0x268] sm:$0xff] %v465_v13  ;;  %v467_v14 = vld [vmem:[%s3606_s15 + $0x8e0] sm:$0xff]  ;;  %v469_v15 = vld [vmem:[%s3606_s15 + $0x8e8] sm:$0xff] }
  0x5f   : > { %v471_v16 = vld [vmem:[%s3606_s15 + $0x900] sm:$0xff]  ;;  %468 = vst [vmem:[%s3611_s18 + $0x270] sm:$0xff] %v467_v14  ;;  %470 = vst [vmem:[%s3611_s18 + $0x278] sm:$0xff] %v469_v15  ;;  %v473_v17 = vld [vmem:[%s3606_s15 + $0x908] sm:$0xff] }
  0x60   : > { %472 = vst [vmem:[%s3611_s18 + $0x280] sm:$0xff] %v471_v16  ;;  %v475_v18 = vld [vmem:[%s3606_s15 + $0x920] sm:$0xff]  ;;  %v477_v19 = vld [vmem:[%s3606_s15 + $0x928] sm:$0xff]  ;;  %474 = vst [vmem:[%s3611_s18 + $0x288] sm:$0xff] %v473_v17 }
  0x61   : > { %476 = vst [vmem:[%s3611_s18 + $0x290] sm:$0xff] %v475_v18  ;;  %478 = vst [vmem:[%s3611_s18 + $0x298] sm:$0xff] %v477_v19  ;;  %v479_v20 = vld [vmem:[%s3606_s15 + $0x940] sm:$0xff]  ;;  %v481_v21 = vld [vmem:[%s3606_s15 + $0x948] sm:$0xff] }
  0x62   : > { %v483_v22 = vld [vmem:[%s3606_s15 + $0x960] sm:$0xff]  ;;  %480 = vst [vmem:[%s3611_s18 + $0x2a0] sm:$0xff] %v479_v20  ;;  %482 = vst [vmem:[%s3611_s18 + $0x2a8] sm:$0xff] %v481_v21  ;;  %v485_v23 = vld [vmem:[%s3606_s15 + $0x968] sm:$0xff] }
  0x63   : > { %484 = vst [vmem:[%s3611_s18 + $0x2b0] sm:$0xff] %v483_v22  ;;  %v487_v24 = vld [vmem:[%s3606_s15 + $0x980] sm:$0xff]  ;;  %v489_v25 = vld [vmem:[%s3606_s15 + $0x988] sm:$0xff]  ;;  %486 = vst [vmem:[%s3611_s18 + $0x2b8] sm:$0xff] %v485_v23 }
  0x64   : > { %488 = vst [vmem:[%s3611_s18 + $0x2c0] sm:$0xff] %v487_v24  ;;  %490 = vst [vmem:[%s3611_s18 + $0x2c8] sm:$0xff] %v489_v25  ;;  %v491_v26 = vld [vmem:[%s3606_s15 + $0x9a0] sm:$0xff]  ;;  %v493_v27 = vld [vmem:[%s3606_s15 + $0x9a8] sm:$0xff] }
  0x65   : > { %v495_v28 = vld [vmem:[%s3606_s15 + $0x9c0] sm:$0xff]  ;;  %492 = vst [vmem:[%s3611_s18 + $0x2d0] sm:$0xff] %v491_v26  ;;  %494 = vst [vmem:[%s3611_s18 + $0x2d8] sm:$0xff] %v493_v27  ;;  %v497_v29 = vld [vmem:[%s3606_s15 + $0x9c8] sm:$0xff] }
  0x66   : > { %496 = vst [vmem:[%s3611_s18 + $0x2e0] sm:$0xff] %v495_v28  ;;  %v499_v30 = vld [vmem:[%s3606_s15 + $0x9e0] sm:$0xff]  ;;  %v501_v31 = vld [vmem:[%s3606_s15 + $0x9e8] sm:$0xff]  ;;  %498 = vst [vmem:[%s3611_s18 + $0x2e8] sm:$0xff] %v497_v29 }
  0x67   : > { %500 = vst [vmem:[%s3611_s18 + $0x2f0] sm:$0xff] %v499_v30  ;;  %502 = vst [vmem:[%s3611_s18 + $0x2f8] sm:$0xff] %v501_v31  ;;  %v503_v32 = vld [vmem:[%s3606_s15 + $0xa00] sm:$0xff]  ;;  %v505_v33 = vld [vmem:[%s3606_s15 + $0xa08] sm:$0xff] }
  0x68   : > { %v507_v34 = vld [vmem:[%s3606_s15 + $0xa20] sm:$0xff]  ;;  %504 = vst [vmem:[%s3611_s18 + $0x300] sm:$0xff] %v503_v32  ;;  %506 = vst [vmem:[%s3611_s18 + $0x308] sm:$0xff] %v505_v33  ;;  %v509_v35 = vld [vmem:[%s3606_s15 + $0xa28] sm:$0xff] }
  0x69   : > { %508 = vst [vmem:[%s3611_s18 + $0x310] sm:$0xff] %v507_v34  ;;  %v511_v36 = vld [vmem:[%s3606_s15 + $0xa40] sm:$0xff]  ;;  %v513_v37 = vld [vmem:[%s3606_s15 + $0xa48] sm:$0xff]  ;;  %510 = vst [vmem:[%s3611_s18 + $0x318] sm:$0xff] %v509_v35 }
  0x6a   : > { %512 = vst [vmem:[%s3611_s18 + $0x320] sm:$0xff] %v511_v36  ;;  %514 = vst [vmem:[%s3611_s18 + $0x328] sm:$0xff] %v513_v37  ;;  %v515_v38 = vld [vmem:[%s3606_s15 + $0xa60] sm:$0xff]  ;;  %v517_v39 = vld [vmem:[%s3606_s15 + $0xa68] sm:$0xff] }
  0x6b   : > { %v519_v40 = vld [vmem:[%s3606_s15 + $0xa80] sm:$0xff]  ;;  %516 = vst [vmem:[%s3611_s18 + $0x330] sm:$0xff] %v515_v38  ;;  %518 = vst [vmem:[%s3611_s18 + $0x338] sm:$0xff] %v517_v39  ;;  %v521_v41 = vld [vmem:[%s3606_s15 + $0xa88] sm:$0xff] }
  0x6c   : > { %520 = vst [vmem:[%s3611_s18 + $0x340] sm:$0xff] %v519_v40  ;;  %v523_v42 = vld [vmem:[%s3606_s15 + $0xaa0] sm:$0xff]  ;;  %v525_v43 = vld [vmem:[%s3606_s15 + $0xaa8] sm:$0xff]  ;;  %522 = vst [vmem:[%s3611_s18 + $0x348] sm:$0xff] %v521_v41 }
  0x6d   : > { %524 = vst [vmem:[%s3611_s18 + $0x350] sm:$0xff] %v523_v42  ;;  %526 = vst [vmem:[%s3611_s18 + $0x358] sm:$0xff] %v525_v43  ;;  %v527_v44 = vld [vmem:[%s3606_s15 + $0xac0] sm:$0xff]  ;;  %v529_v45 = vld [vmem:[%s3606_s15 + $0xac8] sm:$0xff] }
  0x6e   : > { %v531_v46 = vld [vmem:[%s3606_s15 + $0xae0] sm:$0xff]  ;;  %528 = vst [vmem:[%s3611_s18 + $0x360] sm:$0xff] %v527_v44  ;;  %530 = vst [vmem:[%s3611_s18 + $0x368] sm:$0xff] %v529_v45  ;;  %v533_v47 = vld [vmem:[%s3606_s15 + $0xae8] sm:$0xff] }
  0x6f   : > { %532 = vst [vmem:[%s3611_s18 + $0x370] sm:$0xff] %v531_v46  ;;  %v535_v48 = vld [vmem:[%s3606_s15 + $0xb00] sm:$0xff]  ;;  %v537_v49 = vld [vmem:[%s3606_s15 + $0xb08] sm:$0xff]  ;;  %534 = vst [vmem:[%s3611_s18 + $0x378] sm:$0xff] %v533_v47 }
  0x70   : > { %536 = vst [vmem:[%s3611_s18 + $0x380] sm:$0xff] %v535_v48  ;;  %538 = vst [vmem:[%s3611_s18 + $0x388] sm:$0xff] %v537_v49  ;;  %v539_v50 = vld [vmem:[%s3606_s15 + $0xb20] sm:$0xff]  ;;  %v541_v51 = vld [vmem:[%s3606_s15 + $0xb28] sm:$0xff] }
  0x71   : > { %v543_v52 = vld [vmem:[%s3606_s15 + $0xb40] sm:$0xff]  ;;  %540 = vst [vmem:[%s3611_s18 + $0x390] sm:$0xff] %v539_v50  ;;  %542 = vst [vmem:[%s3611_s18 + $0x398] sm:$0xff] %v541_v51  ;;  %v545_v53 = vld [vmem:[%s3606_s15 + $0xb48] sm:$0xff] }
  0x72   : > { %544 = vst [vmem:[%s3611_s18 + $0x3a0] sm:$0xff] %v543_v52  ;;  %v547_v54 = vld [vmem:[%s3606_s15 + $0xb60] sm:$0xff]  ;;  %v549_v55 = vld [vmem:[%s3606_s15 + $0xb68] sm:$0xff]  ;;  %546 = vst [vmem:[%s3611_s18 + $0x3a8] sm:$0xff] %v545_v53 }
  0x73   : > { %548 = vst [vmem:[%s3611_s18 + $0x3b0] sm:$0xff] %v547_v54  ;;  %550 = vst [vmem:[%s3611_s18 + $0x3b8] sm:$0xff] %v549_v55  ;;  %v551_v56 = vld [vmem:[%s3606_s15 + $0xb80] sm:$0xff]  ;;  %v553_v57 = vld [vmem:[%s3606_s15 + $0xb88] sm:$0xff] }
  0x74   : > { %v555_v58 = vld [vmem:[%s3606_s15 + $0xba0] sm:$0xff]  ;;  %552 = vst [vmem:[%s3611_s18 + $0x3c0] sm:$0xff] %v551_v56  ;;  %554 = vst [vmem:[%s3611_s18 + $0x3c8] sm:$0xff] %v553_v57  ;;  %v557_v59 = vld [vmem:[%s3606_s15 + $0xba8] sm:$0xff] }
  0x75   : > { %556 = vst [vmem:[%s3611_s18 + $0x3d0] sm:$0xff] %v555_v58  ;;  %v559_v60 = vld [vmem:[%s3606_s15 + $0xbc0] sm:$0xff]  ;;  %v561_v61 = vld [vmem:[%s3606_s15 + $0xbc8] sm:$0xff]  ;;  %558 = vst [vmem:[%s3611_s18 + $0x3d8] sm:$0xff] %v557_v59 }
  0x76   : > { %560 = vst [vmem:[%s3611_s18 + $0x3e0] sm:$0xff] %v559_v60  ;;  %562 = vst [vmem:[%s3611_s18 + $0x3e8] sm:$0xff] %v561_v61  ;;  %v563_v62 = vld [vmem:[%s3606_s15 + $0xbe0] sm:$0xff]  ;;  %v565_v63 = vld [vmem:[%s3606_s15 + $0xbe8] sm:$0xff] }
  0x77   : > { %v567_v0 = vld [vmem:[%s3606_s15 + $0x1000] sm:$0xff]  ;;  %564 = vst [vmem:[%s3611_s18 + $0x3f0] sm:$0xff] %v563_v62  ;;  %566 = vst [vmem:[%s3611_s18 + $0x3f8] sm:$0xff] %v565_v63  ;;  %v569_v1 = vld [vmem:[%s3606_s15 + $0x1008] sm:$0xff] }
  0x78   : > { %568 = vst [vmem:[%s3611_s18 + $0x400] sm:$0xff] %v567_v0  ;;  %v571_v2 = vld [vmem:[%s3606_s15 + $0x1020] sm:$0xff]  ;;  %v573_v3 = vld [vmem:[%s3606_s15 + $0x1028] sm:$0xff]  ;;  %570 = vst [vmem:[%s3611_s18 + $0x408] sm:$0xff] %v569_v1 }
  0x79   : > { %572 = vst [vmem:[%s3611_s18 + $0x410] sm:$0xff] %v571_v2  ;;  %574 = vst [vmem:[%s3611_s18 + $0x418] sm:$0xff] %v573_v3  ;;  %v575_v4 = vld [vmem:[%s3606_s15 + $0x1040] sm:$0xff]  ;;  %v577_v5 = vld [vmem:[%s3606_s15 + $0x1048] sm:$0xff] }
  0x7a   : > { %v579_v6 = vld [vmem:[%s3606_s15 + $0x1060] sm:$0xff]  ;;  %576 = vst [vmem:[%s3611_s18 + $0x420] sm:$0xff] %v575_v4  ;;  %578 = vst [vmem:[%s3611_s18 + $0x428] sm:$0xff] %v577_v5  ;;  %v581_v7 = vld [vmem:[%s3606_s15 + $0x1068] sm:$0xff] }
  0x7b   : > { %580 = vst [vmem:[%s3611_s18 + $0x430] sm:$0xff] %v579_v6  ;;  %v583_v8 = vld [vmem:[%s3606_s15 + $0x1080] sm:$0xff]  ;;  %v585_v9 = vld [vmem:[%s3606_s15 + $0x1088] sm:$0xff]  ;;  %582 = vst [vmem:[%s3611_s18 + $0x438] sm:$0xff] %v581_v7 }
  0x7c   : > { %584 = vst [vmem:[%s3611_s18 + $0x440] sm:$0xff] %v583_v8  ;;  %586 = vst [vmem:[%s3611_s18 + $0x448] sm:$0xff] %v585_v9  ;;  %v587_v10 = vld [vmem:[%s3606_s15 + $0x10a0] sm:$0xff]  ;;  %v589_v11 = vld [vmem:[%s3606_s15 + $0x10a8] sm:$0xff] }
  0x7d   : > { %v591_v12 = vld [vmem:[%s3606_s15 + $0x10c0] sm:$0xff]  ;;  %588 = vst [vmem:[%s3611_s18 + $0x450] sm:$0xff] %v587_v10  ;;  %590 = vst [vmem:[%s3611_s18 + $0x458] sm:$0xff] %v589_v11  ;;  %v593_v13 = vld [vmem:[%s3606_s15 + $0x10c8] sm:$0xff] }
  0x7e   : > { %592 = vst [vmem:[%s3611_s18 + $0x460] sm:$0xff] %v591_v12  ;;  %v595_v14 = vld [vmem:[%s3606_s15 + $0x10e0] sm:$0xff]  ;;  %v597_v15 = vld [vmem:[%s3606_s15 + $0x10e8] sm:$0xff]  ;;  %594 = vst [vmem:[%s3611_s18 + $0x468] sm:$0xff] %v593_v13 }
  0x7f   : > { %596 = vst [vmem:[%s3611_s18 + $0x470] sm:$0xff] %v595_v14  ;;  %598 = vst [vmem:[%s3611_s18 + $0x478] sm:$0xff] %v597_v15  ;;  %v599_v16 = vld [vmem:[%s3606_s15 + $0x1100] sm:$0xff]  ;;  %v601_v17 = vld [vmem:[%s3606_s15 + $0x1108] sm:$0xff] }
  0x80   : > { %v603_v18 = vld [vmem:[%s3606_s15 + $0x1120] sm:$0xff]  ;;  %600 = vst [vmem:[%s3611_s18 + $0x480] sm:$0xff] %v599_v16  ;;  %602 = vst [vmem:[%s3611_s18 + $0x488] sm:$0xff] %v601_v17  ;;  %v605_v19 = vld [vmem:[%s3606_s15 + $0x1128] sm:$0xff] }
  0x81   : > { %604 = vst [vmem:[%s3611_s18 + $0x490] sm:$0xff] %v603_v18  ;;  %v607_v20 = vld [vmem:[%s3606_s15 + $0x1140] sm:$0xff]  ;;  %v609_v21 = vld [vmem:[%s3606_s15 + $0x1148] sm:$0xff]  ;;  %606 = vst [vmem:[%s3611_s18 + $0x498] sm:$0xff] %v605_v19 }
  0x82   : > { %608 = vst [vmem:[%s3611_s18 + $0x4a0] sm:$0xff] %v607_v20  ;;  %610 = vst [vmem:[%s3611_s18 + $0x4a8] sm:$0xff] %v609_v21  ;;  %v611_v22 = vld [vmem:[%s3606_s15 + $0x1160] sm:$0xff]  ;;  %v613_v23 = vld [vmem:[%s3606_s15 + $0x1168] sm:$0xff] }
  0x83   : > { %v615_v24 = vld [vmem:[%s3606_s15 + $0x1180] sm:$0xff]  ;;  %612 = vst [vmem:[%s3611_s18 + $0x4b0] sm:$0xff] %v611_v22  ;;  %614 = vst [vmem:[%s3611_s18 + $0x4b8] sm:$0xff] %v613_v23  ;;  %v617_v25 = vld [vmem:[%s3606_s15 + $0x1188] sm:$0xff] }
  0x84   : > { %616 = vst [vmem:[%s3611_s18 + $0x4c0] sm:$0xff] %v615_v24  ;;  %v619_v26 = vld [vmem:[%s3606_s15 + $0x11a0] sm:$0xff]  ;;  %v621_v27 = vld [vmem:[%s3606_s15 + $0x11a8] sm:$0xff]  ;;  %618 = vst [vmem:[%s3611_s18 + $0x4c8] sm:$0xff] %v617_v25 }
  0x85   : > { %620 = vst [vmem:[%s3611_s18 + $0x4d0] sm:$0xff] %v619_v26  ;;  %622 = vst [vmem:[%s3611_s18 + $0x4d8] sm:$0xff] %v621_v27  ;;  %v623_v28 = vld [vmem:[%s3606_s15 + $0x11c0] sm:$0xff]  ;;  %v625_v29 = vld [vmem:[%s3606_s15 + $0x11c8] sm:$0xff] }
  0x86   : > { %v627_v30 = vld [vmem:[%s3606_s15 + $0x11e0] sm:$0xff]  ;;  %624 = vst [vmem:[%s3611_s18 + $0x4e0] sm:$0xff] %v623_v28  ;;  %626 = vst [vmem:[%s3611_s18 + $0x4e8] sm:$0xff] %v625_v29  ;;  %v629_v31 = vld [vmem:[%s3606_s15 + $0x11e8] sm:$0xff] }
  0x87   : > { %628 = vst [vmem:[%s3611_s18 + $0x4f0] sm:$0xff] %v627_v30  ;;  %v631_v32 = vld [vmem:[%s3606_s15 + $0x1200] sm:$0xff]  ;;  %v633_v33 = vld [vmem:[%s3606_s15 + $0x1208] sm:$0xff]  ;;  %630 = vst [vmem:[%s3611_s18 + $0x4f8] sm:$0xff] %v629_v31 }
  0x88   : > { %632 = vst [vmem:[%s3611_s18 + $0x500] sm:$0xff] %v631_v32  ;;  %634 = vst [vmem:[%s3611_s18 + $0x508] sm:$0xff] %v633_v33  ;;  %v635_v34 = vld [vmem:[%s3606_s15 + $0x1220] sm:$0xff]  ;;  %v637_v35 = vld [vmem:[%s3606_s15 + $0x1228] sm:$0xff] }
  0x89   : > { %v639_v36 = vld [vmem:[%s3606_s15 + $0x1240] sm:$0xff]  ;;  %636 = vst [vmem:[%s3611_s18 + $0x510] sm:$0xff] %v635_v34  ;;  %638 = vst [vmem:[%s3611_s18 + $0x518] sm:$0xff] %v637_v35  ;;  %v641_v37 = vld [vmem:[%s3606_s15 + $0x1248] sm:$0xff] }
  0x8a   : > { %640 = vst [vmem:[%s3611_s18 + $0x520] sm:$0xff] %v639_v36  ;;  %v643_v38 = vld [vmem:[%s3606_s15 + $0x1260] sm:$0xff]  ;;  %v645_v39 = vld [vmem:[%s3606_s15 + $0x1268] sm:$0xff]  ;;  %642 = vst [vmem:[%s3611_s18 + $0x528] sm:$0xff] %v641_v37 }
  0x8b   : > { %644 = vst [vmem:[%s3611_s18 + $0x530] sm:$0xff] %v643_v38  ;;  %646 = vst [vmem:[%s3611_s18 + $0x538] sm:$0xff] %v645_v39  ;;  %v647_v40 = vld [vmem:[%s3606_s15 + $0x1280] sm:$0xff]  ;;  %v649_v41 = vld [vmem:[%s3606_s15 + $0x1288] sm:$0xff] }
  0x8c   : > { %v651_v42 = vld [vmem:[%s3606_s15 + $0x12a0] sm:$0xff]  ;;  %648 = vst [vmem:[%s3611_s18 + $0x540] sm:$0xff] %v647_v40  ;;  %650 = vst [vmem:[%s3611_s18 + $0x548] sm:$0xff] %v649_v41  ;;  %v653_v43 = vld [vmem:[%s3606_s15 + $0x12a8] sm:$0xff] }
  0x8d   : > { %652 = vst [vmem:[%s3611_s18 + $0x550] sm:$0xff] %v651_v42  ;;  %v655_v44 = vld [vmem:[%s3606_s15 + $0x12c0] sm:$0xff]  ;;  %v657_v45 = vld [vmem:[%s3606_s15 + $0x12c8] sm:$0xff]  ;;  %654 = vst [vmem:[%s3611_s18 + $0x558] sm:$0xff] %v653_v43 }
  0x8e   : > { %656 = vst [vmem:[%s3611_s18 + $0x560] sm:$0xff] %v655_v44  ;;  %658 = vst [vmem:[%s3611_s18 + $0x568] sm:$0xff] %v657_v45  ;;  %v659_v46 = vld [vmem:[%s3606_s15 + $0x12e0] sm:$0xff]  ;;  %v661_v47 = vld [vmem:[%s3606_s15 + $0x12e8] sm:$0xff] }
  0x8f   : > { %v663_v48 = vld [vmem:[%s3606_s15 + $0x1300] sm:$0xff]  ;;  %660 = vst [vmem:[%s3611_s18 + $0x570] sm:$0xff] %v659_v46  ;;  %662 = vst [vmem:[%s3611_s18 + $0x578] sm:$0xff] %v661_v47  ;;  %v665_v49 = vld [vmem:[%s3606_s15 + $0x1308] sm:$0xff] }
  0x90   : > { %664 = vst [vmem:[%s3611_s18 + $0x580] sm:$0xff] %v663_v48  ;;  %v667_v50 = vld [vmem:[%s3606_s15 + $0x1320] sm:$0xff]  ;;  %v669_v51 = vld [vmem:[%s3606_s15 + $0x1328] sm:$0xff]  ;;  %666 = vst [vmem:[%s3611_s18 + $0x588] sm:$0xff] %v665_v49 }
  0x91   : > { %668 = vst [vmem:[%s3611_s18 + $0x590] sm:$0xff] %v667_v50  ;;  %670 = vst [vmem:[%s3611_s18 + $0x598] sm:$0xff] %v669_v51  ;;  %v671_v52 = vld [vmem:[%s3606_s15 + $0x1340] sm:$0xff]  ;;  %v673_v53 = vld [vmem:[%s3606_s15 + $0x1348] sm:$0xff] }
  0x92   : > { %v675_v54 = vld [vmem:[%s3606_s15 + $0x1360] sm:$0xff]  ;;  %672 = vst [vmem:[%s3611_s18 + $0x5a0] sm:$0xff] %v671_v52  ;;  %674 = vst [vmem:[%s3611_s18 + $0x5a8] sm:$0xff] %v673_v53  ;;  %v677_v55 = vld [vmem:[%s3606_s15 + $0x1368] sm:$0xff] }
  0x93   : > { %676 = vst [vmem:[%s3611_s18 + $0x5b0] sm:$0xff] %v675_v54  ;;  %v679_v56 = vld [vmem:[%s3606_s15 + $0x1380] sm:$0xff]  ;;  %v681_v57 = vld [vmem:[%s3606_s15 + $0x1388] sm:$0xff]  ;;  %678 = vst [vmem:[%s3611_s18 + $0x5b8] sm:$0xff] %v677_v55 }
  0x94   : > { %680 = vst [vmem:[%s3611_s18 + $0x5c0] sm:$0xff] %v679_v56  ;;  %682 = vst [vmem:[%s3611_s18 + $0x5c8] sm:$0xff] %v681_v57  ;;  %v683_v58 = vld [vmem:[%s3606_s15 + $0x13a0] sm:$0xff]  ;;  %v685_v59 = vld [vmem:[%s3606_s15 + $0x13a8] sm:$0xff] }
  0x95   : > { %v687_v60 = vld [vmem:[%s3606_s15 + $0x13c0] sm:$0xff]  ;;  %684 = vst [vmem:[%s3611_s18 + $0x5d0] sm:$0xff] %v683_v58  ;;  %686 = vst [vmem:[%s3611_s18 + $0x5d8] sm:$0xff] %v685_v59  ;;  %v689_v61 = vld [vmem:[%s3606_s15 + $0x13c8] sm:$0xff] }
  0x96   : > { %688 = vst [vmem:[%s3611_s18 + $0x5e0] sm:$0xff] %v687_v60  ;;  %v691_v62 = vld [vmem:[%s3606_s15 + $0x13e0] sm:$0xff]  ;;  %v693_v63 = vld [vmem:[%s3606_s15 + $0x13e8] sm:$0xff]  ;;  %690 = vst [vmem:[%s3611_s18 + $0x5e8] sm:$0xff] %v689_v61 }
  0x97   : > { %692 = vst [vmem:[%s3611_s18 + $0x5f0] sm:$0xff] %v691_v62  ;;  %694 = vst [vmem:[%s3611_s18 + $0x5f8] sm:$0xff] %v693_v63  ;;  %v695_v0 = vld [vmem:[%s3606_s15 + $0x1800] sm:$0xff]  ;;  %v697_v1 = vld [vmem:[%s3606_s15 + $0x1808] sm:$0xff] }
  0x98   : > { %v699_v2 = vld [vmem:[%s3606_s15 + $0x1820] sm:$0xff]  ;;  %696 = vst [vmem:[%s3611_s18 + $0x600] sm:$0xff] %v695_v0  ;;  %698 = vst [vmem:[%s3611_s18 + $0x608] sm:$0xff] %v697_v1  ;;  %v701_v3 = vld [vmem:[%s3606_s15 + $0x1828] sm:$0xff] }
  0x99   : > { %700 = vst [vmem:[%s3611_s18 + $0x610] sm:$0xff] %v699_v2  ;;  %v703_v4 = vld [vmem:[%s3606_s15 + $0x1840] sm:$0xff]  ;;  %v705_v5 = vld [vmem:[%s3606_s15 + $0x1848] sm:$0xff]  ;;  %702 = vst [vmem:[%s3611_s18 + $0x618] sm:$0xff] %v701_v3 }
  0x9a   : > { %704 = vst [vmem:[%s3611_s18 + $0x620] sm:$0xff] %v703_v4  ;;  %706 = vst [vmem:[%s3611_s18 + $0x628] sm:$0xff] %v705_v5  ;;  %v707_v6 = vld [vmem:[%s3606_s15 + $0x1860] sm:$0xff]  ;;  %v709_v7 = vld [vmem:[%s3606_s15 + $0x1868] sm:$0xff] }
  0x9b   : > { %v711_v8 = vld [vmem:[%s3606_s15 + $0x1880] sm:$0xff]  ;;  %708 = vst [vmem:[%s3611_s18 + $0x630] sm:$0xff] %v707_v6  ;;  %710 = vst [vmem:[%s3611_s18 + $0x638] sm:$0xff] %v709_v7  ;;  %v713_v9 = vld [vmem:[%s3606_s15 + $0x1888] sm:$0xff] }
  0x9c   : > { %712 = vst [vmem:[%s3611_s18 + $0x640] sm:$0xff] %v711_v8  ;;  %v715_v10 = vld [vmem:[%s3606_s15 + $0x18a0] sm:$0xff]  ;;  %v717_v11 = vld [vmem:[%s3606_s15 + $0x18a8] sm:$0xff]  ;;  %714 = vst [vmem:[%s3611_s18 + $0x648] sm:$0xff] %v713_v9 }
  0x9d   : > { %716 = vst [vmem:[%s3611_s18 + $0x650] sm:$0xff] %v715_v10  ;;  %718 = vst [vmem:[%s3611_s18 + $0x658] sm:$0xff] %v717_v11  ;;  %v719_v12 = vld [vmem:[%s3606_s15 + $0x18c0] sm:$0xff]  ;;  %v721_v13 = vld [vmem:[%s3606_s15 + $0x18c8] sm:$0xff] }
  0x9e   : > { %v723_v14 = vld [vmem:[%s3606_s15 + $0x18e0] sm:$0xff]  ;;  %720 = vst [vmem:[%s3611_s18 + $0x660] sm:$0xff] %v719_v12  ;;  %722 = vst [vmem:[%s3611_s18 + $0x668] sm:$0xff] %v721_v13  ;;  %v725_v15 = vld [vmem:[%s3606_s15 + $0x18e8] sm:$0xff] }
  0x9f   : > { %724 = vst [vmem:[%s3611_s18 + $0x670] sm:$0xff] %v723_v14  ;;  %v727_v16 = vld [vmem:[%s3606_s15 + $0x1900] sm:$0xff]  ;;  %v729_v17 = vld [vmem:[%s3606_s15 + $0x1908] sm:$0xff]  ;;  %726 = vst [vmem:[%s3611_s18 + $0x678] sm:$0xff] %v725_v15 }
  0xa0   : > { %728 = vst [vmem:[%s3611_s18 + $0x680] sm:$0xff] %v727_v16  ;;  %730 = vst [vmem:[%s3611_s18 + $0x688] sm:$0xff] %v729_v17  ;;  %v731_v18 = vld [vmem:[%s3606_s15 + $0x1920] sm:$0xff]  ;;  %v733_v19 = vld [vmem:[%s3606_s15 + $0x1928] sm:$0xff] }
  0xa1   : > { %v735_v20 = vld [vmem:[%s3606_s15 + $0x1940] sm:$0xff]  ;;  %732 = vst [vmem:[%s3611_s18 + $0x690] sm:$0xff] %v731_v18  ;;  %734 = vst [vmem:[%s3611_s18 + $0x698] sm:$0xff] %v733_v19  ;;  %v737_v21 = vld [vmem:[%s3606_s15 + $0x1948] sm:$0xff] }
  0xa2   : > { %736 = vst [vmem:[%s3611_s18 + $0x6a0] sm:$0xff] %v735_v20  ;;  %v739_v22 = vld [vmem:[%s3606_s15 + $0x1960] sm:$0xff]  ;;  %v741_v23 = vld [vmem:[%s3606_s15 + $0x1968] sm:$0xff]  ;;  %738 = vst [vmem:[%s3611_s18 + $0x6a8] sm:$0xff] %v737_v21 }
  0xa3   : > { %740 = vst [vmem:[%s3611_s18 + $0x6b0] sm:$0xff] %v739_v22  ;;  %742 = vst [vmem:[%s3611_s18 + $0x6b8] sm:$0xff] %v741_v23  ;;  %v743_v24 = vld [vmem:[%s3606_s15 + $0x1980] sm:$0xff]  ;;  %v745_v25 = vld [vmem:[%s3606_s15 + $0x1988] sm:$0xff] }
  0xa4   : > { %v747_v26 = vld [vmem:[%s3606_s15 + $0x19a0] sm:$0xff]  ;;  %744 = vst [vmem:[%s3611_s18 + $0x6c0] sm:$0xff] %v743_v24  ;;  %746 = vst [vmem:[%s3611_s18 + $0x6c8] sm:$0xff] %v745_v25  ;;  %v749_v27 = vld [vmem:[%s3606_s15 + $0x19a8] sm:$0xff] }
  0xa5   : > { %748 = vst [vmem:[%s3611_s18 + $0x6d0] sm:$0xff] %v747_v26  ;;  %v751_v28 = vld [vmem:[%s3606_s15 + $0x19c0] sm:$0xff]  ;;  %v753_v29 = vld [vmem:[%s3606_s15 + $0x19c8] sm:$0xff]  ;;  %750 = vst [vmem:[%s3611_s18 + $0x6d8] sm:$0xff] %v749_v27 }
  0xa6   : > { %752 = vst [vmem:[%s3611_s18 + $0x6e0] sm:$0xff] %v751_v28  ;;  %754 = vst [vmem:[%s3611_s18 + $0x6e8] sm:$0xff] %v753_v29  ;;  %v755_v30 = vld [vmem:[%s3606_s15 + $0x19e0] sm:$0xff]  ;;  %v757_v31 = vld [vmem:[%s3606_s15 + $0x19e8] sm:$0xff] }
  0xa7   : > { %v759_v32 = vld [vmem:[%s3606_s15 + $0x1a00] sm:$0xff]  ;;  %756 = vst [vmem:[%s3611_s18 + $0x6f0] sm:$0xff] %v755_v30  ;;  %758 = vst [vmem:[%s3611_s18 + $0x6f8] sm:$0xff] %v757_v31  ;;  %v761_v33 = vld [vmem:[%s3606_s15 + $0x1a08] sm:$0xff] }
  0xa8   : > { %760 = vst [vmem:[%s3611_s18 + $0x700] sm:$0xff] %v759_v32  ;;  %v763_v34 = vld [vmem:[%s3606_s15 + $0x1a20] sm:$0xff]  ;;  %v765_v35 = vld [vmem:[%s3606_s15 + $0x1a28] sm:$0xff]  ;;  %762 = vst [vmem:[%s3611_s18 + $0x708] sm:$0xff] %v761_v33 }
  0xa9   : > { %764 = vst [vmem:[%s3611_s18 + $0x710] sm:$0xff] %v763_v34  ;;  %766 = vst [vmem:[%s3611_s18 + $0x718] sm:$0xff] %v765_v35  ;;  %v767_v36 = vld [vmem:[%s3606_s15 + $0x1a40] sm:$0xff]  ;;  %v769_v37 = vld [vmem:[%s3606_s15 + $0x1a48] sm:$0xff] }
  0xaa   : > { %v771_v38 = vld [vmem:[%s3606_s15 + $0x1a60] sm:$0xff]  ;;  %768 = vst [vmem:[%s3611_s18 + $0x720] sm:$0xff] %v767_v36  ;;  %770 = vst [vmem:[%s3611_s18 + $0x728] sm:$0xff] %v769_v37  ;;  %v773_v39 = vld [vmem:[%s3606_s15 + $0x1a68] sm:$0xff] }
  0xab   : > { %772 = vst [vmem:[%s3611_s18 + $0x730] sm:$0xff] %v771_v38  ;;  %v775_v40 = vld [vmem:[%s3606_s15 + $0x1a80] sm:$0xff]  ;;  %v777_v41 = vld [vmem:[%s3606_s15 + $0x1a88] sm:$0xff]  ;;  %774 = vst [vmem:[%s3611_s18 + $0x738] sm:$0xff] %v773_v39 }
  0xac   : > { %776 = vst [vmem:[%s3611_s18 + $0x740] sm:$0xff] %v775_v40  ;;  %778 = vst [vmem:[%s3611_s18 + $0x748] sm:$0xff] %v777_v41  ;;  %v779_v42 = vld [vmem:[%s3606_s15 + $0x1aa0] sm:$0xff]  ;;  %v781_v43 = vld [vmem:[%s3606_s15 + $0x1aa8] sm:$0xff] }
  0xad   : > { %v783_v44 = vld [vmem:[%s3606_s15 + $0x1ac0] sm:$0xff]  ;;  %780 = vst [vmem:[%s3611_s18 + $0x750] sm:$0xff] %v779_v42  ;;  %782 = vst [vmem:[%s3611_s18 + $0x758] sm:$0xff] %v781_v43  ;;  %v785_v45 = vld [vmem:[%s3606_s15 + $0x1ac8] sm:$0xff] }
  0xae   : > { %784 = vst [vmem:[%s3611_s18 + $0x760] sm:$0xff] %v783_v44  ;;  %v787_v46 = vld [vmem:[%s3606_s15 + $0x1ae0] sm:$0xff]  ;;  %v789_v47 = vld [vmem:[%s3606_s15 + $0x1ae8] sm:$0xff]  ;;  %786 = vst [vmem:[%s3611_s18 + $0x768] sm:$0xff] %v785_v45 }
  0xaf   : > { %788 = vst [vmem:[%s3611_s18 + $0x770] sm:$0xff] %v787_v46  ;;  %790 = vst [vmem:[%s3611_s18 + $0x778] sm:$0xff] %v789_v47  ;;  %v791_v48 = vld [vmem:[%s3606_s15 + $0x1b00] sm:$0xff]  ;;  %v793_v49 = vld [vmem:[%s3606_s15 + $0x1b08] sm:$0xff] }
  0xb0   : > { %v795_v50 = vld [vmem:[%s3606_s15 + $0x1b20] sm:$0xff]  ;;  %792 = vst [vmem:[%s3611_s18 + $0x780] sm:$0xff] %v791_v48  ;;  %794 = vst [vmem:[%s3611_s18 + $0x788] sm:$0xff] %v793_v49  ;;  %v797_v51 = vld [vmem:[%s3606_s15 + $0x1b28] sm:$0xff] }
  0xb1   : > { %796 = vst [vmem:[%s3611_s18 + $0x790] sm:$0xff] %v795_v50  ;;  %v799_v52 = vld [vmem:[%s3606_s15 + $0x1b40] sm:$0xff]  ;;  %v801_v53 = vld [vmem:[%s3606_s15 + $0x1b48] sm:$0xff]  ;;  %798 = vst [vmem:[%s3611_s18 + $0x798] sm:$0xff] %v797_v51 }
  0xb2   : > { %800 = vst [vmem:[%s3611_s18 + $0x7a0] sm:$0xff] %v799_v52  ;;  %802 = vst [vmem:[%s3611_s18 + $0x7a8] sm:$0xff] %v801_v53  ;;  %v803_v54 = vld [vmem:[%s3606_s15 + $0x1b60] sm:$0xff]  ;;  %v805_v55 = vld [vmem:[%s3606_s15 + $0x1b68] sm:$0xff] }
  0xb3   : > { %v807_v56 = vld [vmem:[%s3606_s15 + $0x1b80] sm:$0xff]  ;;  %804 = vst [vmem:[%s3611_s18 + $0x7b0] sm:$0xff] %v803_v54  ;;  %806 = vst [vmem:[%s3611_s18 + $0x7b8] sm:$0xff] %v805_v55  ;;  %v809_v57 = vld [vmem:[%s3606_s15 + $0x1b88] sm:$0xff] }
  0xb4   : > { %808 = vst [vmem:[%s3611_s18 + $0x7c0] sm:$0xff] %v807_v56  ;;  %v811_v58 = vld [vmem:[%s3606_s15 + $0x1ba0] sm:$0xff]  ;;  %v813_v59 = vld [vmem:[%s3606_s15 + $0x1ba8] sm:$0xff]  ;;  %810 = vst [vmem:[%s3611_s18 + $0x7c8] sm:$0xff] %v809_v57 }
  0xb5   : > { %812 = vst [vmem:[%s3611_s18 + $0x7d0] sm:$0xff] %v811_v58  ;;  %814 = vst [vmem:[%s3611_s18 + $0x7d8] sm:$0xff] %v813_v59  ;;  %v815_v60 = vld [vmem:[%s3606_s15 + $0x1bc0] sm:$0xff]  ;;  %v817_v61 = vld [vmem:[%s3606_s15 + $0x1bc8] sm:$0xff] }
  0xb6   : > { %v819_v62 = vld [vmem:[%s3606_s15 + $0x1be0] sm:$0xff]  ;;  %816 = vst [vmem:[%s3611_s18 + $0x7e0] sm:$0xff] %v815_v60  ;;  %818 = vst [vmem:[%s3611_s18 + $0x7e8] sm:$0xff] %v817_v61  ;;  %v821_v63 = vld [vmem:[%s3606_s15 + $0x1be8] sm:$0xff] }
  0xb7   : > { %820 = vst [vmem:[%s3611_s18 + $0x7f0] sm:$0xff] %v819_v62  ;;  %822 = vst [vmem:[%s3611_s18 + $0x7f8] sm:$0xff] %v821_v63 }
  0xb8 PF: > { %p5320_p5 = scmp.ne.s32.totalorder %s5316_s22, 0 }
  0xba   : > { %849 = sbr.rel (%p5320_p5) target bundleno = 894 (0x37e), region = 67 }
  0xbf   : > { %3436 = dma.done.wait (%p3583_p11), [#allocation5], 16  }
  0xc0   : > { %3438 = vsyncadd (%p3583_p11), [#allocation5], 4294967280  ;;  %s856_s0 = sand.u32 1, %s3441_s29  }
  0xc1   : > { %s2884_s26 = sshll.u32 %s856_s0, 11 }
  0xc2   : > { %s4129_s1 = scalar_lea.vmem [#allocation6], %s2884_s26 }
  0xc3   : > { %862 = sfence }
  0xc4   : > { %s2885_s16 = sshll.u32 %s856_s0, 9  ;;  %s2886_s15 = sshll.u32 %s3449_s9, 5 }
  0xc5   : > { %p907_p7 = scmp.lt.s32.totalorder %s2886_s15, 63  ;;  %s2888_s17 = sshll.u32 %s3453_s10, 5 }
  0xc6   : > { %p913_p9 = scmp.lt.s32.totalorder %s2888_s17, 63  ;;  %s4148_s2 = scalar_lea.vmem [#allocation7], %s2885_s16 }
  0xc7   : > { %s5336_s15 = smov (!%p907_p7, %s2886_s15), 63  ;;  %p2892_p10 = scmp.ne.s32.totalorder %s3449_s9, 0 }
  0xc8   : > { %s2887_s22 = sshll.u32 %s5336_s15, 3  ;;  %s5338_s17 = smov (!%p913_p9, %s2888_s17), 63 }
  0xc9   : > { %s4136_s23 = scalar_lea.vmem %s5303_s3, %s2887_s22  ;;  %s2889_s29 = sshll.u32 %s5338_s17, 3 }
  0xca   : > { %s4141_s28 = scalar_lea.vmem %s5306_s6, %s2889_s29  ;;  %s4146_s26 = scalar_lea.vmem %s5308_s8, %s2889_s29 }
  0xcb   : > { %929 = sbr.rel (%p2892_p10) target bundleno = 225 (0xe1), region = 79 }
  0xd0   : > { %v3468_v0 = vmov 0.0  }
  0xd1   : > { %930 = vst [vmem:[#allocation2 + $0xb0] sm:$0xff] %v3468_v0  ;;  %931 = vst [vmem:[#allocation2] sm:$0xff] %v3468_v0 }
  0xd2   : > { %932 = vst [vmem:[#allocation2 + $0xd8] sm:$0xff] %v3468_v0  ;;  %933 = vst [vmem:[#allocation2 + $0x18] sm:$0xff] %v3468_v0 }
  0xd3   : > { %934 = vst [vmem:[#allocation2 + $0x50] sm:$0xff] %v3468_v0  ;;  %935 = vst [vmem:[#allocation2 + $0x68] sm:$0xff] %v3468_v0 }
  0xd4   : > { %936 = vst [vmem:[#allocation2 + $0x30] sm:$0xff] %v3468_v0  ;;  %937 = vst [vmem:[#allocation2 + $0x48] sm:$0xff] %v3468_v0 }
  0xd5   : > { %938 = vst [vmem:[#allocation2 + $0x80] sm:$0xff] %v3468_v0  ;;  %939 = vst [vmem:[#allocation2 + $0x88] sm:$0xff] %v3468_v0 }
  0xd6   : > { %940 = vst [vmem:[#allocation2 + $0xe8] sm:$0xff] %v3468_v0  ;;  %941 = vst [vmem:[#allocation2 + $0xb8] sm:$0xff] %v3468_v0 }
  0xd7   : > { %942 = vst [vmem:[#allocation2 + $0x60] sm:$0xff] %v3468_v0  ;;  %943 = vst [vmem:[#allocation2 + $0xf0] sm:$0xff] %v3468_v0 }
  0xd8   : > { %944 = vst [vmem:[#allocation2 + $0x8] sm:$0xff] %v3468_v0  ;;  %945 = vst [vmem:[#allocation2 + $0x78] sm:$0xff] %v3468_v0 }
  0xd9   : > { %946 = vst [vmem:[#allocation2 + $0x38] sm:$0xff] %v3468_v0  ;;  %947 = vst [vmem:[#allocation2 + $0x58] sm:$0xff] %v3468_v0 }
  0xda   : > { %948 = vst [vmem:[#allocation2 + $0x40] sm:$0xff] %v3468_v0  ;;  %949 = vst [vmem:[#allocation2 + $0xc8] sm:$0xff] %v3468_v0 }
  0xdb   : > { %950 = vst [vmem:[#allocation2 + $0xe0] sm:$0xff] %v3468_v0  ;;  %951 = vst [vmem:[#allocation2 + $0x90] sm:$0xff] %v3468_v0 }
  0xdc   : > { %952 = vst [vmem:[#allocation2 + $0x70] sm:$0xff] %v3468_v0  ;;  %953 = vst [vmem:[#allocation2 + $0xc0] sm:$0xff] %v3468_v0 }
  0xdd   : > { %954 = vst [vmem:[#allocation2 + $0xa8] sm:$0xff] %v3468_v0  ;;  %955 = vst [vmem:[#allocation2 + $0xd0] sm:$0xff] %v3468_v0 }
  0xde   : > { %956 = vst [vmem:[#allocation2 + $0x10] sm:$0xff] %v3468_v0  ;;  %957 = vst [vmem:[#allocation2 + $0x28] sm:$0xff] %v3468_v0 }
  0xdf   : > { %958 = vst [vmem:[#allocation2 + $0xa0] sm:$0xff] %v3468_v0  ;;  %959 = vst [vmem:[#allocation2 + $0xf8] sm:$0xff] %v3468_v0 }
  0xe0   : > { %960 = vst [vmem:[#allocation2 + $0x20] sm:$0xff] %v3468_v0  ;;  %961 = vst [vmem:[#allocation2 + $0x98] sm:$0xff] %v3468_v0 }
  0xe1 PF: > { %v1854_v1 = vld [vmem:[%s4136_s23 + $0x78] sm:$0xff]  ;;  %s4152_s16 = sld [smem:[#allocation3]]  ;;  %v3469_v2 = vmov 0.0   ;;  %v1853_v3 = vld [vmem:[%s4136_s23 + $0x70] sm:$0xff]  ;;  %v1852_v4 = vld [vmem:[%s4136_s23 + $0x68] sm:$0xff]  ;;  %p3088_p11 = scmp.ne.s32.totalorder %s3449_s9, 1 }
  0xe2   : > { %1871 = vmatprep.subr.mxu0 %v3469_v2  ;;  %3227 = vmatprep.subr.mxu1 %v3469_v2  ;;  %s964_s15 = sld [smem:[#allocation4]]  ;;  %v1851_v5 = vld [vmem:[%s4136_s23 + $0x60] sm:$0xff]  ;;  %v1850_v6 = vld [vmem:[%s4136_s23 + $0x58] sm:$0xff]  ;;  %v1849_v8 = vld [vmem:[%s4136_s23 + $0x50] sm:$0xff] }
  0xe3   : > { %1872 = vmatpush1.msra.mxu0 %v1854_v1  ;;  %3259 = vmatpush1.msra.mxu1 %v1854_v1  ;;  %s2893_s17 = sld [smem:[#allocation4 + $0x1]]  ;;  %v1848_v11 = vld [vmem:[%s4136_s23 + $0x48] sm:$0xff]  ;;  %v1847_v15 = vld [vmem:[%s4136_s23 + $0x40] sm:$0xff]  ;;  %v1846_v38 = vld [vmem:[%s4136_s23 + $0x38] sm:$0xff] }
  0xe4   : > { %1873 = vmatprep.subr.mxu0 %v3469_v2  ;;  %3228 = vmatprep.subr.mxu1 %v3469_v2  ;;  %s2958_s22 = sld [smem:[#allocation4 + $0x2]]  ;;  %v966_v13 = vld [vmem:[%s4129_s1 + $0x8] sm:$0xff]  ;;  %v965_v30 = vld [vmem:[%s4129_s1] sm:$0xff]  ;;  %v1845_v47 = vld [vmem:[%s4136_s23 + $0x30] sm:$0xff] }
  0xe5   : > { %1874 = vmatpush1.msra.mxu0 %v1853_v3  ;;  %3260 = vmatpush1.msra.mxu1 %v1853_v3  ;;  %s3023_s20 = sld [smem:[#allocation4 + $0x3]]  ;;  %v2895_v17 = vld [vmem:[%s4129_s1 + $0x208] sm:$0xff]  ;;  %v2894_v31 = vld [vmem:[%s4129_s1 + $0x200] sm:$0xff]  ;;  %v968_v52 = vld [vmem:[%s4129_s1 + $0x18] sm:$0xff] }
  0xe6   : > { %1875 = vmatprep.subr.mxu0 %v3469_v2  ;;  %3229 = vmatprep.subr.mxu1 %v3469_v2  ;;  %v2960_v18 = vld [vmem:[%s4129_s1 + $0x408] sm:$0xff]  ;;  %v2959_v35 = vld [vmem:[%s4129_s1 + $0x400] sm:$0xff]  ;;  %v2897_v56 = vld [vmem:[%s4129_s1 + $0x218] sm:$0xff] }
  0xe7   : > { %1876 = vmatpush1.msra.mxu0 %v1852_v4  ;;  %3261 = vmatpush1.msra.mxu1 %v1852_v4  ;;  %v4177_v12 = vstv %s4152_s16  ;;  %v3025_v19 = vld [vmem:[%s4129_s1 + $0x608] sm:$0xff]  ;;  %v3024_v36 = vld [vmem:[%s4129_s1 + $0x600] sm:$0xff]  ;;  %v2962_v61 = vld [vmem:[%s4129_s1 + $0x418] sm:$0xff] }
  0xe8   : > { %1877 = vmatprep.subr.mxu0 %v3469_v2  ;;  %3230 = vmatprep.subr.mxu1 %v3469_v2  ;;  %v4166_v7 = vstv %s964_s15  ;;  %v998_v23 = vld [vmem:[%s4129_s1 + $0x108] sm:$0xff]  ;;  %v997_v37 = vld [vmem:[%s4129_s1 + $0x100] sm:$0xff]  ;;  %v3027_v1 = vld [vmem:[%s4129_s1 + $0x618] sm:$0xff] }
  0xe9   : > { %1878 = vmatpush1.msra.mxu0 %v1851_v5  ;;  %3262 = vmatpush1.msra.mxu1 %v1851_v5  ;;  %v4171_v9 = vstv %s2893_s17  ;;  %v1031_v16 = vmul.f32 %v4166_v7, %v966_v13  ;;  %v2927_v24 = vld [vmem:[%s4129_s1 + $0x308] sm:$0xff]  ;;  %v1063_v27 = vmul.f32 %v4166_v7, %v998_v23  ;;  %v1030_v34 = vmul.f32 %v4166_v7, %v965_v30  ;;  %v2926_v42 = vld [vmem:[%s4129_s1 + $0x300] sm:$0xff]  ;;  %v1000_v3 = vld [vmem:[%s4129_s1 + $0x118] sm:$0xff] }
  0xea   : > { %1879 = vmatprep.subr.mxu0 %v3469_v2  ;;  %3231 = vmatprep.subr.mxu1 %v3469_v2  ;;  %v4173_v10 = vstv %s2958_s22  ;;  %v1226_v20 = vmul.f32 %v2895_v17, %v4171_v9  ;;  %v2992_v25 = vld [vmem:[%s4129_s1 + $0x508] sm:$0xff]  ;;  %v1258_v28 = vmul.f32 %v2927_v24, %v4171_v9  ;;  %v1225_v41 = vmul.f32 %v2894_v31, %v4171_v9  ;;  %v2991_v43 = vld [vmem:[%s4129_s1 + $0x500] sm:$0xff]  ;;  %v2994_v13 = vld [vmem:[%s4129_s1 + $0x518] sm:$0xff] }
  0xeb   : > { %1880 = vmatpush1.msra.mxu0 %v1850_v6  ;;  %3263 = vmatpush1.msra.mxu1 %v1850_v6  ;;  %v4180_v14 = vstv %s3023_s20  ;;  %v1421_v21 = vmul.f32 %v2960_v18, %v4173_v10  ;;  %v1095_v26 = vadd.f32 %v1031_v16, %v4177_v12  ;;  %v3057_v29 = vld [vmem:[%s4129_s1 + $0x708] sm:$0xff]  ;;  %v1453_v32 = vmul.f32 %v2992_v25, %v4173_v10  ;;  %v3056_v51 = vld [vmem:[%s4129_s1 + $0x700] sm:$0xff]  ;;  %v3059_v18 = vld [vmem:[%s4129_s1 + $0x718] sm:$0xff] }
  0xec   : > { %1881 = vmatprep.subr.mxu0 %v3469_v2  ;;  %3232 = vmatprep.subr.mxu1 %v3469_v2  ;;  %v1616_v22 = vmul.f32 %v3025_v19, %v4180_v14  ;;  %v1648_v33 = vmul.f32 %v3057_v29, %v4180_v14  ;;  %v1127_v40 = vadd.f32 %v1063_v27, %v4177_v12  ;;  %v1844_v57 = vld [vmem:[%s4136_s23 + $0x28] sm:$0xff]  ;;  %v1843_v4 = vld [vmem:[%s4136_s23 + $0x20] sm:$0xff]  ;;  %v1842_v19 = vld [vmem:[%s4136_s23 + $0x18] sm:$0xff] }
  0xed   : > { %1882 = vmatpush1.msra.mxu0 %v1849_v8  ;;  %3264 = vmatpush1.msra.mxu1 %v1849_v8  ;;  %v1290_v39 = vadd.f32 %v1226_v20, %v1095_v26  ;;  %v1094_v44 = vadd.f32 %v1030_v34, %v4177_v12  ;;  %v1420_v45 = vmul.f32 %v2959_v35, %v4173_v10  ;;  %v967_v23 = vld [vmem:[%s4129_s1 + $0x10] sm:$0xff] }
  0xee   : > { %1883 = vmatprep.subr.mxu0 %v3469_v2  ;;  %3233 = vmatprep.subr.mxu1 %v3469_v2  ;;  %v1615_v46 = vmul.f32 %v3024_v36, %v4180_v14  ;;  %v1322_v49 = vadd.f32 %v1258_v28, %v1127_v40  ;;  %v1062_v50 = vmul.f32 %v4166_v7, %v997_v37  ;;  %v2896_v24 = vld [vmem:[%s4129_s1 + $0x210] sm:$0xff]  ;;  %v1840_v40 = vld [vmem:[%s4136_s23 + $0x8] sm:$0xff] }
  0xef   : > { %1884 = vmatpush1.msra.mxu0 %v1848_v11  ;;  %3265 = vmatpush1.msra.mxu1 %v1848_v11  ;;  %v1485_v48 = vadd.f32 %v1421_v21, %v1290_v39  ;;  %v1289_v53 = vadd.f32 %v1225_v41, %v1094_v44  ;;  %v1257_v54 = vmul.f32 %v2926_v42, %v4171_v9  ;;  %v2929_v11 = vld [vmem:[%s4129_s1 + $0x318] sm:$0xff]  ;;  %v2961_v28 = vld [vmem:[%s4129_s1 + $0x410] sm:$0xff] }
  0xf0   : > { %1885 = vmatprep.subr.mxu0 %v3469_v2  ;;  %3234 = vmatprep.subr.mxu1 %v3469_v2  ;;  %v1452_v55 = vmul.f32 %v2991_v43, %v4173_v10  ;;  %v1517_v59 = vadd.f32 %v1453_v32, %v1322_v49  ;;  %v1126_v60 = vadd.f32 %v1062_v50, %v4177_v12  ;;  %v3026_v29 = vld [vmem:[%s4129_s1 + $0x610] sm:$0xff]  ;;  %v2899_v49 = vld [vmem:[%s4129_s1 + $0x228] sm:$0xff]  ;;  %v1839_v50 = vld [vmem:[%s4136_s23] sm:$0xff] }
  0xf1   : > { %1886 = vmatpush1.msra.mxu0 %v1847_v15  ;;  %3266 = vmatpush1.msra.mxu1 %v1847_v15  ;;  %v4231_v58 = vadd.f32 %v1616_v22, %v1485_v48  ;;  %v1484_v62 = vadd.f32 %v1420_v45, %v1289_v53  ;;  %v1647_v63 = vmul.f32 %v3056_v51, %v4180_v14  ;;  %v1841_v30 = vld [vmem:[%s4136_s23 + $0x10] sm:$0xff]  ;;  %v970_v48 = vld [vmem:[%s4129_s1 + $0x28] sm:$0xff] }
  0xf2   : > { %1887 = vmatprep.subr.mxu0 %v3469_v2  ;;  %3235 = vmatprep.subr.mxu1 %v3469_v2  ;;  %v1033_v0 = vmul.f32 %v4166_v7, %v968_v52  ;;  %v4244_v5 = vadd.f32 %v1648_v33, %v1517_v59  ;;  %v1321_v6 = vadd.f32 %v1257_v54, %v1126_v60  ;;  %v999_v34 = vld [vmem:[%s4129_s1 + $0x110] sm:$0xff]  ;;  %v2964_v54 = vld [vmem:[%s4129_s1 + $0x428] sm:$0xff] }
  0xf3   : > { %1888 = vmatpush1.msra.mxu0 %v1846_v38  ;;  %3267 = vmatpush1.msra.mxu1 %v1846_v38  ;;  %1744 = vst [vmem:[%s4148_s2 + $0x8] sm:$0xff] %v4231_v58  ;;  %v1228_v8 = vmul.f32 %v2897_v56, %v4171_v9  ;;  %v4249_v15 = vadd.f32 %v1615_v46, %v1484_v62  ;;  %v2928_v38 = vld [vmem:[%s4129_s1 + $0x310] sm:$0xff]  ;;  %v3029_v59 = vld [vmem:[%s4129_s1 + $0x628] sm:$0xff] }
  0xf4   : > { %1889 = vmatprep.subr.mxu0 %v3469_v2  ;;  %3236 = vmatprep.subr.mxu1 %v3469_v2  ;;  %v1097_v16 = vadd.f32 %v1033_v0, %v4177_v12  ;;  %v1423_v17 = vmul.f32 %v2962_v61, %v4173_v10  ;;  %1776 = vst [vmem:[%s4148_s2 + $0x108] sm:$0xff] %v4244_v5  ;;  %v2993_v39 = vld [vmem:[%s4129_s1 + $0x510] sm:$0xff]  ;;  %v1002_v60 = vld [vmem:[%s4129_s1 + $0x128] sm:$0xff]  ;;  %v1870_v61 = vld [vmem:[%s4136_s23 + $0xf8] sm:$0xff] }
  0xf5   : > { %1890 = vmatpush1.msra.mxu0 %v1845_v47  ;;  %3268 = vmatpush1.msra.mxu1 %v1845_v47  ;;  %v1516_v20 = vadd.f32 %v1452_v55, %v1321_v6  ;;  %v1618_v21 = vmul.f32 %v3027_v1, %v4180_v14  ;;  %v1065_v22 = vmul.f32 %v4166_v7, %v1000_v3  ;;  %v3058_v44 = vld [vmem:[%s4129_s1 + $0x710] sm:$0xff]  ;;  %v2931_v1 = vld [vmem:[%s4129_s1 + $0x328] sm:$0xff] }
  0xf6   : > { %1891 = vmatprep.subr.mxu0 %v3469_v2  ;;  %3237 = vmatprep.subr.mxu1 %v3469_v2  ;;  %1743 = vst [vmem:[%s4148_s2] sm:$0xff] %v4249_v15  ;;  %v1292_v25 = vadd.f32 %v1228_v8, %v1097_v16  ;;  %v1260_v26 = vmul.f32 %v2929_v11, %v4171_v9  ;;  %v2996_v8 = vld [vmem:[%s4129_s1 + $0x528] sm:$0xff]  ;;  %v1869_v11 = vld [vmem:[%s4136_s23 + $0xf0] sm:$0xff] }
  0xf7   : > { %1892 = vmatpush1.msra.mxu0 %v1844_v57  ;;  %3269 = vmatpush1.msra.mxu1 %v1844_v57  ;;  %v1455_v27 = vmul.f32 %v2994_v13, %v4173_v10  ;;  %v4272_v31 = vadd.f32 %v1647_v63, %v1516_v20  ;;  %v1129_v32 = vadd.f32 %v1065_v22, %v4177_v12 }
  0xf8   : > { %1893 = vmatprep.subr.mxu0 %v3469_v2  ;;  %3238 = vmatprep.subr.mxu1 %v3469_v2  ;;  %v1650_v33 = vmul.f32 %v3059_v18, %v4180_v14  ;;  %v1487_v35 = vadd.f32 %v1423_v17, %v1292_v25  ;;  %v1032_v36 = vmul.f32 %v4166_v7, %v967_v23  ;;  %v3061_v18 = vld [vmem:[%s4129_s1 + $0x728] sm:$0xff]  ;;  %v2898_v23 = vld [vmem:[%s4129_s1 + $0x220] sm:$0xff] }
  0xf9   : > { %1894 = vmatpush1.msra.mxu0 %v1843_v4  ;;  %3270 = vmatpush1.msra.mxu1 %v1843_v4  ;;  %v1227_v37 = vmul.f32 %v2896_v24, %v4171_v9  ;;  %1775 = vst [vmem:[%s4148_s2 + $0x100] sm:$0xff] %v4272_v31  ;;  %v1324_v41 = vadd.f32 %v1260_v26, %v1129_v32  ;;  %v1868_v24 = vld [vmem:[%s4136_s23 + $0xe8] sm:$0xff] }
  0xfa   : > { %1895 = vmatprep.subr.mxu0 %v3469_v2  ;;  %3239 = vmatprep.subr.mxu1 %v3469_v2  ;;  %v1422_v42 = vmul.f32 %v2961_v28, %v4173_v10  ;;  %v1617_v43 = vmul.f32 %v3026_v29, %v4180_v14  ;;  %v4289_v45 = vadd.f32 %v1618_v21, %v1487_v35  ;;  %v2963_v28 = vld [vmem:[%s4129_s1 + $0x420] sm:$0xff] }
  0xfb   : > { %1896 = vmatpush1.msra.mxu0 %v1842_v19  ;;  %3271 = vmatpush1.msra.mxu1 %v1842_v19  ;;  %v1096_v46 = vadd.f32 %v1032_v36, %v4177_v12  ;;  %v1064_v47 = vmul.f32 %v4166_v7, %v999_v34  ;;  %v1519_v51 = vadd.f32 %v1455_v27, %v1324_v41  ;;  %v969_v19 = vld [vmem:[%s4129_s1 + $0x20] sm:$0xff] }
  0xfc   : > { %1897 = vmatprep.subr.mxu0 %v3469_v2  ;;  %3240 = vmatprep.subr.mxu1 %v3469_v2  ;;  %v1259_v52 = vmul.f32 %v2928_v38, %v4171_v9  ;;  %v1454_v53 = vmul.f32 %v2993_v39, %v4173_v10  ;;  %1746 = vst [vmem:[%s4148_s2 + $0x18] sm:$0xff] %v4289_v45  ;;  %v3028_v29 = vld [vmem:[%s4129_s1 + $0x620] sm:$0xff] }
  0xfd   : > { %1898 = vmatpush1.msra.mxu0 %v1841_v30  ;;  %3272 = vmatpush1.msra.mxu1 %v1841_v30  ;;  %v1291_v55 = vadd.f32 %v1227_v37, %v1096_v46  ;;  %v1128_v56 = vadd.f32 %v1064_v47, %v4177_v12  ;;  %v1649_v57 = vmul.f32 %v3058_v44, %v4180_v14  ;;  %v1001_v34 = vld [vmem:[%s4129_s1 + $0x120] sm:$0xff]  ;;  %v1866_v46 = vld [vmem:[%s4136_s23 + $0xd8] sm:$0xff] }
  0xfe   : > { %1899 = vmatprep.subr.mxu0 %v3469_v2  ;;  %3241 = vmatprep.subr.mxu1 %v3469_v2  ;;  %v4310_v62 = vadd.f32 %v1650_v33, %v1519_v51  ;;  %v1035_v63 = vmul.f32 %v4166_v7, %v970_v48  ;;  %v1230_v0 = vmul.f32 %v2899_v49, %v4171_v9  ;;  %v1867_v35 = vld [vmem:[%s4136_s23 + $0xe0] sm:$0xff]  ;;  %v2901_v51 = vld [vmem:[%s4129_s1 + $0x238] sm:$0xff] }
  0xff   : > { %1900 = vmatpush1.msra.mxu0 %v1840_v40  ;;  %3273 = vmatpush1.msra.mxu1 %v1840_v40  ;;  %v1486_v3 = vadd.f32 %v1422_v42, %v1291_v55  ;;  %v1323_v4 = vadd.f32 %v1259_v52, %v1128_v56  ;;  %v1425_v6 = vmul.f32 %v2964_v54, %v4173_v10  ;;  %v2930_v39 = vld [vmem:[%s4129_s1 + $0x320] sm:$0xff]  ;;  %v2966_v55 = vld [vmem:[%s4129_s1 + $0x438] sm:$0xff] }
 0x100   : > { %1901 = vmatprep.subr.mxu0 %v3469_v2  ;;  %3242 = vmatprep.subr.mxu1 %v3469_v2  ;;  %1778 = vst [vmem:[%s4148_s2 + $0x118] sm:$0xff] %v4310_v62  ;;  %v1099_v13 = vadd.f32 %v1035_v63, %v4177_v12  ;;  %v1620_v16 = vmul.f32 %v3029_v59, %v4180_v14  ;;  %v2995_v40 = vld [vmem:[%s4129_s1 + $0x520] sm:$0xff]  ;;  %v3031_v56 = vld [vmem:[%s4129_s1 + $0x638] sm:$0xff] }
 0x101   : > { %1902 = vmatpush1.msra.mxu0 %v1839_v50  ;;  %3274 = vmatpush1.msra.mxu1 %v1839_v50  ;;  %v1067_v17 = vmul.f32 %v4166_v7, %v1002_v60  ;;  %v4327_v20 = vadd.f32 %v1617_v43, %v1486_v3  ;;  %v1518_v21 = vadd.f32 %v1454_v53, %v1323_v4  ;;  %v3060_v44 = vld [vmem:[%s4129_s1 + $0x720] sm:$0xff]  ;;  %v972_v50 = vld [vmem:[%s4129_s1 + $0x38] sm:$0xff] }
 0x102   : > { %1903 = vmatprep.subr.mxu0 %v3469_v2  ;;  %3243 = vmatprep.subr.mxu1 %v3469_v2  ;;  %v1262_v22 = vmul.f32 %v2931_v1, %v4171_v9  ;;  %v1294_v25 = vadd.f32 %v1230_v0, %v1099_v13  ;;  %v1457_v27 = vmul.f32 %v2996_v8, %v4173_v10  ;;  %v1004_v63 = vld [vmem:[%s4129_s1 + $0x138] sm:$0xff]  ;;  %v1864_v8 = vld [vmem:[%s4136_s23 + $0xc8] sm:$0xff] }
 0x103   : > { %1904 = vmatpush2.msra.mxu0 %v1870_v61  ;;  %3275 = vmatpush2.msra.mxu1 %v1870_v61  ;;  %v1131_v26 = vadd.f32 %v1067_v17, %v4177_v12  ;;  %1745 = vst [vmem:[%s4148_s2 + $0x10] sm:$0xff] %v4327_v20  ;;  %v4340_v30 = vadd.f32 %v1649_v57, %v1518_v21  ;;  %v1865_v57 = vld [vmem:[%s4136_s23 + $0xd0] sm:$0xff]  ;;  %v2933_v4 = vld [vmem:[%s4129_s1 + $0x338] sm:$0xff] }
 0x104   : > { %1905 = vmatprep.subr.mxu0 %v3469_v2  ;;  %3244 = vmatprep.subr.mxu1 %v3469_v2  ;;  %v1652_v32 = vmul.f32 %v3061_v18, %v4180_v14  ;;  %v1034_v33 = vmul.f32 %v4166_v7, %v969_v19  ;;  %v1489_v36 = vadd.f32 %v1425_v6, %v1294_v25  ;;  %v2998_v6 = vld [vmem:[%s4129_s1 + $0x538] sm:$0xff] }
 0x105   : > { %1906 = vmatpush2.msra.mxu0 %v1869_v11  ;;  %3276 = vmatpush2.msra.mxu1 %v1869_v11  ;;  %v1326_v37 = vadd.f32 %v1262_v22, %v1131_v26  ;;  %v1229_v38 = vmul.f32 %v2898_v23, %v4171_v9  ;;  %1777 = vst [vmem:[%s4148_s2 + $0x110] sm:$0xff] %v4340_v30  ;;  %v3063_v17 = vld [vmem:[%s4129_s1 + $0x738] sm:$0xff]  ;;  %v971_v22 = vld [vmem:[%s4129_s1 + $0x30] sm:$0xff] }
 0x106   : > { %1907 = vmatprep.subr.mxu0 %v3469_v2  ;;  %3245 = vmatprep.subr.mxu1 %v3469_v2  ;;  %v1098_v41 = vadd.f32 %v1034_v33, %v4177_v12  ;;  %v1424_v42 = vmul.f32 %v2963_v28, %v4173_v10  ;;  %v1619_v43 = vmul.f32 %v3028_v29, %v4180_v14  ;;  %v2900_v23 = vld [vmem:[%s4129_s1 + $0x230] sm:$0xff] }
 0x107   : > { %1908 = vmatpush2.msra.mxu0 %v1868_v24  ;;  %3277 = vmatpush2.msra.mxu1 %v1868_v24  ;;  %v4360_v47 = vadd.f32 %v1620_v16, %v1489_v36  ;;  %v1521_v48 = vadd.f32 %v1457_v27, %v1326_v37  ;;  %v1066_v49 = vmul.f32 %v4166_v7, %v1001_v34  ;;  %v1863_v24 = vld [vmem:[%s4136_s23 + $0xc0] sm:$0xff]  ;;  %v2965_v28 = vld [vmem:[%s4129_s1 + $0x430] sm:$0xff]  ;;  %v1862_v36 = vld [vmem:[%s4136_s23 + $0xb8] sm:$0xff] }
 0x108   : > { %1909 = vmatprep.subr.mxu0 %v3469_v2  ;;  %3246 = vmatprep.subr.mxu1 %v3469_v2  ;;  %v1293_v52 = vadd.f32 %v1229_v38, %v1098_v41  ;;  %v1261_v53 = vmul.f32 %v2930_v39, %v4171_v9  ;;  %v1456_v54 = vmul.f32 %v2995_v40, %v4173_v10  ;;  %v3030_v34 = vld [vmem:[%s4129_s1 + $0x630] sm:$0xff] }
 0x109   : > { %1910 = vmatpush2.msra.mxu0 %v1867_v35  ;;  %3278 = vmatpush2.msra.mxu1 %v1867_v35  ;;  %1748 = vst [vmem:[%s4148_s2 + $0x28] sm:$0xff] %v4360_v47  ;;  %v4374_v59 = vadd.f32 %v1652_v32, %v1521_v48  ;;  %v1130_v60 = vadd.f32 %v1066_v49, %v4177_v12  ;;  %v1003_v35 = vld [vmem:[%s4129_s1 + $0x130] sm:$0xff] }
 0x10a   : > { %1911 = vmatprep.subr.mxu0 %v3469_v2  ;;  %3247 = vmatprep.subr.mxu1 %v3469_v2  ;;  %v1651_v61 = vmul.f32 %v3060_v44, %v4180_v14  ;;  %v1488_v0 = vadd.f32 %v1424_v42, %v1293_v52  ;;  %v1037_v1 = vmul.f32 %v4166_v7, %v972_v50  ;;  %v2932_v40 = vld [vmem:[%s4129_s1 + $0x330] sm:$0xff]  ;;  %v974_v52 = vld [vmem:[%s4129_s1 + $0x48] sm:$0xff] }
 0x10b   : > { %1912 = vmatpush2.msra.mxu0 %v1866_v46  ;;  %3279 = vmatpush2.msra.mxu1 %v1866_v46  ;;  %v1232_v3 = vmul.f32 %v2901_v51, %v4171_v9  ;;  %1780 = vst [vmem:[%s4148_s2 + $0x128] sm:$0xff] %v4374_v59  ;;  %v1325_v11 = vadd.f32 %v1261_v53, %v1130_v60  ;;  %v2997_v44 = vld [vmem:[%s4129_s1 + $0x530] sm:$0xff] }
 0x10c   : > { %1913 = vmatprep.subr.mxu0 %v3469_v2  ;;  %3248 = vmatprep.subr.mxu1 %v3469_v2  ;;  %v1427_v13 = vmul.f32 %v2966_v55, %v4173_v10  ;;  %v1622_v16 = vmul.f32 %v3031_v56, %v4180_v14  ;;  %v4391_v18 = vadd.f32 %v1619_v43, %v1488_v0  ;;  %v1861_v46 = vld [vmem:[%s4136_s23 + $0xb0] sm:$0xff]  ;;  %v2903_v56 = vld [vmem:[%s4129_s1 + $0x248] sm:$0xff] }
 0x10d   : > { %1914 = vmatpush2.msra.mxu0 %v1865_v57  ;;  %3280 = vmatpush2.msra.mxu1 %v1865_v57  ;;  %v1101_v19 = vadd.f32 %v1037_v1, %v4177_v12  ;;  %v1069_v21 = vmul.f32 %v4166_v7, %v1004_v63  ;;  %v1520_v25 = vadd.f32 %v1456_v54, %v1325_v11  ;;  %v3062_v51 = vld [vmem:[%s4129_s1 + $0x730] sm:$0xff]  ;;  %v1860_v57 = vld [vmem:[%s4136_s23 + $0xa8] sm:$0xff]  ;;  %v1859_v11 = vld [vmem:[%s4136_s23 + $0xa0] sm:$0xff] }
 0x10e   : > { %1915 = vmatprep.subr.mxu0 %v3469_v2  ;;  %3249 = vmatprep.subr.mxu1 %v3469_v2  ;;  %v1264_v26 = vmul.f32 %v2933_v4, %v4171_v9  ;;  %v1459_v27 = vmul.f32 %v2998_v6, %v4173_v10  ;;  %1747 = vst [vmem:[%s4148_s2 + $0x20] sm:$0xff] %v4391_v18  ;;  %v2968_v0 = vld [vmem:[%s4129_s1 + $0x448] sm:$0xff] }
 0x10f   : > { %1916 = vmatpush2.msra.mxu0 %v1864_v8  ;;  %3281 = vmatpush2.msra.mxu1 %v1864_v8  ;;  %v1296_v29 = vadd.f32 %v1232_v3, %v1101_v19  ;;  %v1133_v32 = vadd.f32 %v1069_v21, %v4177_v12  ;;  %v1654_v33 = vmul.f32 %v3063_v17, %v4180_v14  ;;  %v3033_v1 = vld [vmem:[%s4129_s1 + $0x648] sm:$0xff] }
 0x110   : > { %1917 = vmatprep.subr.mxu0 %v3469_v2  ;;  %3250 = vmatprep.subr.mxu1 %v3469_v2  ;;  %v4412_v37 = vadd.f32 %v1651_v61, %v1520_v25  ;;  %v1036_v38 = vmul.f32 %v4166_v7, %v971_v22  ;;  %v1231_v39 = vmul.f32 %v2900_v23, %v4171_v9  ;;  %v1006_v8 = vld [vmem:[%s4129_s1 + $0x148] sm:$0xff] }
 0x111   : > { %1918 = vmatpush2.msra.mxu0 %v1863_v24  ;;  %3282 = vmatpush2.msra.mxu1 %v1863_v24  ;;  %v1491_v41 = vadd.f32 %v1427_v13, %v1296_v29  ;;  %v1328_v42 = vadd.f32 %v1264_v26, %v1133_v32  ;;  %v1426_v43 = vmul.f32 %v2965_v28, %v4173_v10  ;;  %v2935_v19 = vld [vmem:[%s4129_s1 + $0x348] sm:$0xff]  ;;  %v1858_v26 = vld [vmem:[%s4136_s23 + $0x98] sm:$0xff]  ;;  %v973_v32 = vld [vmem:[%s4129_s1 + $0x40] sm:$0xff] }
 0x112   : > { %1919 = vmatprep.subr.mxu0 %v3469_v2  ;;  %3251 = vmatprep.subr.mxu1 %v3469_v2  ;;  %1779 = vst [vmem:[%s4148_s2 + $0x120] sm:$0xff] %v4412_v37  ;;  %v1100_v48 = vadd.f32 %v1036_v38, %v4177_v12  ;;  %v1621_v49 = vmul.f32 %v3030_v34, %v4180_v14  ;;  %v3000_v21 = vld [vmem:[%s4129_s1 + $0x548] sm:$0xff]  ;;  %v2967_v38 = vld [vmem:[%s4129_s1 + $0x440] sm:$0xff] }
 0x113   : > { %v1068_v50 = vmul.f32 %v4166_v7, %v1003_v35  ;;  %1920 = vmatpush2.msra.mxu0 %v1862_v36  ;;  %3283 = vmatpush2.msra.mxu1 %v1862_v36  ;;  %v4429_v53 = vadd.f32 %v1622_v16, %v1491_v41  ;;  %v1523_v54 = vadd.f32 %v1459_v27, %v1328_v42  ;;  %v3065_v25 = vld [vmem:[%s4129_s1 + $0x748] sm:$0xff] }
 0x114   : > { %v1263_v55 = vmul.f32 %v2932_v40, %v4171_v9  ;;  %1921 = vmatprep.subr.mxu0 %v3469_v2  ;;  %3252 = vmatprep.subr.mxu1 %v3469_v2  ;;  %v1295_v60 = vadd.f32 %v1231_v39, %v1100_v48  ;;  %v1458_v63 = vmul.f32 %v2997_v44, %v4173_v10  ;;  %v3032_v39 = vld [vmem:[%s4129_s1 + $0x640] sm:$0xff]  ;;  %v1857_v40 = vld [vmem:[%s4136_s23 + $0x90] sm:$0xff] }
 0x115   : > { %v1132_v61 = vadd.f32 %v1068_v50, %v4177_v12  ;;  %1922 = vmatpush2.msra.mxu0 %v1861_v46  ;;  %3284 = vmatpush2.msra.mxu1 %v1861_v46  ;;  %1750 = vst [vmem:[%s4148_s2 + $0x38] sm:$0xff] %v4429_v53  ;;  %v4442_v3 = vadd.f32 %v1654_v33, %v1523_v54  ;;  %v2902_v33 = vld [vmem:[%s4129_s1 + $0x240] sm:$0xff] }
 0x116   : > { %v1653_v4 = vmul.f32 %v3062_v51, %v4180_v14  ;;  %v1039_v6 = vmul.f32 %v4166_v7, %v974_v52  ;;  %1923 = vmatprep.subr.mxu0 %v3469_v2  ;;  %3253 = vmatprep.subr.mxu1 %v3469_v2  ;;  %v1490_v13 = vadd.f32 %v1426_v43, %v1295_v60  ;;  %v1005_v44 = vld [vmem:[%s4129_s1 + $0x140] sm:$0xff]  ;;  %v1856_v52 = vld [vmem:[%s4136_s23 + $0x88] sm:$0xff] }
 0x117   : > { %v1327_v16 = vadd.f32 %v1263_v55, %v1132_v61  ;;  %v1234_v17 = vmul.f32 %v2903_v56, %v4171_v9  ;;  %1924 = vmatpush2.msra.mxu0 %v1860_v57  ;;  %3285 = vmatpush2.msra.mxu1 %v1860_v57  ;;  %1782 = vst [vmem:[%s4148_s2 + $0x138] sm:$0xff] %v4442_v3  ;;  %v2934_v50 = vld [vmem:[%s4129_s1 + $0x340] sm:$0xff] }
 0x118   : > { %v1103_v22 = vadd.f32 %v1039_v6, %v4177_v12  ;;  %v1429_v23 = vmul.f32 %v2968_v0, %v4173_v10  ;;  %v1624_v24 = vmul.f32 %v3033_v1, %v4180_v14  ;;  %1925 = vmatprep.subr.mxu0 %v3469_v2  ;;  %3254 = vmatprep.subr.mxu1 %v3469_v2  ;;  %v2999_v51 = vld [vmem:[%s4129_s1 + $0x540] sm:$0xff]  ;;  %v976_v0 = vld [vmem:[%s4129_s1 + $0x58] sm:$0xff] }
 0x119   : > { %v4462_v27 = vadd.f32 %v1621_v49, %v1490_v13  ;;  %v1522_v28 = vadd.f32 %v1458_v63, %v1327_v16  ;;  %v1071_v29 = vmul.f32 %v4166_v7, %v1006_v8  ;;  %1926 = vmatpush2.msra.mxu0 %v1859_v11  ;;  %3286 = vmatpush2.msra.mxu1 %v1859_v11  ;;  %v3064_v57 = vld [vmem:[%s4129_s1 + $0x740] sm:$0xff]  ;;  %v2905_v1 = vld [vmem:[%s4129_s1 + $0x258] sm:$0xff] }
 0x11a   : > { %v1298_v34 = vadd.f32 %v1234_v17, %v1103_v22  ;;  %v1266_v35 = vmul.f32 %v2935_v19, %v4171_v9  ;;  %v1461_v36 = vmul.f32 %v3000_v21, %v4173_v10  ;;  %1927 = vmatprep.subr.mxu0 %v3469_v2  ;;  %3255 = vmatprep.subr.mxu1 %v3469_v2  ;;  %v2970_v13 = vld [vmem:[%s4129_s1 + $0x458] sm:$0xff] }
 0x11b   : > { %1749 = vst [vmem:[%s4148_s2 + $0x30] sm:$0xff] %v4462_v27  ;;  %v4476_v41 = vadd.f32 %v1653_v4, %v1522_v28  ;;  %v1135_v42 = vadd.f32 %v1071_v29, %v4177_v12  ;;  %v1656_v43 = vmul.f32 %v3065_v25, %v4180_v14  ;;  %1928 = vmatpush2.msra.mxu0 %v1858_v26  ;;  %v1855_v4 = vld [vmem:[%s4136_s23 + $0x80] sm:$0xff]  ;;  %v3035_v21 = vld [vmem:[%s4129_s1 + $0x658] sm:$0xff] }
 0x11c   : > { %3287 = vmatpush2.msra.mxu1 %v1858_v26  ;;  %v1493_v46 = vadd.f32 %v1429_v23, %v1298_v34  ;;  %v1038_v48 = vmul.f32 %v4166_v7, %v973_v32  ;;  %v1233_v49 = vmul.f32 %v2902_v33, %v4171_v9  ;;  %1929 = vmatprep.subr.mxu0 %v3469_v2  ;;  %v1008_v22 = vld [vmem:[%s4129_s1 + $0x158] sm:$0xff] }
 0x11d   : > { %3256 = vmatprep.subr.mxu1 %v3469_v2  ;;  %1781 = vst [vmem:[%s4148_s2 + $0x130] sm:$0xff] %v4476_v41  ;;  %v1330_v54 = vadd.f32 %v1266_v35, %v1135_v42  ;;  %v1428_v55 = vmul.f32 %v2967_v38, %v4173_v10  ;;  %v1623_v56 = vmul.f32 %v3032_v39, %v4180_v14  ;;  %v2937_v26 = vld [vmem:[%s4129_s1 + $0x358] sm:$0xff]  ;;  %v2904_v38 = vld [vmem:[%s4129_s1 + $0x250] sm:$0xff] }
 0x11e   : > { %1930 = vmatpush2.msra.mxu0 %v1857_v40  ;;  %3288 = vmatpush2.msra.mxu1 %v1857_v40  ;;  %v4493_v60 = vadd.f32 %v1624_v24, %v1493_v46  ;;  %v1102_v61 = vadd.f32 %v1038_v48, %v4177_v12  ;;  %v1070_v63 = vmul.f32 %v4166_v7, %v1005_v44  ;;  %v3002_v33 = vld [vmem:[%s4129_s1 + $0x558] sm:$0xff]  ;;  %v2969_v42 = vld [vmem:[%s4129_s1 + $0x450] sm:$0xff] }
 0x11f   : > { %1931 = vmatprep.subr.mxu0 %v3469_v2  ;;  %3257 = vmatprep.subr.mxu1 %v3469_v2  ;;  %v1525_v6 = vadd.f32 %v1461_v36, %v1330_v54  ;;  %v1265_v8 = vmul.f32 %v2934_v50, %v4171_v9  ;;  %v1460_v11 = vmul.f32 %v2999_v51, %v4173_v10  ;;  %v975_v36 = vld [vmem:[%s4129_s1 + $0x50] sm:$0xff]  ;;  %v3067_v40 = vld [vmem:[%s4129_s1 + $0x758] sm:$0xff] }
 0x120   : > { %1932 = vmatpush2.msra.mxu0 %v1856_v52  ;;  %3289 = vmatpush2.msra.mxu1 %v1856_v52  ;;  %1752 = vst [vmem:[%s4148_s2 + $0x48] sm:$0xff] %v4493_v60  ;;  %v1297_v16 = vadd.f32 %v1233_v49, %v1102_v61  ;;  %v1134_v17 = vadd.f32 %v1070_v63, %v4177_v12  ;;  %v2936_v46 = vld [vmem:[%s4129_s1 + $0x350] sm:$0xff] }
 0x121   : > { %v1655_v19 = vmul.f32 %v3064_v57, %v4180_v14  ;;  %1933 = vmatprep.subr.mxu0 %v3469_v2  ;;  %3258 = vmatprep.subr.mxu1 %v3469_v2  ;;  %v4513_v23 = vadd.f32 %v1656_v43, %v1525_v6  ;;  %v1041_v24 = vmul.f32 %v4166_v7, %v976_v0  ;;  %v3066_v0 = vld [vmem:[%s4129_s1 + $0x750] sm:$0xff] }
 0x122   : > { %v1236_v25 = vmul.f32 %v2905_v1, %v4171_v9  ;;  %1934 = vmatpush2.msra.mxu0 %v1855_v4  ;;  %3290 = vmatpush2.msra.mxu1 %v1855_v4  ;;  %v1492_v28 = vadd.f32 %v1428_v55, %v1297_v16  ;;  %v1329_v29 = vadd.f32 %v1265_v8, %v1134_v17  ;;  %v3001_v55 = vld [vmem:[%s4129_s1 + $0x550] sm:$0xff]  ;;  %v2907_v1 = vld [vmem:[%s4129_s1 + $0x268] sm:$0xff] }
 0x123   : > { %v1431_v32 = vmul.f32 %v2970_v13, %v4173_v10  ;;  %1935 = vmatprep.mubr.f32.mxu0 %v4231_v58  ;;  %2015 = vmatprep.mubr.f32.mxu1 %v4244_v5  ;;  %1784 = vst [vmem:[%s4148_s2 + $0x148] sm:$0xff] %v4513_v23  ;;  %v1105_v2 = vadd.f32 %v1041_v24, %v4177_v12  ;;  %v2972_v4 = vld [vmem:[%s4129_s1 + $0x468] sm:$0xff] }
 0x124   : > { %v1626_v34 = vmul.f32 %v3035_v21, %v4180_v14  ;;  %v1073_v35 = vmul.f32 %v4166_v7, %v1008_v22  ;;  %1936 = vmatmul.mubr.f32.vlgmr.msra.gmra.mxu0 %v4249_v15  ;;  %2016 = vmatmul.mubr.f32.vlgmr.msra.gmra.mxu1 %v4272_v31  ;;  %v4531_v58 = vadd.f32 %v1623_v56, %v1492_v28  ;;  %v1007_v31 = vld [vmem:[%s4129_s1 + $0x150] sm:$0xff]  ;;  %v978_v56 = vld [vmem:[%s4129_s1 + $0x68] sm:$0xff] }
 0x125   : > { %v1524_v5 = vadd.f32 %v1460_v11, %v1329_v29  ;;  %v1268_v39 = vmul.f32 %v2937_v26, %v4171_v9  ;;  %1940 = vmatprep.mubr.f32.mxu0 %v4289_v45  ;;  %2020 = vmatprep.mubr.f32.mxu1 %v4310_v62  ;;  %v1300_v43 = vadd.f32 %v1236_v25, %v1105_v2  ;;  %v3034_v62 = vld [vmem:[%s4129_s1 + $0x650] sm:$0xff]  ;;  %v3037_v17 = vld [vmem:[%s4129_s1 + $0x668] sm:$0xff]  ;;  %v2906_v2 = vld [vmem:[%s4129_s1 + $0x260] sm:$0xff] }
 0x126   : > { %v1137_v44 = vadd.f32 %v1073_v35, %v4177_v12  ;;  %v1463_v15 = vmul.f32 %v3002_v33, %v4173_v10  ;;  %1751 = vst [vmem:[%s4148_s2 + $0x40] sm:$0xff] %v4531_v58  ;;  %v1040_v49 = vmul.f32 %v4166_v7, %v975_v36  ;;  %v1235_v45 = vmul.f32 %v2904_v38, %v4171_v9  ;;  %v3004_v25 = vld [vmem:[%s4129_s1 + $0x568] sm:$0xff]  ;;  %v977_v33 = vld [vmem:[%s4129_s1 + $0x60] sm:$0xff] }
 0x127   : > { %v4544_v48 = vadd.f32 %v1655_v19, %v1524_v5  ;;  %v1495_v50 = vadd.f32 %v1431_v32, %v1300_v43  ;;  %v1658_v52 = vmul.f32 %v3067_v40, %v4180_v14  ;;  %v1430_v54 = vmul.f32 %v2969_v42, %v4173_v10  ;;  %v2939_v19 = vld [vmem:[%s4129_s1 + $0x368] sm:$0xff]  ;;  %v2971_v35 = vld [vmem:[%s4129_s1 + $0x460] sm:$0xff] }
 0x128   : > { %v1332_v51 = vadd.f32 %v1268_v39, %v1137_v44  ;;  %1941 = vmatmul.mubr.f32.gmra.mxu0 %v4327_v20  ;;  %2021 = vmatmul.mubr.f32.gmra.mxu1 %v4340_v30  ;;  %v1104_v57 = vadd.f32 %v1040_v49, %v4177_v12  ;;  %v1072_v61 = vmul.f32 %v4166_v7, %v1007_v31  ;;  %v3069_v32 = vld [vmem:[%s4129_s1 + $0x768] sm:$0xff]  ;;  %v3036_v44 = vld [vmem:[%s4129_s1 + $0x660] sm:$0xff] }
 0x129   : > { %1783 = vst [vmem:[%s4148_s2 + $0x140] sm:$0xff] %v4544_v48  ;;  %v1267_v63 = vmul.f32 %v2936_v46, %v4171_v9  ;;  %1945 = vmatprep.mubr.f32.mxu0 %v4360_v47  ;;  %2025 = vmatprep.mubr.f32.mxu1 %v4374_v59  ;;  %v4565_v20 = vadd.f32 %v1626_v34, %v1495_v50  ;;  %v1010_v47 = vld [vmem:[%s4129_s1 + $0x168] sm:$0xff]  ;;  %v3003_v31 = vld [vmem:[%s4129_s1 + $0x560] sm:$0xff] }
 0x12a   : > { %v1527_v30 = vadd.f32 %v1463_v15, %v1332_v51  ;;  %v1625_v6 = vmul.f32 %v3034_v62, %v4180_v14  ;;  %v1299_v8 = vadd.f32 %v1235_v45, %v1104_v57  ;;  %v1136_v11 = vadd.f32 %v1072_v61, %v4177_v12  ;;  %v2938_v15 = vld [vmem:[%s4129_s1 + $0x360] sm:$0xff]  ;;  %v980_v62 = vld [vmem:[%s4129_s1 + $0x78] sm:$0xff] }
 0x12b   : > { %v1462_v13 = vmul.f32 %v3001_v55, %v4173_v10  ;;  %v1043_v16 = vmul.f32 %v4166_v7, %v978_v56  ;;  %1754 = vst [vmem:[%s4148_s2 + $0x58] sm:$0xff] %v4565_v20  ;;  %v1657_v21 = vmul.f32 %v3066_v0, %v4180_v14  ;;  %v1238_v22 = vmul.f32 %v2907_v1, %v4171_v9  ;;  %v3039_v1 = vld [vmem:[%s4129_s1 + $0x678] sm:$0xff] }
 0x12c   : > { %v4576_v59 = vadd.f32 %v1658_v52, %v1527_v30  ;;  %v1433_v24 = vmul.f32 %v2972_v4, %v4173_v10  ;;  %1946 = vmatmul.mubr.f32.gmra.mxu0 %v4391_v18  ;;  %2026 = vmatmul.mubr.f32.gmra.mxu1 %v4412_v37  ;;  %v1494_v26 = vadd.f32 %v1430_v54, %v1299_v8  ;;  %v2909_v52 = vld [vmem:[%s4129_s1 + $0x278] sm:$0xff] }
 0x12d   : > { %v1331_v28 = vadd.f32 %v1267_v63, %v1136_v11  ;;  %v1107_v29 = vadd.f32 %v1043_v16, %v4177_v12  ;;  %1950 = vmatprep.mubr.f32.mxu0 %v4429_v53  ;;  %2030 = vmatprep.mubr.f32.mxu1 %v4442_v3  ;;  %v1628_v18 = vmul.f32 %v3037_v17, %v4180_v14  ;;  %v1009_v3 = vld [vmem:[%s4129_s1 + $0x160] sm:$0xff]  ;;  %v2974_v54 = vld [vmem:[%s4129_s1 + $0x478] sm:$0xff]  ;;  %v979_v16 = vld [vmem:[%s4129_s1 + $0x70] sm:$0xff] }
 0x12e   : > { %1786 = vst [vmem:[%s4148_s2 + $0x158] sm:$0xff] %v4576_v59  ;;  %v1075_v37 = vmul.f32 %v4166_v7, %v1010_v47  ;;  %v1270_v34 = vmul.f32 %v2939_v19, %v4171_v9  ;;  %v4596_v36 = vadd.f32 %v1625_v6, %v1494_v26  ;;  %v1465_v53 = vmul.f32 %v3004_v25, %v4173_v10  ;;  %v1012_v4 = vld [vmem:[%s4129_s1 + $0x178] sm:$0xff]  ;;  %v2908_v47 = vld [vmem:[%s4129_s1 + $0x270] sm:$0xff] }
 0x12f   : > { %v1526_v38 = vadd.f32 %v1462_v13, %v1331_v28  ;;  %v1302_v5 = vadd.f32 %v1238_v22, %v1107_v29  ;;  %v1660_v40 = vmul.f32 %v3069_v32, %v4180_v14  ;;  %v1042_v42 = vmul.f32 %v4166_v7, %v977_v33  ;;  %v2941_v30 = vld [vmem:[%s4129_s1 + $0x378] sm:$0xff]  ;;  %v2973_v25 = vld [vmem:[%s4129_s1 + $0x470] sm:$0xff] }
 0x130   : > { %v1139_v39 = vadd.f32 %v1075_v37, %v4177_v12  ;;  %v1237_v43 = vmul.f32 %v2906_v2, %v4171_v9  ;;  %1951 = vmatmul.mubr.f32.gmra.mxu0 %v4462_v27  ;;  %2031 = vmatmul.mubr.f32.gmra.mxu1 %v4476_v41  ;;  %1753 = vst [vmem:[%s4148_s2 + $0x50] sm:$0xff] %v4596_v36  ;;  %v3068_v41 = vld [vmem:[%s4129_s1 + $0x760] sm:$0xff]  ;;  %v3006_v13 = vld [vmem:[%s4129_s1 + $0x578] sm:$0xff]  ;;  %v1011_v32 = vld [vmem:[%s4129_s1 + $0x170] sm:$0xff] }
 0x131   : > { %v1721_v46 = vadd.f32 %v1657_v21, %v1526_v38  ;;  %v1497_v49 = vadd.f32 %v1433_v24, %v1302_v5  ;;  %v1432_v45 = vmul.f32 %v2971_v35, %v4173_v10  ;;  %1955 = vmatprep.mubr.f32.mxu0 %v4493_v60  ;;  %2035 = vmatprep.mubr.f32.mxu1 %v4513_v23  ;;  %v3071_v28 = vld [vmem:[%s4129_s1 + $0x778] sm:$0xff]  ;;  %v3038_v37 = vld [vmem:[%s4129_s1 + $0x670] sm:$0xff] }
 0x132   : > { %v1334_v50 = vadd.f32 %v1270_v34, %v1139_v39  ;;  %v1106_v51 = vadd.f32 %v1042_v42, %v4177_v12  ;;  %v1074_v27 = vmul.f32 %v4166_v7, %v1009_v3  ;;  %v1627_v56 = vmul.f32 %v3036_v44, %v4180_v14  ;;  %v2940_v34 = vld [vmem:[%s4129_s1 + $0x370] sm:$0xff]  ;;  %v2911_v44 = vld [vmem:[%s4129_s1 + $0x288] sm:$0xff] }
 0x133   : > { %1785 = vst [vmem:[%s4148_s2 + $0x150] sm:$0xff] %v1721_v46  ;;  %v1692_v55 = vadd.f32 %v1628_v18, %v1497_v49  ;;  %v1269_v60 = vmul.f32 %v2938_v15, %v4171_v9  ;;  %v1464_v23 = vmul.f32 %v3003_v31, %v4173_v10  ;;  %v1045_v0 = vmul.f32 %v4166_v7, %v980_v62  ;;  %v3005_v35 = vld [vmem:[%s4129_s1 + $0x570] sm:$0xff]  ;;  %v1014_v62 = vld [vmem:[%s4129_s1 + $0x188] sm:$0xff] }
 0x134   : > { %v1529_v57 = vadd.f32 %v1465_v53, %v1334_v50  ;;  %v1301_v61 = vadd.f32 %v1237_v43, %v1106_v51  ;;  %v1138_v63 = vadd.f32 %v1074_v27, %v4177_v12  ;;  %1956 = vmatmul.mubr.f32.gmra.mxu0 %v4531_v58  ;;  %2036 = vmatmul.mubr.f32.gmra.mxu1 %v4544_v48  ;;  %v3070_v42 = vld [vmem:[%s4129_s1 + $0x770] sm:$0xff]  ;;  %v982_v43 = vld [vmem:[%s4129_s1 + $0x88] sm:$0xff] }
 0x135   : > { %1756 = vst [vmem:[%s4148_s2 + $0x68] sm:$0xff] %v1692_v55  ;;  %v1659_v6 = vmul.f32 %v3068_v41, %v4180_v14  ;;  %v1240_v8 = vmul.f32 %v2909_v52, %v4171_v9  ;;  %v1435_v11 = vmul.f32 %v2974_v54, %v4173_v10  ;;  %1960 = vmatprep.mubr.f32.mxu0 %v4565_v20  ;;  %v3041_v41 = vld [vmem:[%s4129_s1 + $0x688] sm:$0xff] }
 0x136   : > { %2040 = vmatprep.mubr.f32.mxu1 %v4576_v59  ;;  %v1724_v58 = vadd.f32 %v1660_v40, %v1529_v57  ;;  %v1496_v17 = vadd.f32 %v1432_v45, %v1301_v61  ;;  %v1333_v48 = vadd.f32 %v1269_v60, %v1138_v63  ;;  %v1109_v19 = vadd.f32 %v1045_v0, %v4177_v12  ;;  %v2976_v45 = vld [vmem:[%s4129_s1 + $0x488] sm:$0xff]  ;;  %v981_v57 = vld [vmem:[%s4129_s1 + $0x80] sm:$0xff] }
 0x137   : > { %v1630_v21 = vmul.f32 %v3039_v1, %v4180_v14  ;;  %v1077_v22 = vmul.f32 %v4166_v7, %v1012_v4  ;;  %v1272_v24 = vmul.f32 %v2941_v30, %v4171_v9  ;;  %v1467_v26 = vmul.f32 %v3006_v13, %v4173_v10  ;;  %v2943_v52 = vld [vmem:[%s4129_s1 + $0x388] sm:$0xff]  ;;  %v2910_v30 = vld [vmem:[%s4129_s1 + $0x280] sm:$0xff] }
 0x138   : > { %1788 = vst [vmem:[%s4148_s2 + $0x168] sm:$0xff] %v1724_v58  ;;  %v1691_v20 = vadd.f32 %v1627_v56, %v1496_v17  ;;  %v1528_v59 = vadd.f32 %v1464_v23, %v1333_v48  ;;  %v1044_v29 = vmul.f32 %v4166_v7, %v979_v16  ;;  %1961 = vmatmul.mubr.f32.gmra.mxu0 %v4596_v36  ;;  %v3008_v23 = vld [vmem:[%s4129_s1 + $0x588] sm:$0xff] }
 0x139   : > { %2041 = vmatmul.mubr.f32.gmra.mxu1 %v1721_v46  ;;  %v1304_v33 = vadd.f32 %v1240_v8, %v1109_v19  ;;  %v1141_v2 = vadd.f32 %v1077_v22, %v4177_v12  ;;  %v1239_v18 = vmul.f32 %v2908_v47, %v4171_v9  ;;  %1965 = vmatprep.mubr.f32.mxu0 %v1692_v55  ;;  %v3073_v4 = vld [vmem:[%s4129_s1 + $0x788] sm:$0xff]  ;;  %v2942_v22 = vld [vmem:[%s4129_s1 + $0x380] sm:$0xff] }
 0x13a   : > { %2045 = vmatprep.mubr.f32.mxu1 %v1724_v58  ;;  %1755 = vst [vmem:[%s4148_s2 + $0x60] sm:$0xff] %v1691_v20  ;;  %v1723_v38 = vadd.f32 %v1659_v6, %v1528_v59  ;;  %v1108_v36 = vadd.f32 %v1044_v29, %v4177_v12  ;;  %v1434_v5 = vmul.f32 %v2973_v25, %v4173_v10  ;;  %v2975_v6 = vld [vmem:[%s4129_s1 + $0x480] sm:$0xff] }
 0x13b   : > { %v1499_v53 = vadd.f32 %v1435_v11, %v1304_v33  ;;  %v1336_v3 = vadd.f32 %v1272_v24, %v1141_v2  ;;  %v1662_v39 = vmul.f32 %v3071_v28, %v4180_v14  ;;  %v1076_v40 = vmul.f32 %v4166_v7, %v1011_v32  ;;  %v1013_v58 = vld [vmem:[%s4129_s1 + $0x180] sm:$0xff]  ;;  %v984_v28 = vld [vmem:[%s4129_s1 + $0x98] sm:$0xff] }
 0x13c   : > { %1787 = vst [vmem:[%s4148_s2 + $0x160] sm:$0xff] %v1723_v38  ;;  %v1303_v15 = vadd.f32 %v1239_v18, %v1108_v36  ;;  %v1629_v31 = vmul.f32 %v3038_v37, %v4180_v14  ;;  %v1271_v46 = vmul.f32 %v2940_v34, %v4171_v9  ;;  %v1466_v49 = vmul.f32 %v3005_v35, %v4173_v10  ;;  %v3007_v24 = vld [vmem:[%s4129_s1 + $0x580] sm:$0xff]  ;;  %v2913_v37 = vld [vmem:[%s4129_s1 + $0x298] sm:$0xff] }
 0x13d   : > { %1966 = vmatmul.mubr.f32.gmra.mxu0 %v1691_v20  ;;  %2046 = vmatmul.mubr.f32.gmra.mxu1 %v1723_v38  ;;  %v1694_v50 = vadd.f32 %v1630_v21, %v1499_v53  ;;  %v1531_v51 = vadd.f32 %v1467_v26, %v1336_v3  ;;  %v1140_v27 = vadd.f32 %v1076_v40, %v4177_v12  ;;  %v3040_v21 = vld [vmem:[%s4129_s1 + $0x680] sm:$0xff]  ;;  %v2978_v34 = vld [vmem:[%s4129_s1 + $0x498] sm:$0xff] }
 0x13e   : > { %v1498_v54 = vadd.f32 %v1434_v5, %v1303_v15  ;;  %v1661_v55 = vmul.f32 %v3070_v42, %v4180_v14  ;;  %v1047_v56 = vmul.f32 %v4166_v7, %v982_v43  ;;  %v1242_v60 = vmul.f32 %v2911_v44, %v4171_v9  ;;  %v3072_v18 = vld [vmem:[%s4129_s1 + $0x780] sm:$0xff]  ;;  %v3043_v53 = vld [vmem:[%s4129_s1 + $0x698] sm:$0xff] }
 0x13f   : > { %1758 = vst [vmem:[%s4148_s2 + $0x78] sm:$0xff] %v1694_v50  ;;  %1970 = vmatprep.mubr.f32.mxu0 %v1694_v50  ;;  %v1726_v61 = vadd.f32 %v1662_v39, %v1531_v51  ;;  %v1335_v63 = vadd.f32 %v1271_v46, %v1140_v27  ;;  %v1437_v0 = vmul.f32 %v2976_v45, %v4173_v10  ;;  %v1016_v43 = vld [vmem:[%s4129_s1 + $0x198] sm:$0xff] }
 0x140   : > { %v1079_v1 = vmul.f32 %v4166_v7, %v1014_v62  ;;  %v1693_v8 = vadd.f32 %v1629_v31, %v1498_v54  ;;  %v1111_v11 = vadd.f32 %v1047_v56, %v4177_v12  ;;  %v1632_v13 = vmul.f32 %v3041_v41, %v4180_v14  ;;  %v2945_v44 = vld [vmem:[%s4129_s1 + $0x398] sm:$0xff]  ;;  %v983_v62 = vld [vmem:[%s4129_s1 + $0x90] sm:$0xff] }
 0x141   : > { %v1274_v16 = vmul.f32 %v2943_v52, %v4171_v9  ;;  %1790 = vst [vmem:[%s4148_s2 + $0x178] sm:$0xff] %v1726_v61  ;;  %2050 = vmatprep.mubr.f32.mxu1 %v1726_v61  ;;  %v1530_v17 = vadd.f32 %v1466_v49, %v1335_v63  ;;  %v1469_v47 = vmul.f32 %v3008_v23, %v4173_v10  ;;  %v3010_v15 = vld [vmem:[%s4129_s1 + $0x598] sm:$0xff]  ;;  %v2912_v54 = vld [vmem:[%s4129_s1 + $0x290] sm:$0xff] }
 0x142   : > { %v1143_v48 = vadd.f32 %v1079_v1, %v4177_v12  ;;  %v1046_v19 = vmul.f32 %v4166_v7, %v981_v57  ;;  %1757 = vst [vmem:[%s4148_s2 + $0x70] sm:$0xff] %v1693_v8  ;;  %1971 = vmatmul.mubr.f32.gmra.mxu0 %v1693_v8  ;;  %v1306_v25 = vadd.f32 %v1242_v60, %v1111_v11  ;;  %v3075_v52 = vld [vmem:[%s4129_s1 + $0x798] sm:$0xff]  ;;  %v1015_v61 = vld [vmem:[%s4129_s1 + $0x190] sm:$0xff] }
 0x143   : > { %v1664_v20 = vmul.f32 %v3073_v4, %v4180_v14  ;;  %v1241_v59 = vmul.f32 %v2910_v30, %v4171_v9  ;;  %v1436_v26 = vmul.f32 %v2975_v6, %v4173_v10  ;;  %v1725_v29 = vadd.f32 %v1661_v55, %v1530_v17  ;;  %v2977_v55 = vld [vmem:[%s4129_s1 + $0x490] sm:$0xff]  ;;  %v986_v17 = vld [vmem:[%s4129_s1 + $0xa8] sm:$0xff] }
 0x144   : > { %v1338_v32 = vadd.f32 %v1274_v16, %v1143_v48  ;;  %v1110_v33 = vadd.f32 %v1046_v19, %v4177_v12  ;;  %v1078_v2 = vmul.f32 %v4166_v7, %v1013_v58  ;;  %v1501_v35 = vadd.f32 %v1437_v0, %v1306_v25  ;;  %v3042_v30 = vld [vmem:[%s4129_s1 + $0x690] sm:$0xff]  ;;  %v2980_v25 = vld [vmem:[%s4129_s1 + $0x4a8] sm:$0xff] }
 0x145   : > { %v1631_v38 = vmul.f32 %v3040_v21, %v4180_v14  ;;  %v1273_v36 = vmul.f32 %v2942_v22, %v4171_v9  ;;  %v1468_v5 = vmul.f32 %v3007_v24, %v4173_v10  ;;  %1789 = vst [vmem:[%s4148_s2 + $0x170] sm:$0xff] %v1725_v29  ;;  %2051 = vmatmul.mubr.f32.gmra.mxu1 %v1725_v29  ;;  %v2944_v6 = vld [vmem:[%s4129_s1 + $0x390] sm:$0xff]  ;;  %v2915_v24 = vld [vmem:[%s4129_s1 + $0x2a8] sm:$0xff] }
 0x146   : > { %v1533_v3 = vadd.f32 %v1469_v47, %v1338_v32  ;;  %v1305_v39 = vadd.f32 %v1241_v59, %v1110_v33  ;;  %v1142_v40 = vadd.f32 %v1078_v2, %v4177_v12  ;;  %v1049_v42 = vmul.f32 %v4166_v7, %v984_v28  ;;  %v3009_v8 = vld [vmem:[%s4129_s1 + $0x590] sm:$0xff]  ;;  %v1018_v29 = vld [vmem:[%s4129_s1 + $0x1a8] sm:$0xff] }
 0x147   : > { %v1696_v31 = vadd.f32 %v1632_v13, %v1501_v35  ;;  %v1663_v46 = vmul.f32 %v3072_v18, %v4180_v14  ;;  %v1244_v49 = vmul.f32 %v2913_v37, %v4171_v9  ;;  %v1439_v45 = vmul.f32 %v2978_v34, %v4173_v10  ;;  %v3074_v22 = vld [vmem:[%s4129_s1 + $0x790] sm:$0xff]  ;;  %v3045_v37 = vld [vmem:[%s4129_s1 + $0x6a8] sm:$0xff] }
 0x148   : > { %v1728_v50 = vadd.f32 %v1664_v20, %v1533_v3  ;;  %v1500_v51 = vadd.f32 %v1436_v26, %v1305_v39  ;;  %v1337_v27 = vadd.f32 %v1273_v36, %v1142_v40  ;;  %v1113_v41 = vadd.f32 %v1049_v42, %v4177_v12  ;;  %v2947_v34 = vld [vmem:[%s4129_s1 + $0x3a8] sm:$0xff] }
 0x149   : > { %1760 = vst [vmem:[%s4148_s2 + $0x88] sm:$0xff] %v1696_v31  ;;  %1975 = vmatprep.mubr.f32.mxu0 %v1696_v31  ;;  %v1634_v56 = vmul.f32 %v3043_v53, %v4180_v14  ;;  %v1081_v60 = vmul.f32 %v4166_v7, %v1016_v43  ;;  %v1276_v23 = vmul.f32 %v2945_v44, %v4171_v9  ;;  %v3012_v35 = vld [vmem:[%s4129_s1 + $0x5a8] sm:$0xff]  ;;  %v985_v44 = vld [vmem:[%s4129_s1 + $0xa0] sm:$0xff] }
 0x14a   : > { %v1471_v57 = vmul.f32 %v3010_v15, %v4173_v10  ;;  %1792 = vst [vmem:[%s4148_s2 + $0x188] sm:$0xff] %v1728_v50  ;;  %2055 = vmatprep.mubr.f32.mxu1 %v1728_v50  ;;  %v1695_v63 = vadd.f32 %v1631_v38, %v1500_v51  ;;  %v1532_v0 = vadd.f32 %v1468_v5, %v1337_v27  ;;  %v3077_v3 = vld [vmem:[%s4129_s1 + $0x7a8] sm:$0xff]  ;;  %v2914_v15 = vld [vmem:[%s4129_s1 + $0x2a0] sm:$0xff] }
 0x14b   : > { %v1308_v1 = vadd.f32 %v1244_v49, %v1113_v41  ;;  %v1048_v4 = vmul.f32 %v4166_v7, %v983_v62  ;;  %v1145_v11 = vadd.f32 %v1081_v60, %v4177_v12  ;;  %v1666_v13 = vmul.f32 %v3075_v52, %v4180_v14  ;;  %v2979_v31 = vld [vmem:[%s4129_s1 + $0x4a0] sm:$0xff] }
 0x14c   : > { %v1243_v16 = vmul.f32 %v2912_v54, %v4171_v9  ;;  %v1438_v58 = vmul.f32 %v2977_v55, %v4173_v10  ;;  %1759 = vst [vmem:[%s4148_s2 + $0x80] sm:$0xff] %v1695_v63  ;;  %1976 = vmatmul.mubr.f32.gmra.mxu0 %v1695_v63  ;;  %v1727_v48 = vadd.f32 %v1663_v46, %v1532_v0  ;;  %v1017_v50 = vld [vmem:[%s4129_s1 + $0x1a0] sm:$0xff]  ;;  %v988_v63 = vld [vmem:[%s4129_s1 + $0xb8] sm:$0xff] }
 0x14d   : > { %v1503_v47 = vadd.f32 %v1439_v45, %v1308_v1  ;;  %v1112_v19 = vadd.f32 %v1048_v4, %v4177_v12  ;;  %v1080_v21 = vmul.f32 %v4166_v7, %v1015_v61  ;;  %v1340_v20 = vadd.f32 %v1276_v23, %v1145_v11  ;;  %v3044_v54 = vld [vmem:[%s4129_s1 + $0x6a0] sm:$0xff]  ;;  %v2982_v11 = vld [vmem:[%s4129_s1 + $0x4b8] sm:$0xff] }
 0x14e   : > { %v1633_v59 = vmul.f32 %v3042_v30, %v4180_v14  ;;  %v1275_v26 = vmul.f32 %v2944_v6, %v4171_v9  ;;  %v1470_v28 = vmul.f32 %v3009_v8, %v4173_v10  ;;  %1791 = vst [vmem:[%s4148_s2 + $0x180] sm:$0xff] %v1727_v48  ;;  %2056 = vmatmul.mubr.f32.gmra.mxu1 %v1727_v48  ;;  %v2946_v55 = vld [vmem:[%s4129_s1 + $0x3a0] sm:$0xff]  ;;  %v2917_v8 = vld [vmem:[%s4129_s1 + $0x2b8] sm:$0xff] }
 0x14f   : > { %v1698_v32 = vadd.f32 %v1634_v56, %v1503_v47  ;;  %v1307_v33 = vadd.f32 %v1243_v16, %v1112_v19  ;;  %v1144_v2 = vadd.f32 %v1080_v21, %v4177_v12  ;;  %v1051_v18 = vmul.f32 %v4166_v7, %v986_v17  ;;  %v3011_v56 = vld [vmem:[%s4129_s1 + $0x5a0] sm:$0xff]  ;;  %v1020_v48 = vld [vmem:[%s4129_s1 + $0x1b8] sm:$0xff] }
 0x150   : > { %v1535_v38 = vadd.f32 %v1471_v57, %v1340_v20  ;;  %v1665_v36 = vmul.f32 %v3074_v22, %v4180_v14  ;;  %v1246_v5 = vmul.f32 %v2915_v24, %v4171_v9  ;;  %v1441_v53 = vmul.f32 %v2980_v25, %v4173_v10  ;;  %v3076_v6 = vld [vmem:[%s4129_s1 + $0x7a0] sm:$0xff]  ;;  %v3047_v24 = vld [vmem:[%s4129_s1 + $0x6b8] sm:$0xff] }
 0x151   : > { %1762 = vst [vmem:[%s4148_s2 + $0x98] sm:$0xff] %v1698_v32  ;;  %1980 = vmatprep.mubr.f32.mxu0 %v1698_v32  ;;  %v1502_v39 = vadd.f32 %v1438_v58, %v1307_v33  ;;  %v1339_v40 = vadd.f32 %v1275_v26, %v1144_v2  ;;  %v1115_v42 = vadd.f32 %v1051_v18, %v4177_v12  ;;  %v2949_v25 = vld [vmem:[%s4129_s1 + $0x3b8] sm:$0xff]  ;;  %v987_v32 = vld [vmem:[%s4129_s1 + $0xb0] sm:$0xff] }
 0x152   : > { %v1083_v43 = vmul.f32 %v4166_v7, %v1018_v29  ;;  %v1730_v46 = vadd.f32 %v1666_v13, %v1535_v38  ;;  %v1636_v49 = vmul.f32 %v3045_v37, %v4180_v14  ;;  %v1278_v45 = vmul.f32 %v2947_v34, %v4171_v9  ;;  %v3014_v20 = vld [vmem:[%s4129_s1 + $0x5b8] sm:$0xff]  ;;  %v2981_v38 = vld [vmem:[%s4129_s1 + $0x4b0] sm:$0xff] }
 0x153   : > { %v1473_v62 = vmul.f32 %v3012_v35, %v4173_v10  ;;  %v1697_v51 = vadd.f32 %v1633_v59, %v1502_v39  ;;  %v1534_v27 = vadd.f32 %v1470_v28, %v1339_v40  ;;  %v1310_v41 = vadd.f32 %v1246_v5, %v1115_v42  ;;  %v3079_v34 = vld [vmem:[%s4129_s1 + $0x7b8] sm:$0xff]  ;;  %v2916_v35 = vld [vmem:[%s4129_s1 + $0x2b0] sm:$0xff] }
 0x154   : > { %v1147_v52 = vadd.f32 %v1083_v43, %v4177_v12  ;;  %1794 = vst [vmem:[%s4148_s2 + $0x198] sm:$0xff] %v1730_v46  ;;  %2060 = vmatprep.mubr.f32.mxu1 %v1730_v46  ;;  %v1668_v60 = vmul.f32 %v3077_v3, %v4180_v14  ;;  %v1050_v23 = vmul.f32 %v4166_v7, %v985_v44  ;;  %v3046_v39 = vld [vmem:[%s4129_s1 + $0x6b0] sm:$0xff] }
 0x155   : > { %v1245_v57 = vmul.f32 %v2914_v15, %v4171_v9  ;;  %v1440_v61 = vmul.f32 %v2979_v31, %v4173_v10  ;;  %1761 = vst [vmem:[%s4148_s2 + $0x90] sm:$0xff] %v1697_v51  ;;  %1981 = vmatmul.mubr.f32.gmra.mxu0 %v1697_v51  ;;  %v1729_v0 = vadd.f32 %v1665_v36, %v1534_v27  ;;  %v1019_v15 = vld [vmem:[%s4129_s1 + $0x1b0] sm:$0xff]  ;;  %v990_v51 = vld [vmem:[%s4129_s1 + $0xc8] sm:$0xff] }
 0x156   : > { %v1505_v1 = vadd.f32 %v1441_v53, %v1310_v41  ;;  %v1342_v4 = vadd.f32 %v1278_v45, %v1147_v52  ;;  %v1082_v30 = vmul.f32 %v4166_v7, %v1017_v50  ;;  %v1114_v13 = vadd.f32 %v1050_v23, %v4177_v12  ;;  %v2948_v31 = vld [vmem:[%s4129_s1 + $0x3b0] sm:$0xff] }
 0x157   : > { %v1635_v16 = vmul.f32 %v3044_v54, %v4180_v14  ;;  %v1277_v58 = vmul.f32 %v2946_v55, %v4171_v9  ;;  %v1472_v17 = vmul.f32 %v3011_v56, %v4173_v10  ;;  %1793 = vst [vmem:[%s4148_s2 + $0x190] sm:$0xff] %v1729_v0  ;;  %2061 = vmatmul.mubr.f32.gmra.mxu1 %v1729_v0  ;;  %v3013_v46 = vld [vmem:[%s4129_s1 + $0x5b0] sm:$0xff]  ;;  %v2919_v56 = vld [vmem:[%s4129_s1 + $0x2c8] sm:$0xff] }
 0x158   : > { %v1700_v47 = vadd.f32 %v1636_v49, %v1505_v1  ;;  %v1537_v19 = vadd.f32 %v1473_v62, %v1342_v4  ;;  %v1146_v21 = vadd.f32 %v1082_v30, %v4177_v12  ;;  %v1053_v22 = vmul.f32 %v4166_v7, %v988_v63  ;;  %v3078_v55 = vld [vmem:[%s4129_s1 + $0x7b0] sm:$0xff]  ;;  %v1022_v0 = vld [vmem:[%s4129_s1 + $0x1c8] sm:$0xff] }
 0x159   : > { %v1309_v59 = vadd.f32 %v1245_v57, %v1114_v13  ;;  %v1667_v26 = vmul.f32 %v3076_v6, %v4180_v14  ;;  %v1248_v28 = vmul.f32 %v2917_v8, %v4171_v9  ;;  %v1443_v29 = vmul.f32 %v2982_v11, %v4173_v10  ;;  %v3049_v8 = vld [vmem:[%s4129_s1 + $0x6c8] sm:$0xff] }
 0x15a   : > { %1764 = vst [vmem:[%s4148_s2 + $0xa8] sm:$0xff] %v1700_v47  ;;  %1985 = vmatprep.mubr.f32.mxu0 %v1700_v47  ;;  %v1732_v33 = vadd.f32 %v1668_v60, %v1537_v19  ;;  %v1341_v2 = vadd.f32 %v1277_v58, %v1146_v21  ;;  %v1117_v18 = vadd.f32 %v1053_v22, %v4177_v12  ;;  %v2984_v60 = vld [vmem:[%s4129_s1 + $0x4c8] sm:$0xff]  ;;  %v989_v47 = vld [vmem:[%s4129_s1 + $0xc0] sm:$0xff] }
 0x15b   : > { %v1085_v37 = vmul.f32 %v4166_v7, %v1020_v48  ;;  %v1504_v36 = vadd.f32 %v1440_v61, %v1309_v59  ;;  %v1638_v5 = vmul.f32 %v3047_v24, %v4180_v14  ;;  %v1280_v53 = vmul.f32 %v2949_v25, %v4171_v9  ;;  %v2951_v11 = vld [vmem:[%s4129_s1 + $0x3c8] sm:$0xff]  ;;  %v2983_v59 = vld [vmem:[%s4129_s1 + $0x4c0] sm:$0xff] }
 0x15c   : > { %v1475_v3 = vmul.f32 %v3014_v20, %v4173_v10  ;;  %1796 = vst [vmem:[%s4148_s2 + $0x1a8] sm:$0xff] %v1732_v33  ;;  %2065 = vmatprep.mubr.f32.mxu1 %v1732_v33  ;;  %v1536_v40 = vadd.f32 %v1472_v17, %v1341_v2  ;;  %v1312_v42 = vadd.f32 %v1248_v28, %v1117_v18  ;;  %v3016_v13 = vld [vmem:[%s4129_s1 + $0x5c8] sm:$0xff]  ;;  %v2918_v20 = vld [vmem:[%s4129_s1 + $0x2c0] sm:$0xff] }
 0x15d   : > { %v1149_v43 = vadd.f32 %v1085_v37, %v4177_v12  ;;  %v1052_v44 = vmul.f32 %v4166_v7, %v987_v32  ;;  %v1699_v49 = vadd.f32 %v1635_v16, %v1504_v36  ;;  %v1670_v45 = vmul.f32 %v3079_v34, %v4180_v14  ;;  %v3081_v25 = vld [vmem:[%s4129_s1 + $0x7c8] sm:$0xff]  ;;  %v1021_v33 = vld [vmem:[%s4129_s1 + $0x1c0] sm:$0xff] }
 0x15e   : > { %v1247_v62 = vmul.f32 %v2916_v35, %v4171_v9  ;;  %v1442_v50 = vmul.f32 %v2981_v38, %v4173_v10  ;;  %v1731_v27 = vadd.f32 %v1667_v26, %v1536_v40  ;;  %v1507_v41 = vadd.f32 %v1443_v29, %v1312_v42  ;;  %v3048_v35 = vld [vmem:[%s4129_s1 + $0x6c0] sm:$0xff] }
 0x15f   : > { %v1344_v52 = vadd.f32 %v1280_v53, %v1149_v43  ;;  %v1116_v54 = vadd.f32 %v1052_v44, %v4177_v12  ;;  %1763 = vst [vmem:[%s4148_s2 + $0xa0] sm:$0xff] %v1699_v49  ;;  %1986 = vmatmul.mubr.f32.gmra.mxu0 %v1699_v49  ;;  %v1637_v23 = vmul.f32 %v3046_v39, %v4180_v14  ;;  %v2950_v38 = vld [vmem:[%s4129_s1 + $0x3c0] sm:$0xff]  ;;  %v2986_v49 = vld [vmem:[%s4129_s1 + $0x4d8] sm:$0xff] }
 0x160   : > { %v1084_v57 = vmul.f32 %v4166_v7, %v1019_v15  ;;  %v1279_v61 = vmul.f32 %v2948_v31, %v4171_v9  ;;  %v1474_v63 = vmul.f32 %v3013_v46, %v4173_v10  ;;  %1795 = vst [vmem:[%s4148_s2 + $0x1a0] sm:$0xff] %v1731_v27  ;;  %2066 = vmatmul.mubr.f32.gmra.mxu1 %v1731_v27  ;;  %v3015_v36 = vld [vmem:[%s4129_s1 + $0x5c0] sm:$0xff]  ;;  %v992_v31 = vld [vmem:[%s4129_s1 + $0xd8] sm:$0xff] }
 0x161   : > { %v1702_v1 = vadd.f32 %v1638_v5, %v1507_v41  ;;  %v1539_v4 = vadd.f32 %v1475_v3, %v1344_v52  ;;  %v1311_v30 = vadd.f32 %v1247_v62, %v1116_v54  ;;  %v1055_v6 = vmul.f32 %v4166_v7, %v990_v51  ;;  %v3080_v40 = vld [vmem:[%s4129_s1 + $0x7c0] sm:$0xff]  ;;  %v2921_v46 = vld [vmem:[%s4129_s1 + $0x2d8] sm:$0xff] }
 0x162   : > { %v1148_v16 = vadd.f32 %v1084_v57, %v4177_v12  ;;  %v1669_v58 = vmul.f32 %v3078_v55, %v4180_v14  ;;  %v1250_v17 = vmul.f32 %v2919_v56, %v4171_v9  ;;  %v1445_v48 = vmul.f32 %v2984_v60, %v4173_v10  ;;  %v1024_v27 = vld [vmem:[%s4129_s1 + $0x1d8] sm:$0xff] }
 0x163   : > { %1766 = vst [vmem:[%s4148_s2 + $0xb8] sm:$0xff] %v1702_v1  ;;  %1990 = vmatprep.mubr.f32.mxu0 %v1702_v1  ;;  %v1734_v19 = vadd.f32 %v1670_v45, %v1539_v4  ;;  %v1506_v21 = vadd.f32 %v1442_v50, %v1311_v30  ;;  %v1119_v22 = vadd.f32 %v1055_v6, %v4177_v12  ;;  %v3051_v56 = vld [vmem:[%s4129_s1 + $0x6d8] sm:$0xff]  ;;  %v991_v1 = vld [vmem:[%s4129_s1 + $0xd0] sm:$0xff] }
 0x164   : > { %v1087_v24 = vmul.f32 %v4166_v7, %v1022_v0  ;;  %v1343_v26 = vadd.f32 %v1279_v61, %v1148_v16  ;;  %v1640_v28 = vmul.f32 %v3049_v8, %v4180_v14  ;;  %v1282_v29 = vmul.f32 %v2951_v11, %v4171_v9  ;;  %v2953_v60 = vld [vmem:[%s4129_s1 + $0x3d8] sm:$0xff]  ;;  %v2985_v16 = vld [vmem:[%s4129_s1 + $0x4d0] sm:$0xff] }
 0x165   : > { %v1477_v32 = vmul.f32 %v3016_v13, %v4173_v10  ;;  %1798 = vst [vmem:[%s4148_s2 + $0x1b8] sm:$0xff] %v1734_v19  ;;  %2070 = vmatprep.mubr.f32.mxu1 %v1734_v19  ;;  %v1701_v2 = vadd.f32 %v1637_v23, %v1506_v21  ;;  %v1314_v18 = vadd.f32 %v1250_v17, %v1119_v22  ;;  %v3018_v23 = vld [vmem:[%s4129_s1 + $0x5d8] sm:$0xff]  ;;  %v2920_v13 = vld [vmem:[%s4129_s1 + $0x2d0] sm:$0xff] }
 0x166   : > { %v1151_v37 = vadd.f32 %v1087_v24, %v4177_v12  ;;  %v1054_v34 = vmul.f32 %v4166_v7, %v989_v47  ;;  %v1538_v5 = vadd.f32 %v1474_v63, %v1343_v26  ;;  %v1672_v53 = vmul.f32 %v3081_v25, %v4180_v14  ;;  %v3083_v11 = vld [vmem:[%s4129_s1 + $0x7d8] sm:$0xff]  ;;  %v1023_v19 = vld [vmem:[%s4129_s1 + $0x1d0] sm:$0xff] }
 0x167   : > { %v1249_v3 = vmul.f32 %v2918_v20, %v4171_v9  ;;  %v1444_v39 = vmul.f32 %v2983_v59, %v4173_v10  ;;  %1765 = vst [vmem:[%s4148_s2 + $0xb0] sm:$0xff] %v1701_v2  ;;  %1991 = vmatmul.mubr.f32.gmra.mxu0 %v1701_v2  ;;  %v1509_v42 = vadd.f32 %v1445_v48, %v1314_v18  ;;  %v3050_v20 = vld [vmem:[%s4129_s1 + $0x6d0] sm:$0xff]  ;;  %v994_v2 = vld [vmem:[%s4129_s1 + $0xe8] sm:$0xff] }
 0x168   : > { %v1346_v43 = vadd.f32 %v1282_v29, %v1151_v37  ;;  %v1118_v44 = vadd.f32 %v1054_v34, %v4177_v12  ;;  %v1086_v15 = vmul.f32 %v4166_v7, %v1021_v33  ;;  %v1733_v45 = vadd.f32 %v1669_v58, %v1538_v5  ;;  %v2952_v59 = vld [vmem:[%s4129_s1 + $0x3d0] sm:$0xff]  ;;  %v2988_v5 = vld [vmem:[%s4129_s1 + $0x4e8] sm:$0xff] }
 0x169   : > { %v1639_v62 = vmul.f32 %v3048_v35, %v4180_v14  ;;  %v1281_v50 = vmul.f32 %v2950_v38, %v4171_v9  ;;  %v1476_v51 = vmul.f32 %v3015_v36, %v4173_v10  ;;  %v1704_v41 = vadd.f32 %v1640_v28, %v1509_v42  ;;  %v3017_v26 = vld [vmem:[%s4129_s1 + $0x5d0] sm:$0xff]  ;;  %v2923_v36 = vld [vmem:[%s4129_s1 + $0x2e8] sm:$0xff] }
 0x16a   : > { %v1541_v52 = vadd.f32 %v1477_v32, %v1346_v43  ;;  %v1313_v54 = vadd.f32 %v1249_v3, %v1118_v44  ;;  %v1150_v55 = vadd.f32 %v1086_v15, %v4177_v12  ;;  %1797 = vst [vmem:[%s4148_s2 + $0x1b0] sm:$0xff] %v1733_v45  ;;  %2071 = vmatmul.mubr.f32.gmra.mxu1 %v1733_v45  ;;  %v3082_v38 = vld [vmem:[%s4129_s1 + $0x7d0] sm:$0xff]  ;;  %v3053_v42 = vld [vmem:[%s4129_s1 + $0x6e8] sm:$0xff] }
 0x16b   : > { %v1671_v57 = vmul.f32 %v3080_v40, %v4180_v14  ;;  %v1057_v61 = vmul.f32 %v4166_v7, %v992_v31  ;;  %v1252_v63 = vmul.f32 %v2921_v46, %v4171_v9  ;;  %v1447_v0 = vmul.f32 %v2986_v49, %v4173_v10  ;;  %1768 = vst [vmem:[%s4148_s2 + $0xc8] sm:$0xff] %v1704_v41  ;;  %v1026_v46 = vld [vmem:[%s4129_s1 + $0x1e8] sm:$0xff] }
 0x16c   : > { %1995 = vmatprep.mubr.f32.mxu0 %v1704_v41  ;;  %v1736_v4 = vadd.f32 %v1672_v53, %v1541_v52  ;;  %v1508_v30 = vadd.f32 %v1444_v39, %v1313_v54  ;;  %v1345_v6 = vadd.f32 %v1281_v50, %v1150_v55  ;;  %v1089_v8 = vmul.f32 %v4166_v7, %v1024_v27  ;;  %v2955_v49 = vld [vmem:[%s4129_s1 + $0x3e8] sm:$0xff]  ;;  %v993_v41 = vld [vmem:[%s4129_s1 + $0xe0] sm:$0xff] }
 0x16d   : > { %v1121_v58 = vadd.f32 %v1057_v61, %v4177_v12  ;;  %v1642_v17 = vmul.f32 %v3051_v56, %v4180_v14  ;;  %v1284_v48 = vmul.f32 %v2953_v60, %v4171_v9  ;;  %v1479_v47 = vmul.f32 %v3018_v23, %v4173_v10  ;;  %v3020_v45 = vld [vmem:[%s4129_s1 + $0x5e8] sm:$0xff]  ;;  %v2922_v23 = vld [vmem:[%s4129_s1 + $0x2e0] sm:$0xff] }
 0x16e   : > { %1800 = vst [vmem:[%s4148_s2 + $0x1c8] sm:$0xff] %v1736_v4  ;;  %2075 = vmatprep.mubr.f32.mxu1 %v1736_v4  ;;  %v1703_v21 = vadd.f32 %v1639_v62, %v1508_v30  ;;  %v1540_v22 = vadd.f32 %v1476_v51, %v1345_v6  ;;  %v1153_v24 = vadd.f32 %v1089_v8, %v4177_v12  ;;  %v3085_v60 = vld [vmem:[%s4129_s1 + $0x7e8] sm:$0xff]  ;;  %v1025_v4 = vld [vmem:[%s4129_s1 + $0x1e0] sm:$0xff] }
 0x16f   : > { %v1056_v25 = vmul.f32 %v4166_v7, %v991_v1  ;;  %v1316_v28 = vadd.f32 %v1252_v63, %v1121_v58  ;;  %v1674_v29 = vmul.f32 %v3083_v11, %v4180_v14  ;;  %v1251_v32 = vmul.f32 %v2920_v13, %v4171_v9  ;;  %v3052_v13 = vld [vmem:[%s4129_s1 + $0x6e0] sm:$0xff] }
 0x170   : > { %v1446_v33 = vmul.f32 %v2985_v16, %v4173_v10  ;;  %1767 = vst [vmem:[%s4148_s2 + $0xc0] sm:$0xff] %v1703_v21  ;;  %1996 = vmatmul.mubr.f32.gmra.mxu0 %v1703_v21  ;;  %v1735_v18 = vadd.f32 %v1671_v57, %v1540_v22  ;;  %v1348_v37 = vadd.f32 %v1284_v48, %v1153_v24  ;;  %v2987_v57 = vld [vmem:[%s4129_s1 + $0x4e0] sm:$0xff]  ;;  %v996_v21 = vld [vmem:[%s4129_s1 + $0xf8] sm:$0xff] }
 0x171   : > { %v1120_v34 = vadd.f32 %v1056_v25, %v4177_v12  ;;  %v1088_v35 = vmul.f32 %v4166_v7, %v1023_v19  ;;  %v1511_v53 = vadd.f32 %v1447_v0, %v1316_v28  ;;  %v1641_v3 = vmul.f32 %v3050_v20, %v4180_v14  ;;  %v2954_v16 = vld [vmem:[%s4129_s1 + $0x3e0] sm:$0xff]  ;;  %v2990_v28 = vld [vmem:[%s4129_s1 + $0x4f8] sm:$0xff] }
 0x172   : > { %v1283_v39 = vmul.f32 %v2952_v59, %v4171_v9  ;;  %v1478_v40 = vmul.f32 %v3017_v26, %v4173_v10  ;;  %1799 = vst [vmem:[%s4148_s2 + $0x1c0] sm:$0xff] %v1735_v18  ;;  %2076 = vmatmul.mubr.f32.gmra.mxu1 %v1735_v18  ;;  %v1543_v43 = vadd.f32 %v1479_v47, %v1348_v37  ;;  %v3019_v58 = vld [vmem:[%s4129_s1 + $0x5e0] sm:$0xff]  ;;  %v2925_v26 = vld [vmem:[%s4129_s1 + $0x2f8] sm:$0xff] }
 0x173   : > { %v1315_v44 = vadd.f32 %v1251_v32, %v1120_v34  ;;  %v1152_v15 = vadd.f32 %v1088_v35, %v4177_v12  ;;  %v1059_v31 = vmul.f32 %v4166_v7, %v994_v2  ;;  %v1706_v62 = vadd.f32 %v1642_v17, %v1511_v53  ;;  %v3084_v59 = vld [vmem:[%s4129_s1 + $0x7e0] sm:$0xff]  ;;  %v1028_v18 = vld [vmem:[%s4129_s1 + $0x1f8] sm:$0xff] }
 0x174   : > { %v1673_v50 = vmul.f32 %v3082_v38, %v4180_v14  ;;  %v1254_v51 = vmul.f32 %v2923_v36, %v4171_v9  ;;  %v1449_v27 = vmul.f32 %v2988_v5, %v4173_v10  ;;  %v1738_v52 = vadd.f32 %v1674_v29, %v1543_v43  ;;  %v3055_v36 = vld [vmem:[%s4129_s1 + $0x6f8] sm:$0xff] }
 0x175   : > { %v1510_v54 = vadd.f32 %v1446_v33, %v1315_v44  ;;  %v1347_v55 = vadd.f32 %v1283_v39, %v1152_v15  ;;  %v1123_v56 = vadd.f32 %v1059_v31, %v4177_v12  ;;  %1770 = vst [vmem:[%s4148_s2 + $0xd8] sm:$0xff] %v1706_v62  ;;  %2000 = vmatprep.mubr.f32.mxu0 %v1706_v62  ;;  %v2957_v5 = vld [vmem:[%s4129_s1 + $0x3f8] sm:$0xff] }
 0x176   : > { %v1644_v61 = vmul.f32 %v3053_v42, %v4180_v14  ;;  %v1091_v63 = vmul.f32 %v4166_v7, %v1026_v46  ;;  %v1286_v0 = vmul.f32 %v2955_v49, %v4171_v9  ;;  %v1481_v1 = vmul.f32 %v3020_v45, %v4173_v10  ;;  %1802 = vst [vmem:[%s4148_s2 + $0x1d8] sm:$0xff] %v1738_v52  ;;  %v3022_v53 = vld [vmem:[%s4129_s1 + $0x5f8] sm:$0xff]  ;;  %v995_v49 = vld [vmem:[%s4129_s1 + $0xf0] sm:$0xff] }
 0x177   : > { %2080 = vmatprep.mubr.f32.mxu1 %v1738_v52  ;;  %v1705_v30 = vadd.f32 %v1641_v3, %v1510_v54  ;;  %v1542_v6 = vadd.f32 %v1478_v40, %v1347_v55  ;;  %v1318_v8 = vadd.f32 %v1254_v51, %v1123_v56  ;;  %v1058_v11 = vmul.f32 %v4166_v7, %v993_v41  ;;  %v3087_v46 = vld [vmem:[%s4129_s1 + $0x7f8] sm:$0xff]  ;;  %v2924_v45 = vld [vmem:[%s4129_s1 + $0x2f0] sm:$0xff] }
 0x178   : > { %v1155_v17 = vadd.f32 %v1091_v63, %v4177_v12  ;;  %v1676_v48 = vmul.f32 %v3085_v60, %v4180_v14  ;;  %v1253_v47 = vmul.f32 %v2922_v23, %v4171_v9  ;;  %v1448_v19 = vmul.f32 %v2987_v57, %v4173_v10  ;;  %v1027_v41 = vld [vmem:[%s4129_s1 + $0x1f0] sm:$0xff] }
 0x179   : > { %1769 = vst [vmem:[%s4148_s2 + $0xd0] sm:$0xff] %v1705_v30  ;;  %2001 = vmatmul.mubr.f32.gmra.mxu0 %v1705_v30  ;;  %v1737_v22 = vadd.f32 %v1673_v50, %v1542_v6  ;;  %v1513_v24 = vadd.f32 %v1449_v27, %v1318_v8  ;;  %v1122_v25 = vadd.f32 %v1058_v11, %v4177_v12  ;;  %v2989_v60 = vld [vmem:[%s4129_s1 + $0x4f0] sm:$0xff] }
 0x17a   : > { %v1090_v20 = vmul.f32 %v4166_v7, %v1025_v4  ;;  %v1350_v29 = vadd.f32 %v1286_v0, %v1155_v17  ;;  %v1643_v32 = vmul.f32 %v3052_v13, %v4180_v14  ;;  %v1285_v33 = vmul.f32 %v2954_v16, %v4171_v9  ;;  %v2956_v23 = vld [vmem:[%s4129_s1 + $0x3f0] sm:$0xff] }
 0x17b   : > { %v1480_v2 = vmul.f32 %v3019_v58, %v4173_v10  ;;  %1801 = vst [vmem:[%s4148_s2 + $0x1d0] sm:$0xff] %v1737_v22  ;;  %2081 = vmatmul.mubr.f32.gmra.mxu1 %v1737_v22  ;;  %v1708_v37 = vadd.f32 %v1644_v61, %v1513_v24  ;;  %v1317_v34 = vadd.f32 %v1253_v47, %v1122_v25  ;;  %v3021_v0 = vld [vmem:[%s4129_s1 + $0x5f0] sm:$0xff] }
 0x17c   : > { %v1154_v35 = vadd.f32 %v1090_v20, %v4177_v12  ;;  %v1061_v38 = vmul.f32 %v4166_v7, %v996_v21  ;;  %v1545_v3 = vadd.f32 %v1481_v1, %v1350_v29  ;;  %v1675_v39 = vmul.f32 %v3084_v59, %v4180_v14  ;;  %v3054_v6 = vld [vmem:[%s4129_s1 + $0x6f0] sm:$0xff] }
 0x17d   : > { %v1256_v40 = vmul.f32 %v2925_v26, %v4171_v9  ;;  %v1451_v42 = vmul.f32 %v2990_v28, %v4173_v10  ;;  %1772 = vst [vmem:[%s4148_s2 + $0xe8] sm:$0xff] %v1708_v37  ;;  %2005 = vmatprep.mubr.f32.mxu0 %v1708_v37  ;;  %v1512_v43 = vadd.f32 %v1448_v19, %v1317_v34  ;;  %v3086_v58 = vld [vmem:[%s4129_s1 + $0x7f0] sm:$0xff]  ;;  %v1808_v37 = vld [vmem:[#allocation2] sm:$0xff] }
 0x17e   : > { %v1349_v44 = vadd.f32 %v1285_v33, %v1154_v35  ;;  %v1125_v15 = vadd.f32 %v1061_v38, %v4177_v12  ;;  %v1093_v31 = vmul.f32 %v4166_v7, %v1028_v18  ;;  %v1740_v62 = vadd.f32 %v1676_v48, %v1545_v3  ;;  %v1809_v3 = vld [vmem:[#allocation2 + $0xd8] sm:$0xff] }
 0x17f   : > { %v1646_v50 = vmul.f32 %v3055_v36, %v4180_v14  ;;  %v1288_v51 = vmul.f32 %v2957_v5, %v4171_v9  ;;  %v1483_v27 = vmul.f32 %v3022_v53, %v4173_v10  ;;  %v1707_v52 = vadd.f32 %v1643_v32, %v1512_v43 }
 0x180   : > { %v1544_v54 = vadd.f32 %v1480_v2, %v1349_v44  ;;  %v1320_v55 = vadd.f32 %v1256_v40, %v1125_v15  ;;  %v1157_v56 = vadd.f32 %v1093_v31, %v4177_v12  ;;  %1804 = vst [vmem:[%s4148_s2 + $0x1e8] sm:$0xff] %v1740_v62  ;;  %2085 = vmatprep.mubr.f32.mxu1 %v1740_v62 }
 0x181   : > { %v1678_v57 = vmul.f32 %v3087_v46, %v4180_v14  ;;  %v1060_v61 = vmul.f32 %v4166_v7, %v995_v49  ;;  %v1255_v63 = vmul.f32 %v2924_v45, %v4171_v9  ;;  %1771 = vst [vmem:[%s4148_s2 + $0xe0] sm:$0xff] %v1707_v52  ;;  %2006 = vmatmul.mubr.f32.gmra.mxu0 %v1707_v52  ;;  %v1810_v46 = vld [vmem:[#allocation2 + $0x18] sm:$0xff]  ;;  %v1826_v49 = vld [vmem:[#allocation2 + $0xc8] sm:$0xff]  ;;  %v1811_v52 = vld [vmem:[#allocation2 + $0x50] sm:$0xff] }
 0x182   : > { %v1739_v1 = vadd.f32 %v1675_v39, %v1544_v54  ;;  %v1515_v4 = vadd.f32 %v1451_v42, %v1320_v55  ;;  %v1352_v30 = vadd.f32 %v1288_v51, %v1157_v56  ;;  %v1092_v8 = vmul.f32 %v4166_v7, %v1027_v41  ;;  %v1825_v39 = vld [vmem:[#allocation2 + $0x40] sm:$0xff] }
 0x183   : > { %v1124_v11 = vadd.f32 %v1060_v61, %v4177_v12  ;;  %v1450_v13 = vmul.f32 %v2989_v60, %v4173_v10  ;;  %v1287_v16 = vmul.f32 %v2956_v23, %v4171_v9  ;;  %v1482_v19 = vmul.f32 %v3021_v0, %v4173_v10  ;;  %v1807_v10 = vld [vmem:[#allocation2 + $0xb0] sm:$0xff]  ;;  %v1827_v54 = vld [vmem:[#allocation2 + $0xe0] sm:$0xff] }
 0x184   : > { %1803 = vst [vmem:[%s4148_s2 + $0x1e0] sm:$0xff] %v1739_v1  ;;  %2086 = vmatmul.mubr.f32.gmra.mxu1 %v1739_v1  ;;  %v1710_v17 = vadd.f32 %v1646_v50, %v1515_v4  ;;  %v1547_v48 = vadd.f32 %v1483_v27, %v1352_v30  ;;  %v1156_v47 = vadd.f32 %v1092_v8, %v4177_v12  ;;  %v1823_v12 = vld [vmem:[#allocation2 + $0x38] sm:$0xff]  ;;  %v1828_v0 = vld [vmem:[#allocation2 + $0x90] sm:$0xff] }
 0x185   : > { %v1319_v21 = vadd.f32 %v1255_v63, %v1124_v11  ;;  %v1645_v7 = vmul.f32 %v3054_v6, %v4180_v14  ;;  %v1677_v9 = vmul.f32 %v3086_v58, %v4180_v14  ;;  %v1824_v14 = vld [vmem:[#allocation2 + $0x58] sm:$0xff]  ;;  %v1812_v63 = vld [vmem:[#allocation2 + $0x68] sm:$0xff] }
 0x186   : > { %1774 = vst [vmem:[%s4148_s2 + $0xf8] sm:$0xff] %v1710_v17  ;;  %2010 = vmatprep.mubr.f32.mxu0 %v1710_v17  ;;  %v1742_v22 = vadd.f32 %v1678_v57, %v1547_v48  ;;  %v1351_v24 = vadd.f32 %v1287_v16, %v1156_v47  ;;  %v1829_v16 = vld [vmem:[#allocation2 + $0x70] sm:$0xff] }
 0x187   : > { %v1514_v25 = vadd.f32 %v1450_v13, %v1319_v21  ;;  %v1813_v13 = vld [vmem:[#allocation2 + $0x30] sm:$0xff] }
 0x188   : > { %1806 = vst [vmem:[%s4148_s2 + $0x1f8] sm:$0xff] %v1742_v22  ;;  %2090 = vmatprep.mubr.f32.mxu1 %v1742_v22  ;;  %v1546_v20 = vadd.f32 %v1482_v19, %v1351_v24 }
 0x189   : > { %v1709_v59 = vadd.f32 %v1645_v7, %v1514_v25  ;;  %v1814_v7 = vld [vmem:[#allocation2 + $0x48] sm:$0xff] }
 0x18a   : > { %v1741_v26 = vadd.f32 %v1677_v9, %v1546_v20  ;;  %v1830_v9 = vld [vmem:[#allocation2 + $0xc0] sm:$0xff] }
 0x18b   : > { %1773 = vst [vmem:[%s4148_s2 + $0xf0] sm:$0xff] %v1709_v59  ;;  %2011 = vmatmul.mubr.f32.gmra.mxu0 %v1709_v59 }
 0x18c   : > { %1805 = vst [vmem:[%s4148_s2 + $0x1f0] sm:$0xff] %v1741_v26  ;;  %2091 = vmatmul.mubr.f32.gmra.mxu1 %v1741_v26 }
 0x1e4   : > { %v1937_v28 = vpop.f32.mrf.mxu0  ;;  %v2017_v29 = vpop.f32.mrf.mxu1 }
 0x1e5   : > { %v2096_v32 = vadd.f32 %v1937_v28, %v1807_v10  ;;  %v2112_v33 = vadd.f32 %v2017_v29, %v1823_v12  ;;  %v1815_v10 = vld [vmem:[#allocation2 + $0x80] sm:$0xff]  ;;  %v1831_v28 = vld [vmem:[#allocation2 + $0xa8] sm:$0xff] }
 0x1e6   : > { %v1939_v2 = vpop.f32.mrf.mxu0  ;;  %v2019_v18 = vpop.f32.mrf.mxu1 }
 0x1e7   : > { %2128 = vst [vmem:[#allocation2 + $0xb0] sm:$0xff] %v2096_v32  ;;  %2144 = vst [vmem:[#allocation2 + $0x38] sm:$0xff] %v2112_v33 }
 0x1e8   : > { %v1942_v34 = vpop.f32.mrf.mxu0  ;;  %v2022_v35 = vpop.f32.mrf.mxu1 }
 0x1e9   : > { %v2097_v38 = vadd.f32 %v1942_v34, %v1808_v37  ;;  %v2113_v36 = vadd.f32 %v2022_v35, %v1824_v14  ;;  %v1816_v37 = vld [vmem:[#allocation2 + $0x88] sm:$0xff]  ;;  %v1832_v34 = vld [vmem:[#allocation2 + $0xd0] sm:$0xff] }
 0x1ea   : > { %v1944_v5 = vpop.f32.mrf.mxu0  ;;  %v2024_v53 = vpop.f32.mrf.mxu1 }
 0x1eb   : > { %2129 = vst [vmem:[#allocation2] sm:$0xff] %v2097_v38  ;;  %2145 = vst [vmem:[#allocation2 + $0x58] sm:$0xff] %v2113_v36 }
 0x1ec   : > { %v1947_v40 = vpop.f32.mrf.mxu0  ;;  %v2027_v42 = vpop.f32.mrf.mxu1 }
 0x1ed   : > { %v2098_v43 = vadd.f32 %v1947_v40, %v1809_v3  ;;  %v2114_v44 = vadd.f32 %v2027_v42, %v1825_v39  ;;  %v1817_v3 = vld [vmem:[#allocation2 + $0xe8] sm:$0xff]  ;;  %v1833_v39 = vld [vmem:[#allocation2 + $0x10] sm:$0xff] }
 0x1ee   : > { %v1949_v15 = vpop.f32.mrf.mxu0  ;;  %v2029_v31 = vpop.f32.mrf.mxu1 }
 0x1ef   : > { %2130 = vst [vmem:[#allocation2 + $0xd8] sm:$0xff] %v2098_v43  ;;  %2146 = vst [vmem:[#allocation2 + $0x40] sm:$0xff] %v2114_v44 }
 0x1f0   : > { %v1952_v45 = vpop.f32.mrf.mxu0  ;;  %v2032_v62 = vpop.f32.mrf.mxu1 }
 0x1f1   : > { %v2099_v50 = vadd.f32 %v1952_v45, %v1810_v46  ;;  %v2115_v51 = vadd.f32 %v2032_v62, %v1826_v49  ;;  %v1818_v46 = vld [vmem:[#allocation2 + $0xb8] sm:$0xff]  ;;  %v1834_v62 = vld [vmem:[#allocation2 + $0x28] sm:$0xff] }
 0x1f2   : > { %v1954_v27 = vpop.f32.mrf.mxu0  ;;  %v2034_v41 = vpop.f32.mrf.mxu1 }
 0x1f3   : > { %2131 = vst [vmem:[#allocation2 + $0x18] sm:$0xff] %v2099_v50  ;;  %2147 = vst [vmem:[#allocation2 + $0xc8] sm:$0xff] %v2115_v51 }
 0x1f4   : > { %v1957_v55 = vpop.f32.mrf.mxu0  ;;  %v2037_v56 = vpop.f32.mrf.mxu1 }
 0x1f5   : > { %v2100_v60 = vadd.f32 %v1957_v55, %v1811_v52  ;;  %v2116_v23 = vadd.f32 %v2037_v56, %v1827_v54  ;;  %v1819_v52 = vld [vmem:[#allocation2 + $0x60] sm:$0xff] }
 0x1f6   : > { %v1959_v57 = vpop.f32.mrf.mxu0  ;;  %v2039_v61 = vpop.f32.mrf.mxu1  ;;  %v1835_v55 = vld [vmem:[#allocation2 + $0xa0] sm:$0xff] }
 0x1f7   : > { %2132 = vst [vmem:[#allocation2 + $0x50] sm:$0xff] %v2100_v60  ;;  %2148 = vst [vmem:[#allocation2 + $0xe0] sm:$0xff] %v2116_v23 }
 0x1f8   : > { %v1962_v1 = vpop.f32.mrf.mxu0 }
 0x1f9   : > { %v2042_v4 = vpop.f32.mrf.mxu1  ;;  %v2101_v30 = vadd.f32 %v1962_v1, %v1812_v63  ;;  %v1820_v63 = vld [vmem:[#allocation2 + $0xf0] sm:$0xff]  ;;  %v1836_v1 = vld [vmem:[#allocation2 + $0xf8] sm:$0xff] }
 0x1fa   : > { %v2117_v6 = vadd.f32 %v2042_v4, %v1828_v0  ;;  %v1964_v8 = vpop.f32.mrf.mxu0 }
 0x1fb   : > { %v2044_v11 = vpop.f32.mrf.mxu1  ;;  %2133 = vst [vmem:[#allocation2 + $0x68] sm:$0xff] %v2101_v30 }
 0x1fc   : > { %2149 = vst [vmem:[#allocation2 + $0x90] sm:$0xff] %v2117_v6 }
 0x1fd   : > { %v1967_v58 = vpop.f32.mrf.mxu0  ;;  %v2047_v17 = vpop.f32.mrf.mxu1 }
 0x1fe   : > { %v2102_v48 = vadd.f32 %v1967_v58, %v1813_v13  ;;  %v2118_v47 = vadd.f32 %v2047_v17, %v1829_v16  ;;  %v1821_v13 = vld [vmem:[#allocation2 + $0x8] sm:$0xff]  ;;  %v1837_v58 = vld [vmem:[#allocation2 + $0x20] sm:$0xff] }
 0x1ff   : > { %v1969_v19 = vpop.f32.mrf.mxu0  ;;  %v2049_v21 = vpop.f32.mrf.mxu1 }
 0x200   : > { %2134 = vst [vmem:[#allocation2 + $0x30] sm:$0xff] %v2102_v48  ;;  %2150 = vst [vmem:[#allocation2 + $0x70] sm:$0xff] %v2118_v47 }
 0x202   : > { %v1972_v22 = vpop.f32.mrf.mxu0 }
 0x203   : > { %v2103_v24 = vadd.f32 %v1972_v22, %v1814_v7  ;;  %v1822_v7 = vld [vmem:[#allocation2 + $0x78] sm:$0xff] }
 0x204   : > { %v1974_v25 = vpop.f32.mrf.mxu0  ;;  %v1838_v22 = vld [vmem:[#allocation2 + $0x98] sm:$0xff] }
 0x205   : > { %2135 = vst [vmem:[#allocation2 + $0x48] sm:$0xff] %v2103_v24  ;;  %v2052_v20 = vpop.f32.mrf.mxu1 }
 0x206   : > { %v2119_v59 = vadd.f32 %v2052_v20, %v1830_v9 }
 0x207   : > { %v2054_v26 = vpop.f32.mrf.mxu1 }
 0x208   : > { %2151 = vst [vmem:[#allocation2 + $0xc0] sm:$0xff] %v2119_v59 }
 0x20c   : > { %v1977_v12 = vpop.f32.mrf.mxu0 }
 0x20d   : > { %v2104_v29 = vadd.f32 %v1977_v12, %v1815_v10 }
 0x20e   : > { %v2057_v32 = vpop.f32.mrf.mxu1  ;;  %v1979_v33 = vpop.f32.mrf.mxu0 }
 0x20f   : > { %2136 = vst [vmem:[#allocation2 + $0x80] sm:$0xff] %v2104_v29  ;;  %v2120_v2 = vadd.f32 %v2057_v32, %v1831_v28 }
 0x210   : > { %v2059_v18 = vpop.f32.mrf.mxu1 }
 0x211   : > { %2152 = vst [vmem:[#allocation2 + $0xa8] sm:$0xff] %v2120_v2 }
 0x215   : > { %v1982_v14 = vpop.f32.mrf.mxu0 }
 0x216   : > { %v2105_v35 = vadd.f32 %v1982_v14, %v1816_v37 }
 0x217   : > { %v2062_v38 = vpop.f32.mrf.mxu1  ;;  %v1984_v36 = vpop.f32.mrf.mxu0 }
 0x218   : > { %2137 = vst [vmem:[#allocation2 + $0x88] sm:$0xff] %v2105_v35  ;;  %v2121_v5 = vadd.f32 %v2062_v38, %v1832_v34 }
 0x219   : > { %v2064_v53 = vpop.f32.mrf.mxu1 }
 0x21a   : > { %2153 = vst [vmem:[#allocation2 + $0xd0] sm:$0xff] %v2121_v5 }
 0x21f   : > { %v1987_v40 = vpop.f32.mrf.mxu0 }
 0x220   : > { %v2106_v42 = vadd.f32 %v1987_v40, %v1817_v3  ;;  %v2067_v43 = vpop.f32.mrf.mxu1 }
 0x221   : > { %v2122_v44 = vadd.f32 %v2067_v43, %v1833_v39  ;;  %v1989_v15 = vpop.f32.mrf.mxu0 }
 0x222   : > { %2138 = vst [vmem:[#allocation2 + $0xe8] sm:$0xff] %v2106_v42  ;;  %v2069_v31 = vpop.f32.mrf.mxu1 }
 0x223   : > { %2154 = vst [vmem:[#allocation2 + $0x10] sm:$0xff] %v2122_v44 }
 0x227   : > { %v1992_v49 = vpop.f32.mrf.mxu0 }
 0x228   : > { %v2107_v45 = vadd.f32 %v1992_v49, %v1818_v46 }
 0x229   : > { %v1994_v50 = vpop.f32.mrf.mxu0 }
 0x22a   : > { %2139 = vst [vmem:[#allocation2 + $0xb8] sm:$0xff] %v2107_v45  ;;  %v2072_v51 = vpop.f32.mrf.mxu1 }
 0x22b   : > { %v2123_v27 = vadd.f32 %v2072_v51, %v1834_v62 }
 0x22c   : > { %v2074_v41 = vpop.f32.mrf.mxu1 }
 0x22d   : > { %2155 = vst [vmem:[#allocation2 + $0x28] sm:$0xff] %v2123_v27 }
 0x230   : > { %v1997_v54 = vpop.f32.mrf.mxu0 }
 0x231   : > { %v2108_v56 = vadd.f32 %v1997_v54, %v1819_v52 }
 0x232   : > { %v2077_v60 = vpop.f32.mrf.mxu1  ;;  %v1999_v23 = vpop.f32.mrf.mxu0 }
 0x233   : > { %2140 = vst [vmem:[#allocation2 + $0x60] sm:$0xff] %v2108_v56  ;;  %v2124_v57 = vadd.f32 %v2077_v60, %v1835_v55 }
 0x234   : > { %v2079_v61 = vpop.f32.mrf.mxu1 }
 0x235   : > { %2156 = vst [vmem:[#allocation2 + $0xa0] sm:$0xff] %v2124_v57 }
 0x239   : > { %v2002_v0 = vpop.f32.mrf.mxu0 }
 0x23a   : > { %v2109_v4 = vadd.f32 %v2002_v0, %v1820_v63 }
 0x23b   : > { %v2082_v30 = vpop.f32.mrf.mxu1  ;;  %v2004_v6 = vpop.f32.mrf.mxu0 }
 0x23c   : > { %2141 = vst [vmem:[#allocation2 + $0xf0] sm:$0xff] %v2109_v4  ;;  %v2125_v8 = vadd.f32 %v2082_v30, %v1836_v1 }
 0x23d   : > { %v2084_v11 = vpop.f32.mrf.mxu1 }
 0x23e   : > { %2157 = vst [vmem:[#allocation2 + $0xf8] sm:$0xff] %v2125_v8 }
 0x241   : > { %v2007_v16 = vpop.f32.mrf.mxu0 }
 0x242   : > { %v2110_v17 = vadd.f32 %v2007_v16, %v1821_v13 }
 0x243   : > { %v2009_v47 = vpop.f32.mrf.mxu0 }
 0x244   : > { %v2087_v48 = vpop.f32.mrf.mxu1  ;;  %2142 = vst [vmem:[#allocation2 + $0x8] sm:$0xff] %v2110_v17 }
 0x245   : > { %v2126_v19 = vadd.f32 %v2087_v48, %v1837_v58 }
 0x246   : > { %v2089_v21 = vpop.f32.mrf.mxu1 }
 0x247   : > { %2158 = vst [vmem:[#allocation2 + $0x20] sm:$0xff] %v2126_v19 }
 0x24b   : > { %v2012_v24 = vpop.f32.mrf.mxu0  ;;  %2163 = sbr.rel (%p3088_p11) target bundleno = 857 (0x359), region = 83 }
 0x24c   : > { %v2111_v9 = vadd.f32 %v2012_v24, %v1822_v7  ;;  %v2092_v25 = vpop.f32.mrf.mxu1 }
 0x24d   : > { %v2127_v20 = vadd.f32 %v2092_v25, %v1838_v22  ;;  %v2014_v59 = vpop.f32.mrf.mxu0 }
 0x24e   : > { %2143 = vst [vmem:[#allocation2 + $0x78] sm:$0xff] %v2111_v9  ;;  %v2094_v26 = vpop.f32.mrf.mxu1 }
 0x24f   : > { %2159 = vst [vmem:[#allocation2 + $0x98] sm:$0xff] %v2127_v20 }
 0x250   : > { %v2211_v10 = vld [vmem:[%s5304_s4 + $0x78] sm:$0xff]  ;;  %v2210_v12 = vld [vmem:[%s5304_s4 + $0x70] sm:$0xff]  ;;  %v2209_v28 = vld [vmem:[%s5304_s4 + $0x68] sm:$0xff] }
 0x251   : > { %3147 = vmatprep.subr.mxu0 %v2211_v10  ;;  %3291 = vmatprep.subr.mxu1 %v2211_v10  ;;  %v2208_v29 = vld [vmem:[%s5304_s4 + $0x60] sm:$0xff]  ;;  %v2207_v32 = vld [vmem:[%s5304_s4 + $0x58] sm:$0xff]  ;;  %v2206_v33 = vld [vmem:[%s5304_s4 + $0x50] sm:$0xff] }
 0x252   : > { %3148 = vmatpush3.msra.mxu0 %v2211_v10  ;;  %3307 = vmatpush3.msra.mxu1 %v2211_v10  ;;  %v2205_v2 = vld [vmem:[%s5304_s4 + $0x48] sm:$0xff]  ;;  %v2204_v18 = vld [vmem:[%s5304_s4 + $0x40] sm:$0xff]  ;;  %v2203_v37 = vld [vmem:[%s5304_s4 + $0x38] sm:$0xff] }
 0x253   : > { %3149 = vmatprep.subr.mxu0 %v2210_v12  ;;  %3292 = vmatprep.subr.mxu1 %v2210_v12  ;;  %v2202_v14 = vld [vmem:[%s5304_s4 + $0x30] sm:$0xff]  ;;  %v2201_v34 = vld [vmem:[%s5304_s4 + $0x28] sm:$0xff]  ;;  %v2200_v35 = vld [vmem:[%s5304_s4 + $0x20] sm:$0xff] }
 0x254   : > { %3150 = vmatpush3.msra.mxu0 %v2210_v12  ;;  %3308 = vmatpush3.msra.mxu1 %v2210_v12  ;;  %v2199_v38 = vld [vmem:[%s5304_s4 + $0x18] sm:$0xff]  ;;  %v2198_v36 = vld [vmem:[%s5304_s4 + $0x10] sm:$0xff]  ;;  %v2197_v5 = vld [vmem:[%s5304_s4 + $0x8] sm:$0xff] }
 0x255   : > { %3151 = vmatprep.subr.mxu0 %v2209_v28  ;;  %3293 = vmatprep.subr.mxu1 %v2209_v28  ;;  %v2196_v53 = vld [vmem:[%s5304_s4] sm:$0xff]  ;;  %v2164_v3 = vld [vmem:[#allocation2 + $0xb0] sm:$0xff]  ;;  %v2180_v39 = vld [vmem:[#allocation2 + $0x38] sm:$0xff] }
 0x256   : > { %3152 = vmatpush3.msra.mxu0 %v2209_v28  ;;  %3309 = vmatpush3.msra.mxu1 %v2209_v28  ;;  %v2165_v40 = vld [vmem:[#allocation2] sm:$0xff]  ;;  %v2181_v42 = vld [vmem:[#allocation2 + $0x58] sm:$0xff]  ;;  %v2183_v31 = vld [vmem:[#allocation2 + $0xc8] sm:$0xff] }
 0x257   : > { %3153 = vmatprep.subr.mxu0 %v2208_v29  ;;  %3294 = vmatprep.subr.mxu1 %v2208_v29  ;;  %v2166_v43 = vld [vmem:[#allocation2 + $0xd8] sm:$0xff]  ;;  %v2182_v44 = vld [vmem:[#allocation2 + $0x40] sm:$0xff]  ;;  %v2168_v46 = vld [vmem:[#allocation2 + $0x50] sm:$0xff] }
 0x258   : > { %3154 = vmatpush3.msra.mxu0 %v2208_v29  ;;  %3310 = vmatpush3.msra.mxu1 %v2208_v29  ;;  %v2167_v15 = vld [vmem:[#allocation2 + $0x18] sm:$0xff]  ;;  %v2184_v49 = vld [vmem:[#allocation2 + $0xe0] sm:$0xff]  ;;  %v2169_v45 = vld [vmem:[#allocation2 + $0x68] sm:$0xff] }
 0x259   : > { %3155 = vmatprep.subr.mxu0 %v2207_v32  ;;  %3295 = vmatprep.subr.mxu1 %v2207_v32  ;;  %v2185_v62 = vld [vmem:[#allocation2 + $0x90] sm:$0xff]  ;;  %v2171_v27 = vld [vmem:[#allocation2 + $0x48] sm:$0xff]  ;;  %v2187_v41 = vld [vmem:[#allocation2 + $0xc0] sm:$0xff] }
 0x25a   : > { %3156 = vmatpush3.msra.mxu0 %v2207_v32  ;;  %3311 = vmatpush3.msra.mxu1 %v2207_v32  ;;  %v2170_v50 = vld [vmem:[#allocation2 + $0x30] sm:$0xff]  ;;  %v2172_v52 = vld [vmem:[#allocation2 + $0x80] sm:$0xff]  ;;  %v2188_v54 = vld [vmem:[#allocation2 + $0xa8] sm:$0xff] }
 0x25b   : > { %3157 = vmatprep.subr.mxu0 %v2206_v33  ;;  %3296 = vmatprep.subr.mxu1 %v2206_v33  ;;  %v2186_v51 = vld [vmem:[#allocation2 + $0x70] sm:$0xff]  ;;  %v2173_v55 = vld [vmem:[#allocation2 + $0x88] sm:$0xff]  ;;  %v2175_v57 = vld [vmem:[#allocation2 + $0xb8] sm:$0xff] }
 0x25c   : > { %3158 = vmatpush3.msra.mxu0 %v2206_v33  ;;  %3312 = vmatpush3.msra.mxu1 %v2206_v33  ;;  %v2189_v56 = vld [vmem:[#allocation2 + $0xd0] sm:$0xff]  ;;  %v2174_v60 = vld [vmem:[#allocation2 + $0xe8] sm:$0xff]  ;;  %v2176_v63 = vld [vmem:[#allocation2 + $0x60] sm:$0xff] }
 0x25d   : > { %3159 = vmatprep.subr.mxu0 %v2205_v2  ;;  %3297 = vmatprep.subr.mxu1 %v2205_v2  ;;  %v2190_v23 = vld [vmem:[#allocation2 + $0x10] sm:$0xff]  ;;  %v2191_v61 = vld [vmem:[#allocation2 + $0x28] sm:$0xff]  ;;  %v2192_v0 = vld [vmem:[#allocation2 + $0xa0] sm:$0xff] }
 0x25e   : > { %3160 = vmatpush3.msra.mxu0 %v2205_v2  ;;  %3313 = vmatpush3.msra.mxu1 %v2205_v2  ;;  %v2177_v1 = vld [vmem:[#allocation2 + $0xf0] sm:$0xff]  ;;  %v2193_v4 = vld [vmem:[#allocation2 + $0xf8] sm:$0xff]  ;;  %v2178_v30 = vld [vmem:[#allocation2 + $0x8] sm:$0xff] }
 0x25f   : > { %3161 = vmatprep.subr.mxu0 %v2204_v18  ;;  %3298 = vmatprep.subr.mxu1 %v2204_v18  ;;  %v2194_v6 = vld [vmem:[#allocation2 + $0x20] sm:$0xff]  ;;  %v2179_v8 = vld [vmem:[#allocation2 + $0x78] sm:$0xff]  ;;  %v2477_v47 = vld [vmem:[%s4141_s28 + $0x8] sm:$0xff] }
 0x260   : > { %3162 = vmatpush3.msra.mxu0 %v2204_v18  ;;  %3314 = vmatpush3.msra.mxu1 %v2204_v18  ;;  %v2195_v11 = vld [vmem:[#allocation2 + $0x98] sm:$0xff]  ;;  %v5044_v13 = vld [vmem:[%s5305_s5] ss:$0 sm:$0xff]  ;;  %v2493_v19 = vld [vmem:[%s4141_s28 + $0x88] sm:$0xff] }
 0x261   : > { %3163 = vmatprep.subr.mxu0 %v2203_v37  ;;  %3299 = vmatprep.subr.mxu1 %v2203_v37  ;;  %v2476_v20 = vld [vmem:[%s4141_s28] sm:$0xff] }
 0x262   : > { %3164 = vmatpush3.msra.mxu0 %v2203_v37  ;;  %3315 = vmatpush3.msra.mxu1 %v2203_v37  ;;  %v2492_v59 = vld [vmem:[%s4141_s28 + $0x80] sm:$0xff] }
 0x263   : > { %3165 = vmatprep.subr.mxu0 %v2202_v14  ;;  %3300 = vmatprep.subr.mxu1 %v2202_v14 }
 0x264   : > { %3166 = vmatpush3.msra.mxu0 %v2202_v14  ;;  %3316 = vmatpush3.msra.mxu1 %v2202_v14 }
 0x265   : > { %3167 = vmatprep.subr.mxu0 %v2201_v34  ;;  %3301 = vmatprep.subr.mxu1 %v2201_v34 }
 0x266   : > { %3168 = vmatpush3.msra.mxu0 %v2201_v34  ;;  %3317 = vmatpush3.msra.mxu1 %v2201_v34 }
 0x267   : > { %3169 = vmatprep.subr.mxu0 %v2200_v35  ;;  %3302 = vmatprep.subr.mxu1 %v2200_v35 }
 0x268   : > { %3170 = vmatpush3.msra.mxu0 %v2200_v35  ;;  %3318 = vmatpush3.msra.mxu1 %v2200_v35  ;;  %v2479_v35 = vld [vmem:[%s4141_s28 + $0x18] sm:$0xff] }
 0x269   : > { %3171 = vmatprep.subr.mxu0 %v2199_v38  ;;  %3303 = vmatprep.subr.mxu1 %v2199_v38 }
 0x26a   : > { %3172 = vmatpush3.msra.mxu0 %v2199_v38  ;;  %3319 = vmatpush3.msra.mxu1 %v2199_v38  ;;  %v2495_v38 = vld [vmem:[%s4141_s28 + $0x98] sm:$0xff] }
 0x26b   : > { %3173 = vmatprep.subr.mxu0 %v2198_v36  ;;  %3304 = vmatprep.subr.mxu1 %v2198_v36 }
 0x26c   : > { %3174 = vmatpush3.msra.mxu0 %v2198_v36  ;;  %3320 = vmatpush3.msra.mxu1 %v2198_v36 }
 0x26d   : > { %3175 = vmatprep.subr.mxu0 %v2197_v5  ;;  %3305 = vmatprep.subr.mxu1 %v2197_v5 }
 0x26e   : > { %3176 = vmatpush3.msra.mxu0 %v2197_v5  ;;  %3321 = vmatpush3.msra.mxu1 %v2197_v5 }
 0x26f   : > { %3177 = vmatprep.subr.mxu0 %v2196_v53  ;;  %3306 = vmatprep.subr.mxu1 %v2196_v53 }
 0x270   : > { %3178 = vmatpush3.msra.mxu0 %v2196_v53  ;;  %3322 = vmatpush3.msra.mxu1 %v2196_v53 }
 0x271   : > { %3179 = vmatprep.mubr.f32.mxu0 %v2164_v3  ;;  %3203 = vmatprep.mubr.f32.mxu1 %v2180_v39  ;;  %v2478_v39 = vld [vmem:[%s4141_s28 + $0x10] sm:$0xff] }
 0x272   : > { %3180 = vmatmul.mubr.f32.vlgmr.msra.gmra.mxu0 %v2165_v40  ;;  %3204 = vmatmul.mubr.f32.vlgmr.msra.gmra.mxu1 %v2181_v42  ;;  %v2494_v40 = vld [vmem:[%s4141_s28 + $0x90] sm:$0xff] }
 0x273   : > { %3182 = vmatprep.mubr.f32.mxu0 %v2166_v43  ;;  %3206 = vmatprep.mubr.f32.mxu1 %v2182_v44 }
 0x276   : > { %3183 = vmatmul.mubr.f32.gmra.mxu0 %v2167_v15  ;;  %3207 = vmatmul.mubr.f32.gmra.mxu1 %v2183_v31 }
 0x277   : > { %3185 = vmatprep.mubr.f32.mxu0 %v2168_v46  ;;  %3209 = vmatprep.mubr.f32.mxu1 %v2184_v49 }
 0x27a   : > { %3186 = vmatmul.mubr.f32.gmra.mxu0 %v2169_v45  ;;  %3210 = vmatmul.mubr.f32.gmra.mxu1 %v2185_v62  ;;  %v2481_v62 = vld [vmem:[%s4141_s28 + $0x28] sm:$0xff] }
 0x27b   : > { %3188 = vmatprep.mubr.f32.mxu0 %v2170_v50  ;;  %3212 = vmatprep.mubr.f32.mxu1 %v2186_v51  ;;  %v2497_v50 = vld [vmem:[%s4141_s28 + $0xa8] sm:$0xff] }
 0x27e   : > { %3189 = vmatmul.mubr.f32.gmra.mxu0 %v2171_v27  ;;  %3213 = vmatmul.mubr.f32.gmra.mxu1 %v2187_v41 }
 0x27f   : > { %3191 = vmatprep.mubr.f32.mxu0 %v2172_v52  ;;  %3215 = vmatprep.mubr.f32.mxu1 %v2188_v54 }
 0x282   : > { %3192 = vmatmul.mubr.f32.gmra.mxu0 %v2173_v55  ;;  %3216 = vmatmul.mubr.f32.gmra.mxu1 %v2189_v56 }
 0x283   : > { %3194 = vmatprep.mubr.f32.mxu0 %v2174_v60  ;;  %3218 = vmatprep.mubr.f32.mxu1 %v2190_v23 }
 0x286   : > { %3195 = vmatmul.mubr.f32.gmra.mxu0 %v2175_v57  ;;  %3219 = vmatmul.mubr.f32.gmra.mxu1 %v2191_v61 }
 0x287   : > { %3197 = vmatprep.mubr.f32.mxu0 %v2176_v63  ;;  %3221 = vmatprep.mubr.f32.mxu1 %v2192_v0  ;;  %v2480_v0 = vld [vmem:[%s4141_s28 + $0x20] sm:$0xff] }
 0x28a   : > { %3198 = vmatmul.mubr.f32.gmra.mxu0 %v2177_v1  ;;  %3222 = vmatmul.mubr.f32.gmra.mxu1 %v2193_v4  ;;  %v2496_v1 = vld [vmem:[%s4141_s28 + $0xa0] sm:$0xff] }
 0x28b   : > { %3200 = vmatprep.mubr.f32.mxu0 %v2178_v30  ;;  %3224 = vmatprep.mubr.f32.mxu1 %v2194_v6 }
 0x28e   : > { %3201 = vmatmul.mubr.f32.gmra.mxu0 %v2179_v8  ;;  %3225 = vmatmul.mubr.f32.gmra.mxu1 %v2195_v11  ;;  %v2483_v11 = vld [vmem:[%s4141_s28 + $0x38] sm:$0xff] }
 0x332   : > { %v3181_v16 = vpop.f32.mrf.mxu0  ;;  %v3205_v58 = vpop.f32.mrf.mxu1 }
 0x333   : > { %v2291_v17 = vadd.f32 %v3181_v16, %v5044_v13  ;;  %v2371_v48 = vadd.f32 %v3205_v58, %v5044_v13  ;;  %v2499_v16 = vld [vmem:[%s4141_s28 + $0xb8] sm:$0xff] }
 0x334   : > { %v2285_v21 = vpop.f32.mrf.mxu0  ;;  %v2365_v7 = vpop.f32.mrf.mxu1 }
 0x335   : > { %v2445_v22 = vmax.f32 %v2291_v17, 0.0  ;;  %v2461_v24 = vmax.f32 %v2371_v48, 0.0  ;;  %v2286_v9 = vadd.f32 %v5044_v13, %v2285_v21  ;;  %v2366_v25 = vadd.f32 %v5044_v13, %v2365_v7 }
 0x336   : > { %v3184_v26 = vpop.f32.mrf.mxu0  ;;  %v3208_v10 = vpop.f32.mrf.mxu1 }
 0x337   : > { %v2509_v12 = vmul.f32 %v2477_v47, %v2445_v22  ;;  %v2525_v28 = vmul.f32 %v2493_v19, %v2461_v24  ;;  %v2444_v29 = vmax.f32 %v2286_v9, 0.0  ;;  %v2460_v32 = vmax.f32 %v2366_v25, 0.0  ;;  %v2482_v24 = vld [vmem:[%s4141_s28 + $0x30] sm:$0xff] }
 0x338   : > { %v2301_v33 = vadd.f32 %v3184_v26, %v5044_v13  ;;  %v2381_v2 = vadd.f32 %v3208_v10, %v5044_v13  ;;  %v2295_v18 = vpop.f32.mrf.mxu0  ;;  %v2375_v37 = vpop.f32.mrf.mxu1  ;;  %v2498_v9 = vld [vmem:[%s4141_s28 + $0xb0] sm:$0xff] }
 0x339   : > { %2541 = vst [vmem:[%s4146_s26 + $0x8] sm:$0xff] %v2509_v12  ;;  %2557 = vst [vmem:[%s4146_s26 + $0x88] sm:$0xff] %v2525_v28  ;;  %v2508_v14 = vmul.f32 %v2476_v20, %v2444_v29  ;;  %v2524_v34 = vmul.f32 %v2492_v59, %v2460_v32  ;;  %v2296_v36 = vadd.f32 %v5044_v13, %v2295_v18 }
 0x33a   : > { %v2376_v5 = vadd.f32 %v5044_v13, %v2375_v37  ;;  %v2447_v53 = vmax.f32 %v2301_v33, 0.0  ;;  %v2463_v3 = vmax.f32 %v2381_v2, 0.0  ;;  %v3187_v42 = vpop.f32.mrf.mxu0  ;;  %v3211_v43 = vpop.f32.mrf.mxu1  ;;  %v2485_v37 = vld [vmem:[%s4141_s28 + $0x48] sm:$0xff] }
 0x33b   : > { %2540 = vst [vmem:[%s4146_s26] sm:$0xff] %v2508_v14  ;;  %2556 = vst [vmem:[%s4146_s26 + $0x80] sm:$0xff] %v2524_v34  ;;  %v2446_v44 = vmax.f32 %v2296_v36, 0.0  ;;  %v2311_v31 = vadd.f32 %v3187_v42, %v5044_v13  ;;  %v2391_v46 = vadd.f32 %v3211_v43, %v5044_v13  ;;  %v2501_v14 = vld [vmem:[%s4141_s28 + $0xc8] sm:$0xff] }
 0x33c   : > { %v2462_v15 = vmax.f32 %v2376_v5, 0.0  ;;  %v2511_v49 = vmul.f32 %v2479_v35, %v2447_v53  ;;  %v2527_v45 = vmul.f32 %v2495_v38, %v2463_v3  ;;  %v2305_v51 = vpop.f32.mrf.mxu0  ;;  %v2385_v27 = vpop.f32.mrf.mxu1  ;;  %v2484_v5 = vld [vmem:[%s4141_s28 + $0x40] sm:$0xff] }
 0x33d   : > { %v2510_v41 = vmul.f32 %v2478_v39, %v2446_v44  ;;  %v2449_v54 = vmax.f32 %v2311_v31, 0.0  ;;  %v2465_v55 = vmax.f32 %v2391_v46, 0.0  ;;  %v2306_v56 = vadd.f32 %v5044_v13, %v2305_v51  ;;  %v2500_v53 = vld [vmem:[%s4141_s28 + $0xc0] sm:$0xff]  ;;  %v2487_v46 = vld [vmem:[%s4141_s28 + $0x58] sm:$0xff] }
 0x33e   : > { %v2526_v52 = vmul.f32 %v2494_v40, %v2462_v15  ;;  %2543 = vst [vmem:[%s4146_s26 + $0x18] sm:$0xff] %v2511_v49  ;;  %2559 = vst [vmem:[%s4146_s26 + $0x98] sm:$0xff] %v2527_v45  ;;  %v2386_v60 = vadd.f32 %v5044_v13, %v2385_v27  ;;  %v3190_v23 = vpop.f32.mrf.mxu0  ;;  %v3214_v57 = vpop.f32.mrf.mxu1  ;;  %v2503_v49 = vld [vmem:[%s4141_s28 + $0xd8] sm:$0xff] }
 0x33f   : > { %2542 = vst [vmem:[%s4146_s26 + $0x10] sm:$0xff] %v2510_v41  ;;  %v2513_v61 = vmul.f32 %v2481_v62, %v2449_v54  ;;  %v2529_v63 = vmul.f32 %v2497_v50, %v2465_v55  ;;  %v2321_v4 = vadd.f32 %v3190_v23, %v5044_v13  ;;  %v2401_v30 = vadd.f32 %v3214_v57, %v5044_v13  ;;  %v2486_v57 = vld [vmem:[%s4141_s28 + $0x50] sm:$0xff] }
 0x340   : > { %2558 = vst [vmem:[%s4146_s26 + $0x90] sm:$0xff] %v2526_v52  ;;  %v2448_v6 = vmax.f32 %v2306_v56, 0.0  ;;  %v2464_v8 = vmax.f32 %v2386_v60, 0.0  ;;  %v2315_v58 = vpop.f32.mrf.mxu0  ;;  %v2395_v17 = vpop.f32.mrf.mxu1 }
 0x341   : > { %2545 = vst [vmem:[%s4146_s26 + $0x28] sm:$0xff] %v2513_v61  ;;  %2561 = vst [vmem:[%s4146_s26 + $0xa8] sm:$0xff] %v2529_v63  ;;  %v2451_v48 = vmax.f32 %v2321_v4, 0.0  ;;  %v2467_v47 = vmax.f32 %v2401_v30, 0.0  ;;  %v2316_v19 = vadd.f32 %v5044_v13, %v2315_v58  ;;  %v2396_v21 = vadd.f32 %v5044_v13, %v2395_v17  ;;  %v2502_v61 = vld [vmem:[%s4141_s28 + $0xd0] sm:$0xff]  ;;  %v2489_v30 = vld [vmem:[%s4141_s28 + $0x68] sm:$0xff] }
 0x342   : > { %v2512_v7 = vmul.f32 %v2480_v0, %v2448_v6  ;;  %v2528_v22 = vmul.f32 %v2496_v1, %v2464_v8  ;;  %v3193_v25 = vpop.f32.mrf.mxu0  ;;  %v3217_v20 = vpop.f32.mrf.mxu1  ;;  %v2505_v6 = vld [vmem:[%s4141_s28 + $0xe8] sm:$0xff] }
 0x343   : > { %v2515_v59 = vmul.f32 %v2483_v11, %v2451_v48  ;;  %v2531_v26 = vmul.f32 %v2499_v16, %v2467_v47  ;;  %v2450_v10 = vmax.f32 %v2316_v19, 0.0  ;;  %v2466_v12 = vmax.f32 %v2396_v21, 0.0  ;;  %v2488_v21 = vld [vmem:[%s4141_s28 + $0x60] sm:$0xff] }
 0x344   : > { %2544 = vst [vmem:[%s4146_s26 + $0x20] sm:$0xff] %v2512_v7  ;;  %2560 = vst [vmem:[%s4146_s26 + $0xa0] sm:$0xff] %v2528_v22  ;;  %v2331_v28 = vadd.f32 %v3193_v25, %v5044_v13  ;;  %v2411_v29 = vadd.f32 %v3217_v20, %v5044_v13  ;;  %v2325_v32 = vpop.f32.mrf.mxu0  ;;  %v2405_v33 = vpop.f32.mrf.mxu1  ;;  %v2504_v7 = vld [vmem:[%s4141_s28 + $0xe0] sm:$0xff] }
 0x345   : > { %2547 = vst [vmem:[%s4146_s26 + $0x38] sm:$0xff] %v2515_v59  ;;  %2563 = vst [vmem:[%s4146_s26 + $0xb8] sm:$0xff] %v2531_v26  ;;  %v2514_v2 = vmul.f32 %v2482_v24, %v2450_v10  ;;  %v2530_v18 = vmul.f32 %v2498_v9, %v2466_v12  ;;  %v2326_v34 = vadd.f32 %v5044_v13, %v2325_v32 }
 0x346   : > { %v2406_v35 = vadd.f32 %v5044_v13, %v2405_v33  ;;  %v2453_v38 = vmax.f32 %v2331_v28, 0.0  ;;  %v2469_v36 = vmax.f32 %v2411_v29, 0.0  ;;  %v3196_v3 = vpop.f32.mrf.mxu0  ;;  %v3220_v39 = vpop.f32.mrf.mxu1  ;;  %v2491_v33 = vld [vmem:[%s4141_s28 + $0x78] sm:$0xff] }
 0x347   : > { %2546 = vst [vmem:[%s4146_s26 + $0x30] sm:$0xff] %v2514_v2  ;;  %2562 = vst [vmem:[%s4146_s26 + $0xb0] sm:$0xff] %v2530_v18  ;;  %v2452_v40 = vmax.f32 %v2326_v34, 0.0  ;;  %v2341_v43 = vadd.f32 %v3196_v3, %v5044_v13  ;;  %v2421_v44 = vadd.f32 %v3220_v39, %v5044_v13  ;;  %v2507_v2 = vld [vmem:[%s4141_s28 + $0xf8] sm:$0xff] }
 0x348   : > { %v2468_v42 = vmax.f32 %v2406_v35, 0.0  ;;  %v2517_v15 = vmul.f32 %v2485_v37, %v2453_v38  ;;  %v2533_v31 = vmul.f32 %v2501_v14, %v2469_v36  ;;  %v2335_v45 = vpop.f32.mrf.mxu0  ;;  %v2415_v62 = vpop.f32.mrf.mxu1  ;;  %v2490_v35 = vld [vmem:[%s4141_s28 + $0x70] sm:$0xff] }
 0x349   : > { %v2516_v50 = vmul.f32 %v2484_v5, %v2452_v40  ;;  %v2455_v27 = vmax.f32 %v2341_v43, 0.0  ;;  %v2471_v41 = vmax.f32 %v2421_v44, 0.0  ;;  %v2336_v52 = vadd.f32 %v5044_v13, %v2335_v45  ;;  %v2506_v38 = vld [vmem:[%s4141_s28 + $0xf0] sm:$0xff] }
 0x34a   : > { %v2532_v51 = vmul.f32 %v2500_v53, %v2468_v42  ;;  %2549 = vst [vmem:[%s4146_s26 + $0x48] sm:$0xff] %v2517_v15  ;;  %2565 = vst [vmem:[%s4146_s26 + $0xc8] sm:$0xff] %v2533_v31  ;;  %v2416_v54 = vadd.f32 %v5044_v13, %v2415_v62  ;;  %v3199_v55 = vpop.f32.mrf.mxu0  ;;  %v3223_v56 = vpop.f32.mrf.mxu1 }
 0x34b   : > { %2548 = vst [vmem:[%s4146_s26 + $0x40] sm:$0xff] %v2516_v50  ;;  %v2519_v60 = vmul.f32 %v2487_v46, %v2455_v27  ;;  %v2535_v23 = vmul.f32 %v2503_v49, %v2471_v41  ;;  %v2351_v63 = vadd.f32 %v3199_v55, %v5044_v13  ;;  %v2431_v0 = vadd.f32 %v3223_v56, %v5044_v13 }
 0x34c   : > { %2564 = vst [vmem:[%s4146_s26 + $0xc0] sm:$0xff] %v2532_v51  ;;  %v2454_v1 = vmax.f32 %v2336_v52, 0.0  ;;  %v2470_v4 = vmax.f32 %v2416_v54, 0.0  ;;  %v2345_v8 = vpop.f32.mrf.mxu0  ;;  %v2425_v11 = vpop.f32.mrf.mxu1 }
 0x34d   : > { %2551 = vst [vmem:[%s4146_s26 + $0x58] sm:$0xff] %v2519_v60  ;;  %2567 = vst [vmem:[%s4146_s26 + $0xd8] sm:$0xff] %v2535_v23  ;;  %v2457_v16 = vmax.f32 %v2351_v63, 0.0  ;;  %v2473_v58 = vmax.f32 %v2431_v0, 0.0  ;;  %v2346_v17 = vadd.f32 %v5044_v13, %v2345_v8  ;;  %v2426_v48 = vadd.f32 %v5044_v13, %v2425_v11 }
 0x34e   : > { %v2518_v47 = vmul.f32 %v2486_v57, %v2454_v1  ;;  %v2534_v19 = vmul.f32 %v2502_v61, %v2470_v4  ;;  %v3202_v22 = vpop.f32.mrf.mxu0  ;;  %v3226_v24 = vpop.f32.mrf.mxu1 }
 0x34f   : > { %v2521_v9 = vmul.f32 %v2489_v30, %v2457_v16  ;;  %v2537_v25 = vmul.f32 %v2505_v6, %v2473_v58  ;;  %v2456_v20 = vmax.f32 %v2346_v17, 0.0  ;;  %v2472_v59 = vmax.f32 %v2426_v48, 0.0 }
 0x350   : > { %2550 = vst [vmem:[%s4146_s26 + $0x50] sm:$0xff] %v2518_v47  ;;  %2566 = vst [vmem:[%s4146_s26 + $0xd0] sm:$0xff] %v2534_v19  ;;  %v2361_v26 = vadd.f32 %v3202_v22, %v5044_v13  ;;  %v2441_v10 = vadd.f32 %v3226_v24, %v5044_v13  ;;  %v2355_v12 = vpop.f32.mrf.mxu0  ;;  %v2435_v28 = vpop.f32.mrf.mxu1 }
 0x351   : > { %2553 = vst [vmem:[%s4146_s26 + $0x68] sm:$0xff] %v2521_v9  ;;  %2569 = vst [vmem:[%s4146_s26 + $0xe8] sm:$0xff] %v2537_v25  ;;  %v2520_v29 = vmul.f32 %v2488_v21, %v2456_v20  ;;  %v2536_v32 = vmul.f32 %v2504_v7, %v2472_v59  ;;  %v2356_v18 = vadd.f32 %v5044_v13, %v2355_v12 }
 0x352   : > { %v2436_v37 = vadd.f32 %v5044_v13, %v2435_v28  ;;  %v2459_v14 = vmax.f32 %v2361_v26, 0.0  ;;  %v2475_v34 = vmax.f32 %v2441_v10, 0.0 }
 0x353   : > { %2552 = vst [vmem:[%s4146_s26 + $0x60] sm:$0xff] %v2520_v29  ;;  %2568 = vst [vmem:[%s4146_s26 + $0xe0] sm:$0xff] %v2536_v32  ;;  %v2458_v36 = vmax.f32 %v2356_v18, 0.0 }
 0x354   : > { %v2474_v5 = vmax.f32 %v2436_v37, 0.0  ;;  %v2523_v53 = vmul.f32 %v2491_v33, %v2459_v14  ;;  %v2539_v3 = vmul.f32 %v2507_v2, %v2475_v34 }
 0x355   : > { %v2522_v39 = vmul.f32 %v2490_v35, %v2458_v36 }
 0x356   : > { %v2538_v40 = vmul.f32 %v2506_v38, %v2474_v5  ;;  %2555 = vst [vmem:[%s4146_s26 + $0x78] sm:$0xff] %v2523_v53  ;;  %2571 = vst [vmem:[%s4146_s26 + $0xf8] sm:$0xff] %v2539_v3 }
 0x357   : > { %2554 = vst [vmem:[%s4146_s26 + $0x70] sm:$0xff] %v2522_v39 }
 0x358   : > { %2570 = vst [vmem:[%s4146_s26 + $0xf0] sm:$0xff] %v2538_v40 }
 0x359 PF: > { %p5321_p12 = scmp.ne.s32.totalorder %s5315_s19, 0 }
 0x35a   : > { %s3092_s28 = sshll.u32 (%p5321_p12), %s3449_s9, 1  ;;  %s3098_s26 = sshll.u32 (%p5321_p12), %s3453_s10, 7  ;;  %v2602_v13 = vld [vmem:[%s4148_s2] sm:$0xff] (%p5321_p12)  ;;  %v2604_v42 = vld [vmem:[%s4148_s2 + $0x8] sm:$0xff] (%p5321_p12)  ;;  %v2606_v43 = vld [vmem:[%s4148_s2 + $0x10] sm:$0xff] (%p5321_p12) }
 0x35b   : > { %2583 = sbr.rel (!%p5321_p12) target bundleno = 894 (0x37e), region = 87  ;;  %s2587_s19 = sadd.s32 (%p5321_p12), %s3098_s26, %s3092_s28  ;;  %v2608_v44 = vld [vmem:[%s4148_s2 + $0x18] sm:$0xff] (%p5321_p12)  ;;  %v2610_v15 = vld [vmem:[%s4148_s2 + $0x20] sm:$0xff] (%p5321_p12)  ;;  %v2612_v31 = vld [vmem:[%s4148_s2 + $0x28] sm:$0xff] (%p5321_p12) }
 0x35c   : > { %s3094_s16 = sshll.u32 (%p5321_p12), %s2587_s19, 3  ;;  %v2614_v46 = vld [vmem:[%s4148_s2 + $0x30] sm:$0xff] (%p5321_p12)  ;;  %v2616_v49 = vld [vmem:[%s4148_s2 + $0x38] sm:$0xff] (%p5321_p12)  ;;  %v2618_v45 = vld [vmem:[%s4148_s2 + $0x40] sm:$0xff] (%p5321_p12) }
 0x35d   : > { %s5158_s22 = scalar_lea.vmem (%p5321_p12), %s5307_s7, %s3094_s16  ;;  %v2620_v62 = vld [vmem:[%s4148_s2 + $0x48] sm:$0xff] (%p5321_p12)  ;;  %v2622_v50 = vld [vmem:[%s4148_s2 + $0x50] sm:$0xff] (%p5321_p12)  ;;  %v2624_v51 = vld [vmem:[%s4148_s2 + $0x58] sm:$0xff] (%p5321_p12) }
 0x35e   : > { %2603 = vst [vmem:[%s5158_s22] sm:$0xff] (%p5321_p12), %v2602_v13  ;;  %2605 = vst [vmem:[%s5158_s22 + $0x8] sm:$0xff] (%p5321_p12), %v2604_v42  ;;  %v2626_v27 = vld [vmem:[%s4148_s2 + $0x60] sm:$0xff] (%p5321_p12)  ;;  %v2628_v41 = vld [vmem:[%s4148_s2 + $0x68] sm:$0xff] (%p5321_p12) }
 0x35f   : > { %2607 = vst [vmem:[%s5158_s22 + $0x20] sm:$0xff] (%p5321_p12), %v2606_v43  ;;  %2609 = vst [vmem:[%s5158_s22 + $0x28] sm:$0xff] (%p5321_p12), %v2608_v44  ;;  %v2630_v52 = vld [vmem:[%s4148_s2 + $0x70] sm:$0xff] (%p5321_p12)  ;;  %v2632_v54 = vld [vmem:[%s4148_s2 + $0x78] sm:$0xff] (%p5321_p12) }
 0x360   : > { %2611 = vst [vmem:[%s5158_s22 + $0x40] sm:$0xff] %v2610_v15  ;;  %2613 = vst [vmem:[%s5158_s22 + $0x48] sm:$0xff] %v2612_v31  ;;  %v2634_v55 = vld [vmem:[%s4148_s2 + $0x80] sm:$0xff]  ;;  %v2636_v56 = vld [vmem:[%s4148_s2 + $0x88] sm:$0xff] }
 0x361   : > { %2615 = vst [vmem:[%s5158_s22 + $0x60] sm:$0xff] %v2614_v46  ;;  %2617 = vst [vmem:[%s5158_s22 + $0x68] sm:$0xff] %v2616_v49  ;;  %v2638_v60 = vld [vmem:[%s4148_s2 + $0x90] sm:$0xff]  ;;  %v2640_v23 = vld [vmem:[%s4148_s2 + $0x98] sm:$0xff] }
 0x362   : > { %2619 = vst [vmem:[%s5158_s22 + $0x80] sm:$0xff] %v2618_v45  ;;  %2621 = vst [vmem:[%s5158_s22 + $0x88] sm:$0xff] %v2620_v62  ;;  %v2642_v57 = vld [vmem:[%s4148_s2 + $0xa0] sm:$0xff]  ;;  %v2644_v61 = vld [vmem:[%s4148_s2 + $0xa8] sm:$0xff] }
 0x363   : > { %2623 = vst [vmem:[%s5158_s22 + $0xa0] sm:$0xff] %v2622_v50  ;;  %2625 = vst [vmem:[%s5158_s22 + $0xa8] sm:$0xff] %v2624_v51  ;;  %v2646_v63 = vld [vmem:[%s4148_s2 + $0xb0] sm:$0xff]  ;;  %v2648_v0 = vld [vmem:[%s4148_s2 + $0xb8] sm:$0xff] }
 0x364   : > { %2627 = vst [vmem:[%s5158_s22 + $0xc0] sm:$0xff] %v2626_v27  ;;  %2629 = vst [vmem:[%s5158_s22 + $0xc8] sm:$0xff] %v2628_v41  ;;  %v2650_v1 = vld [vmem:[%s4148_s2 + $0xc0] sm:$0xff]  ;;  %v2652_v4 = vld [vmem:[%s4148_s2 + $0xc8] sm:$0xff] }
 0x365   : > { %2631 = vst [vmem:[%s5158_s22 + $0xe0] sm:$0xff] %v2630_v52  ;;  %2633 = vst [vmem:[%s5158_s22 + $0xe8] sm:$0xff] %v2632_v54  ;;  %v2654_v30 = vld [vmem:[%s4148_s2 + $0xd0] sm:$0xff]  ;;  %v2656_v6 = vld [vmem:[%s4148_s2 + $0xd8] sm:$0xff] }
 0x366   : > { %2635 = vst [vmem:[%s5158_s22 + $0x100] sm:$0xff] %v2634_v55  ;;  %2637 = vst [vmem:[%s5158_s22 + $0x108] sm:$0xff] %v2636_v56  ;;  %v2658_v8 = vld [vmem:[%s4148_s2 + $0xe0] sm:$0xff]  ;;  %v2660_v11 = vld [vmem:[%s4148_s2 + $0xe8] sm:$0xff] }
 0x367   : > { %2639 = vst [vmem:[%s5158_s22 + $0x120] sm:$0xff] %v2638_v60  ;;  %2641 = vst [vmem:[%s5158_s22 + $0x128] sm:$0xff] %v2640_v23  ;;  %v2662_v16 = vld [vmem:[%s4148_s2 + $0xf0] sm:$0xff]  ;;  %v2664_v58 = vld [vmem:[%s4148_s2 + $0xf8] sm:$0xff] }
 0x368   : > { %2643 = vst [vmem:[%s5158_s22 + $0x140] sm:$0xff] %v2642_v57  ;;  %2645 = vst [vmem:[%s5158_s22 + $0x148] sm:$0xff] %v2644_v61  ;;  %v2666_v17 = vld [vmem:[%s4148_s2 + $0x100] sm:$0xff]  ;;  %v2668_v48 = vld [vmem:[%s4148_s2 + $0x108] sm:$0xff] }
 0x369   : > { %2647 = vst [vmem:[%s5158_s22 + $0x160] sm:$0xff] %v2646_v63  ;;  %2649 = vst [vmem:[%s5158_s22 + $0x168] sm:$0xff] %v2648_v0  ;;  %v2670_v47 = vld [vmem:[%s4148_s2 + $0x110] sm:$0xff]  ;;  %v2672_v19 = vld [vmem:[%s4148_s2 + $0x118] sm:$0xff] }
 0x36a   : > { %2651 = vst [vmem:[%s5158_s22 + $0x180] sm:$0xff] %v2650_v1  ;;  %2653 = vst [vmem:[%s5158_s22 + $0x188] sm:$0xff] %v2652_v4  ;;  %v2674_v21 = vld [vmem:[%s4148_s2 + $0x120] sm:$0xff]  ;;  %v2676_v7 = vld [vmem:[%s4148_s2 + $0x128] sm:$0xff] }
 0x36b   : > { %2655 = vst [vmem:[%s5158_s22 + $0x1a0] sm:$0xff] %v2654_v30  ;;  %2657 = vst [vmem:[%s5158_s22 + $0x1a8] sm:$0xff] %v2656_v6  ;;  %v2678_v22 = vld [vmem:[%s4148_s2 + $0x130] sm:$0xff]  ;;  %v2680_v24 = vld [vmem:[%s4148_s2 + $0x138] sm:$0xff] }
 0x36c   : > { %2659 = vst [vmem:[%s5158_s22 + $0x1c0] sm:$0xff] %v2658_v8  ;;  %2661 = vst [vmem:[%s5158_s22 + $0x1c8] sm:$0xff] %v2660_v11  ;;  %v2682_v9 = vld [vmem:[%s4148_s2 + $0x140] sm:$0xff]  ;;  %v2684_v25 = vld [vmem:[%s4148_s2 + $0x148] sm:$0xff] }
 0x36d   : > { %2663 = vst [vmem:[%s5158_s22 + $0x1e0] sm:$0xff] %v2662_v16  ;;  %2665 = vst [vmem:[%s5158_s22 + $0x1e8] sm:$0xff] %v2664_v58  ;;  %v2686_v20 = vld [vmem:[%s4148_s2 + $0x150] sm:$0xff]  ;;  %v2688_v59 = vld [vmem:[%s4148_s2 + $0x158] sm:$0xff] }
 0x36e   : > { %2667 = vst [vmem:[%s5158_s22 + $0x200] sm:$0xff] %v2666_v17  ;;  %2669 = vst [vmem:[%s5158_s22 + $0x208] sm:$0xff] %v2668_v48  ;;  %v2690_v26 = vld [vmem:[%s4148_s2 + $0x160] sm:$0xff]  ;;  %v2692_v10 = vld [vmem:[%s4148_s2 + $0x168] sm:$0xff] }
 0x36f   : > { %2671 = vst [vmem:[%s5158_s22 + $0x220] sm:$0xff] %v2670_v47  ;;  %2673 = vst [vmem:[%s5158_s22 + $0x228] sm:$0xff] %v2672_v19  ;;  %v2694_v12 = vld [vmem:[%s4148_s2 + $0x170] sm:$0xff]  ;;  %v2696_v28 = vld [vmem:[%s4148_s2 + $0x178] sm:$0xff] }
 0x370   : > { %2675 = vst [vmem:[%s5158_s22 + $0x240] sm:$0xff] %v2674_v21  ;;  %2677 = vst [vmem:[%s5158_s22 + $0x248] sm:$0xff] %v2676_v7  ;;  %v2698_v29 = vld [vmem:[%s4148_s2 + $0x180] sm:$0xff]  ;;  %v2700_v32 = vld [vmem:[%s4148_s2 + $0x188] sm:$0xff] }
 0x371   : > { %2679 = vst [vmem:[%s5158_s22 + $0x260] sm:$0xff] %v2678_v22  ;;  %2681 = vst [vmem:[%s5158_s22 + $0x268] sm:$0xff] %v2680_v24  ;;  %v2702_v33 = vld [vmem:[%s4148_s2 + $0x190] sm:$0xff]  ;;  %v2704_v2 = vld [vmem:[%s4148_s2 + $0x198] sm:$0xff] }
 0x372   : > { %2683 = vst [vmem:[%s5158_s22 + $0x280] sm:$0xff] %v2682_v9  ;;  %2685 = vst [vmem:[%s5158_s22 + $0x288] sm:$0xff] %v2684_v25  ;;  %v2706_v18 = vld [vmem:[%s4148_s2 + $0x1a0] sm:$0xff]  ;;  %v2708_v37 = vld [vmem:[%s4148_s2 + $0x1a8] sm:$0xff] }
 0x373   : > { %2687 = vst [vmem:[%s5158_s22 + $0x2a0] sm:$0xff] %v2686_v20  ;;  %2689 = vst [vmem:[%s5158_s22 + $0x2a8] sm:$0xff] %v2688_v59  ;;  %v2710_v14 = vld [vmem:[%s4148_s2 + $0x1b0] sm:$0xff]  ;;  %v2712_v34 = vld [vmem:[%s4148_s2 + $0x1b8] sm:$0xff] }
 0x374   : > { %2691 = vst [vmem:[%s5158_s22 + $0x2c0] sm:$0xff] %v2690_v26  ;;  %2693 = vst [vmem:[%s5158_s22 + $0x2c8] sm:$0xff] %v2692_v10  ;;  %v2714_v35 = vld [vmem:[%s4148_s2 + $0x1c0] sm:$0xff]  ;;  %v2716_v38 = vld [vmem:[%s4148_s2 + $0x1c8] sm:$0xff] }
 0x375   : > { %2695 = vst [vmem:[%s5158_s22 + $0x2e0] sm:$0xff] %v2694_v12  ;;  %2697 = vst [vmem:[%s5158_s22 + $0x2e8] sm:$0xff] %v2696_v28  ;;  %v2718_v36 = vld [vmem:[%s4148_s2 + $0x1d0] sm:$0xff]  ;;  %v2720_v5 = vld [vmem:[%s4148_s2 + $0x1d8] sm:$0xff] }
 0x376   : > { %2699 = vst [vmem:[%s5158_s22 + $0x300] sm:$0xff] %v2698_v29  ;;  %2701 = vst [vmem:[%s5158_s22 + $0x308] sm:$0xff] %v2700_v32  ;;  %v2722_v53 = vld [vmem:[%s4148_s2 + $0x1e0] sm:$0xff]  ;;  %v2724_v3 = vld [vmem:[%s4148_s2 + $0x1e8] sm:$0xff] }
 0x377   : > { %2703 = vst [vmem:[%s5158_s22 + $0x320] sm:$0xff] %v2702_v33  ;;  %2705 = vst [vmem:[%s5158_s22 + $0x328] sm:$0xff] %v2704_v2  ;;  %v2726_v39 = vld [vmem:[%s4148_s2 + $0x1f0] sm:$0xff]  ;;  %v2728_v40 = vld [vmem:[%s4148_s2 + $0x1f8] sm:$0xff] }
 0x378   : > { %2707 = vst [vmem:[%s5158_s22 + $0x340] sm:$0xff] %v2706_v18  ;;  %2709 = vst [vmem:[%s5158_s22 + $0x348] sm:$0xff] %v2708_v37 }
 0x379   : > { %2711 = vst [vmem:[%s5158_s22 + $0x360] sm:$0xff] %v2710_v14  ;;  %2713 = vst [vmem:[%s5158_s22 + $0x368] sm:$0xff] %v2712_v34 }
 0x37a   : > { %2715 = vst [vmem:[%s5158_s22 + $0x380] sm:$0xff] %v2714_v35  ;;  %2717 = vst [vmem:[%s5158_s22 + $0x388] sm:$0xff] %v2716_v38 }
 0x37b   : > { %2719 = vst [vmem:[%s5158_s22 + $0x3a0] sm:$0xff] %v2718_v36  ;;  %2721 = vst [vmem:[%s5158_s22 + $0x3a8] sm:$0xff] %v2720_v5 }
 0x37c   : > { %2723 = vst [vmem:[%s5158_s22 + $0x3c0] sm:$0xff] %v2722_v53  ;;  %2725 = vst [vmem:[%s5158_s22 + $0x3c8] sm:$0xff] %v2724_v3 }
 0x37d   : > { %2727 = vst [vmem:[%s5158_s22 + $0x3e0] sm:$0xff] %v2726_v39  ;;  %2729 = vst [vmem:[%s5158_s22 + $0x3e8] sm:$0xff] %v2728_v40 }
 0x37e PF: > { %s21_s13 = sadd.s32 1, %s3465_s13   ;;  %s5322_s20 = sld [smem:[#allocation9_spill]] }
 0x37f   : > { %p18_p13 = scmp.ge.s32.totalorder %s21_s13, 6   ;;  %s5323_s29 = smov %s3445_s30 }
 0x380   : > { %s5324_s30 = smov %s3593_s27  ;;  %s5325_s9 = smov %s3457_s11 }
 0x381   : > { %s5326_s10 = smov %s3461_s12  ;;  %s5327_s11 = smov %s5330_s14 }
 0x382   :  { %20 = sbr.rel (!%p18_p13) target bundleno = 8 (0x8), region = 163 }
 0x384   : > { %s5328_s12 = smov %s5322_s20 }
 0x387   :  { %2757 = vsyncpa [#allocation5], 1 }
 0x388   :  { %2759 = vsyncpa [#allocation5 + $0x1], 1 }

</bundles_post_ra>
